<compile_context>
chip_gen: v5e
topology: v5e:2x2
jax: 0.10.0
libtpu: 0.0.40
codegen_flags: <defaults>
</compile_context>

<pallas_src>
import functools

import jax
import jax.numpy as jnp
from jax import lax
from jax.experimental import pallas as pl
from jax.experimental.pallas import tpu as pltpu


# ----------------------------------------------------------------------------
# Small helpers
# ----------------------------------------------------------------------------
def _layernorm(v, g, b, eps=1e-5):
    mu = jnp.mean(v, axis=-1, keepdims=True)
    var = jnp.mean(jnp.square(v - mu), axis=-1, keepdims=True)
    return (v - mu) * lax.rsqrt(var + eps) * g + b


def _round_up(n, k):
    return ((n + k - 1) // k) * k


def _pick_hidden_chunk(n, target):
    """MLP hidden-dim chunk: a multiple of 128 dividing n (<= target), else n."""
    if n <= target:
        return n
    t = (min(target, n) // 128) * 128
    while t >= 128:
        if n % t == 0:
            return t
        t -= 128
    return n


def _vmem_budget_bytes():
    """Generation-aware VMEM budget (leave headroom for Mosaic scratch)."""
    try:
        cap = int(pltpu.get_tpu_info().vmem_capacity_bytes)
    except Exception:
        cap = 64 * 1024 * 1024            # conservative (v7x-sized) fallback
    return max(int(cap * 0.8), 32 * 1024 * 1024)


def _cparams(semantics, est_bytes):
    budget = _vmem_budget_bytes()
    limit = int(est_bytes * 2) + (4 << 20)
    limit = max(limit, 32 * 1024 * 1024)
    limit = min(limit, budget)
    return pltpu.CompilerParams(dimension_semantics=semantics,
                                vmem_limit_bytes=limit)


def _rotate_half(t):
    """Global [even | odd] layout half-swap along the last axis."""
    half = t.shape[-1] // 2
    if t.shape[-1] % 256 == 0:
        # lane-aligned halves: single XLU rotate (rides an otherwise-idle slot)
        return pltpu.roll(t, shift=half, axis=-1)
    # small / unaligned D fallback (known-good two static lane slices)
    return jnp.concatenate([t[:, half:], t[:, :half]], axis=-1)


# Single-buffering of constant-index operands halves their VMEM footprint.
# Probe once whether this Pallas build accepts pipeline_mode=pl.Buffered(1).
_single_buffer_cache = None


def _probe_copy_kernel(x_ref, o_ref):
    o_ref[...] = x_ref[...]


def probe_single_buffering():
    global _single_buffer_cache
    if _single_buffer_cache is not None:
        return _single_buffer_cache
    try:
        spec = pl.BlockSpec((8, 128), lambda i: (0, 0), pipeline_mode=pl.Buffered(1))
        out = pl.pallas_call(
            _probe_copy_kernel,
            out_shape=jax.ShapeDtypeStruct((8, 128), jnp.float32),
            grid=(2,),
            in_specs=[spec],
            out_specs=pl.BlockSpec((8, 128), lambda i: (0, 0)),
        )(jnp.ones((8, 128), jnp.float32))
        jax.block_until_ready(out)
        _single_buffer_cache = bool(jnp.all(out == 1.0))
    except Exception:
        _single_buffer_cache = False
    return _single_buffer_cache


def _const_spec(shape):
    """BlockSpec for an operand whose block index never changes (weights)."""
    nd = len(shape)
    idx = lambda *_args, _nd=nd: (0,) * _nd
    if _single_buffer_cache:
        return pl.BlockSpec(shape, idx, pipeline_mode=pl.Buffered(1))
    return pl.BlockSpec(shape, idx)


# ----------------------------------------------------------------------------
# Kernel 1: LayerNorm1 + fused QKV projection (bf16 MXU) + RoPE
# q/k projection columns were permuted in the wrapper to the global
# [all even comps | all odd comps] layout, so RoPE is a half-swap plus
# elementwise math against full-width (ts, D) cos/sin tables (sign folded
# into sin).  The 1/sqrt(head_dim) attention scale is folded into wq/bq.
# ----------------------------------------------------------------------------
def qkv_rope_kernel(x_ref, ln_g_ref, ln_b_ref, wqkv_ref, bqkv_ref,
                    cos_ref, sin_ref, q_ref, k_ref, v_ref):
    x = x_ref[...]                                        # (ts, D) f32
    D = x.shape[-1]

    xn = _layernorm(x, ln_g_ref[...], ln_b_ref[...]).astype(jnp.bfloat16)
    qkv = jnp.dot(xn, wqkv_ref[...],
                  preferred_element_type=jnp.float32) + bqkv_ref[...]  # (ts, 3D)

    cos = cos_ref[...]                                    # (ts, D) f32
    sin = sin_ref[...]                                    # (ts, D) f32 (signed)

    def rope(t):                                          # t in [even|odd] layout
        return t * cos + _rotate_half(t) * sin

    q_ref[...] = rope(qkv[:, :D]).astype(jnp.bfloat16)
    k_ref[...] = rope(qkv[:, D:2 * D]).astype(jnp.bfloat16)
    v_ref[...] = qkv[:, 2 * D:].astype(jnp.bfloat16)


# ----------------------------------------------------------------------------
# Kernel 2: causal flash attention, grid = (B, q-tiles, kv-tiles).
# All heads are processed inside the kernel via static lane slices so q/k/v
# stay (B, S, D) (no head split/merge transposes) and the output block is a
# lane-dense (tq, D) slab.  The causal mask is only applied on diagonal
# blocks; ki > qi blocks are skipped entirely (no DMA: the wrapper clamps the
# k/v index_map).  Online-softmax stats live in f32 VMEM scratch per head.
# ----------------------------------------------------------------------------
def flash_attention_kernel(q_ref, k_ref, v_ref, o_ref, m_sc, l_sc, acc_sc,
                           *, num_heads):
    qi = pl.program_id(1)
    ki = pl.program_id(2)
    tq, D = q_ref.shape
    tk = k_ref.shape[0]
    hd = D // num_heads
    mh = hd // 2
    half = D // 2

    @pl.when(ki == 0)
    def _init():
        m_sc[...] = jnp.full(m_sc.shape, -1e30, m_sc.dtype)
        l_sc[...] = jnp.zeros(l_sc.shape, l_sc.dtype)
        acc_sc[...] = jnp.zeros(acc_sc.shape, acc_sc.dtype)

    def process(masked):
        q = q_ref[...]                  # (tq, D) bf16, pre-scaled, [even|odd]
        k = k_ref[...]                  # (tk, D) bf16, [even|odd]
        v = v_ref[...]                  # (tk, D) bf16, natural head layout
        if masked:                      # only the diagonal block needs the mask
            row = qi * tq + lax.broadcasted_iota(jnp.int32, (tq, tk), 0)
            col = ki * tk + lax.broadcasted_iota(jnp.int32, (tq, tk), 1)
            future = col > row
        for h in range(num_heads):
            qe = q[:, h * mh:(h + 1) * mh]
            qo = q[:, half + h * mh: half + (h + 1) * mh]
            ke = k[:, h * mh:(h + 1) * mh]
            ko = k[:, half + h * mh: half + (h + 1) * mh]
            s = lax.dot_general(qe, ke, (((1,), (1,)), ((), ())),
                                preferred_element_type=jnp.float32)
            s = s + lax.dot_general(qo, ko, (((1,), (1,)), ((), ())),
                                    preferred_element_type=jnp.float32)
            if masked:
                s = jnp.where(future, -1e30, s)           # finite: no inf-inf NaNs
            m_prev = m_sc[h]                              # (tq, 1)
            m_new = jnp.maximum(m_prev, jnp.max(s, axis=-1, keepdims=True))
            alpha = jnp.exp(m_prev - m_new)
            p = jnp.exp(s - m_new)
            l_sc[h] = alpha * l_sc[h] + jnp.sum(p, axis=-1, keepdims=True)
            acc_sc[h] = alpha * acc_sc[h] + jnp.dot(
                p.astype(v.dtype), v[:, h * hd:(h + 1) * hd],
                preferred_element_type=jnp.float32)
            m_sc[h] = m_new

    @pl.when(ki < qi)       # strictly-below-diagonal blocks: no mask needed
    def _off_diag():
        process(masked=False)

    @pl.when(ki == qi)      # diagonal block: causal mask
    def _diag():
        process(masked=True)

    # ki > qi: fully masked -> no compute (and no DMA; index_map is clamped).

    @pl.when(ki == pl.num_programs(2) - 1)
    def _finalize():
        for h in range(num_heads):
            o_ref[:, h * hd:(h + 1) * hd] = (
                acc_sc[h] / l_sc[h]).astype(o_ref.dtype)  # exact divide


# ----------------------------------------------------------------------------
# Kernel 3: out-projection + residual + LayerNorm2 + MLP (erf GELU) + residual.
# Grid = (B, seq-tiles, hidden-chunks): w1/w2 are streamed over the trailing
# "arbitrary" hidden axis, so the MLP weights never need to be fully
# VMEM-resident; x1 / LN2(x1) / the MLP accumulator persist in scratch.
# ----------------------------------------------------------------------------
def out_mlp_kernel(x_ref, attn_ref, wo_ref, bo_ref, ln_g_ref, ln_b_ref,
                   w1_ref, b1_ref, w2_ref, b2_ref, o_ref,
                   x1_sc, x1n_sc, acc_sc):
    hi = pl.program_id(2)

    @pl.when(hi == 0)
    def _first():
        x = x_ref[...]                                    # (ts, D) f32 residual
        a = attn_ref[...]                                 # (ts, D) bf16
        attn = jnp.dot(a, wo_ref[...],
                       preferred_element_type=jnp.float32) + bo_ref[...]
        x1 = x + attn                                     # residual 1 (f32)
        x1_sc[...] = x1
        x1n_sc[...] = _layernorm(x1, ln_g_ref[...],
                                 ln_b_ref[...]).astype(jnp.bfloat16)
        acc_sc[...] = jnp.zeros(acc_sc.shape, acc_sc.dtype)

    h = jnp.dot(x1n_sc[...], w1_ref[...],
                preferred_element_type=jnp.float32) + b1_ref[...]
    # exact erf GELU == torch.nn.GELU() default
    h = 0.5 * h * (1.0 + lax.erf(h * 0.7071067811865476))
    acc_sc[...] += jnp.dot(h.astype(jnp.bfloat16), w2_ref[...],
                           preferred_element_type=jnp.float32)

    @pl.when(hi == pl.num_programs(2) - 1)
    def _last():
        o_ref[...] = x1_sc[...] + acc_sc[...] + b2_ref[...]   # residual 2 (f32)


# ----------------------------------------------------------------------------
# Wrapper
# ----------------------------------------------------------------------------
def transformer_layer(x, params, *, num_heads, rope_base=10000.0):
    """TransformerLayer forward (eval mode, no kv-cache)."""
    B, S, D = x.shape
    H = num_heads
    hd = D // H
    assert hd * H == D and hd % 2 == 0
    m = hd // 2
    scale = hd ** -0.5
    f32, bf16 = jnp.float32, jnp.bfloat16

    budget = _vmem_budget_bytes()
    seq_target = 512 if budget >= 96 * 1024 * 1024 else 256

    # ---- sequence tiling: pad to the tile instead of blowing up the tile ---
    ts = min(seq_target, _round_up(S, 8))
    S_pad = _round_up(S, ts)
    ns = S_pad // ts
    if S_pad != S:
        x = jnp.pad(x, ((0, 0), (0, S_pad - S), (0, 0)))
    # Padded key rows are masked by causality (col > row for all valid rows);
    # padded query rows are finite garbage and sliced off at the end.

    # ---- full-width RoPE tables (S_pad, D), sign folded into sin -----------
    inv_freq = rope_base ** (-jnp.arange(0, hd, 2, dtype=f32) / hd)   # (m,)
    pos = jnp.arange(S_pad, dtype=f32)
    ang = pos[:, None] * inv_freq[None, :]                            # (S_pad, m)
    cos_full = jnp.tile(jnp.cos(ang), (1, 2 * H))                     # (S_pad, D)
    sin_half = jnp.tile(jnp.sin(ang), (1, H))
    sin_full = jnp.concatenate([-sin_half, sin_half], axis=-1)        # (S_pad, D)

    # ---- permute q/k columns to global [even | odd]; fold attention scale --
    ev = (jnp.arange(H)[:, None] * hd + 2 * jnp.arange(m)[None, :]).reshape(-1)
    perm = jnp.concatenate([ev, ev + 1])                              # (D,)

    wq = params["wq"][:, perm] * scale
    bq = params["bq"][:, perm] * scale
    wk = params["wk"][:, perm]
    bk = params["bk"][:, perm]
    # fused QKV weight: one MXU weight stream + one lane-dense result slab
    wqkv = jnp.concatenate([wq, wk, params["wv"]], axis=1).astype(bf16)  # (D,3D)
    bqkv = jnp.concatenate([bq, bk, params["bv"]], axis=1).astype(f32)   # (1,3D)

    wo = params["wo"].astype(bf16)
    bo = params["bo"].astype(f32)
    w1 = params["w1"].astype(bf16)
    b1 = params["b1"].astype(f32)
    w2 = params["w2"].astype(bf16)
    b2 = params["b2"].astype(f32)

    wbuf = 1 if _single_buffer_cache else 2

    # ==================== K1: LN1 + fused QKV + RoPE ========================
    est1 = (2 * (3 * ts * D * 4 + 3 * ts * D * 2)
            + wbuf * (3 * D * D * 2 + 3 * D * 4 + 2 * D * 4))
    q, k, v = pl.pallas_call(
        qkv_rope_kernel,
        out_shape=(jax.ShapeDtypeStruct((B, S_pad, D), bf16),) * 3,
        grid=(B, ns),
        in_specs=[
            pl.BlockSpec((None, ts, D), lambda b, si: (b, si, 0)),    # x
            _const_spec((1, D)), _const_spec((1, D)),                 # ln1 g / b
            _const_spec((D, 3 * D)), _const_spec((1, 3 * D)),         # wqkv / bqkv
            pl.BlockSpec((ts, D), lambda b, si: (si, 0)),             # cos
            pl.BlockSpec((ts, D), lambda b, si: (si, 0)),             # sin
        ],
        out_specs=[pl.BlockSpec((None, ts, D), lambda b, si: (b, si, 0))] * 3,
        compiler_params=_cparams(("parallel", "parallel"), est1),
    )(x, params["ln1_g"], params["ln1_b"], wqkv, bqkv, cos_full, sin_full)

    # ==================== K2: causal flash attention ========================
    # k/v index_map clamps ki to qi -> fully-masked blocks are never DMA'd.
    est2 = (2 * 4 * ts * D * 2 + 2 * H * ts * 128 * 4 + H * ts * hd * 4)
    attn = pl.pallas_call(
        functools.partial(flash_attention_kernel, num_heads=H),
        out_shape=jax.ShapeDtypeStruct((B, S_pad, D), bf16),
        grid=(B, ns, ns),
        in_specs=[
            pl.BlockSpec((None, ts, D), lambda b, qi, ki: (b, qi, 0)),
            pl.BlockSpec((None, ts, D),
                         lambda b, qi, ki: (b, jnp.minimum(ki, qi), 0)),
            pl.BlockSpec((None, ts, D),
                         lambda b, qi, ki: (b, jnp.minimum(ki, qi), 0)),
        ],
        out_specs=pl.BlockSpec((None, ts, D), lambda b, qi, ki: (b, qi, 0)),
        scratch_shapes=[
            pltpu.VMEM((H, ts, 1), jnp.float32),     # running max per head
            pltpu.VMEM((H, ts, 1), jnp.float32),     # running sum per head
            pltpu.VMEM((H, ts, hd), jnp.float32),    # output accumulator
        ],
        compiler_params=_cparams(("parallel", "parallel", "arbitrary"), est2),
    )(q, k, v)

    # ===== K3: out-proj + residual + LN2 + MLP (hidden streamed) + residual =
    Dh = 4 * D
    th = _pick_hidden_chunk(Dh, 512)
    nh = Dh // th
    est3 = (2 * (2 * ts * D * 4 + ts * D * 2)
            + 2 * (D * th * 2 + th * 4 + th * D * 2)
            + wbuf * (D * D * 2 + 4 * D * 4)
            + ts * D * (4 + 2 + 4) + ts * th * 4)
    out = pl.pallas_call(
        out_mlp_kernel,
        out_shape=jax.ShapeDtypeStruct((B, S_pad, D), f32),
        grid=(B, ns, nh),
        in_specs=[
            pl.BlockSpec((None, ts, D), lambda b, si, hi: (b, si, 0)),  # x
            pl.BlockSpec((None, ts, D), lambda b, si, hi: (b, si, 0)),  # attn
            _const_spec((D, D)), _const_spec((1, D)),                   # wo / bo
            _const_spec((1, D)), _const_spec((1, D)),                   # ln2 g / b
            pl.BlockSpec((D, th), lambda b, si, hi: (0, hi)),           # w1 chunk
            pl.BlockSpec((1, th), lambda b, si, hi: (0, hi)),           # b1 chunk
            pl.BlockSpec((th, D), lambda b, si, hi: (hi, 0)),           # w2 chunk
            _const_spec((1, D)),                                        # b2
        ],
        out_specs=pl.BlockSpec((None, ts, D), lambda b, si, hi: (b, si, 0)),
        scratch_shapes=[
            pltpu.VMEM((ts, D), jnp.float32),       # x1 (residual 1)
            pltpu.VMEM((ts, D), jnp.bfloat16),      # LN2(x1)
            pltpu.VMEM((ts, D), jnp.float32),       # MLP accumulator
        ],
        compiler_params=_cparams(("parallel", "parallel", "arbitrary"), est3),
    )(x, attn, wo, bo, params["ln2_g"], params["ln2_b"], w1, b1, w2, b2)

    if S_pad != S:
        out = out[:, :S, :]
    return out


# ----------------------------------------------------------------------------
# Pure-JAX f32 reference (mirrors the PyTorch module) for a sanity check
# ----------------------------------------------------------------------------
def reference(x, p, *, num_heads, rope_base=10000.0):
    B, S, D = x.shape
    H = num_heads
    hd = D // H

    def ln(v, g, b):
        mu = v.mean(-1, keepdims=True)
        var = ((v - mu) ** 2).mean(-1, keepdims=True)
        return (v - mu) / jnp.sqrt(var + 1e-5) * g + b

    xn = ln(x, p["ln1_g"], p["ln1_b"])
    q = xn @ p["wq"] + p["bq"]
    k = xn @ p["wk"] + p["bk"]
    v = xn @ p["wv"] + p["bv"]

    def heads(t):
        return t.reshape(B, S, H, hd).transpose(0, 2, 1, 3)       # (B,H,S,hd)

    qh, kh, vh = heads(q), heads(k), heads(v)

    inv_freq = rope_base ** (-jnp.arange(0, hd, 2, dtype=jnp.float32) / hd)
    pos = jnp.arange(S, dtype=jnp.float32)
    ang = pos[:, None] * inv_freq[None, :]                        # (S, hd//2)
    cos, sin = jnp.cos(ang), jnp.sin(ang)

    def rope(t):                                                  # interleaved RoPE
        te, to = t[..., 0::2], t[..., 1::2]
        re = te * cos - to * sin
        ro = te * sin + to * cos
        return jnp.stack([re, ro], axis=-1).reshape(t.shape)

    qh, kh = rope(qh), rope(kh)
    s = jnp.einsum("bhqd,bhkd->bhqk", qh, kh) * hd ** -0.5
    mask = jnp.triu(jnp.ones((S, S), bool), 1)
    s = jnp.where(mask, -jnp.inf, s)
    w = jax.nn.softmax(s, axis=-1)
    o = jnp.einsum("bhqk,bhkd->bhqd", w, vh).transpose(0, 2, 1, 3).reshape(B, S, D)
    o = o @ p["wo"] + p["bo"]
    x1 = x + o
    x1n = ln(x1, p["ln2_g"], p["ln2_b"])
    h = x1n @ p["w1"] + p["b1"]
    h = 0.5 * h * (1.0 + lax.erf(h * 0.7071067811865476))
    return x1 + (h @ p["w2"] + p["b2"])


# ----------------------------------------------------------------------------
# Main
# ----------------------------------------------------------------------------
if __name__ == "__main__":
    B, S, D, H = 2, 8, 32, 4

    key = jax.random.PRNGKey(0)
    ks = jax.random.split(key, 13)

    def w(kk, shape, scl=0.05):
        return (scl * jax.random.normal(kk, shape)).astype(jnp.float32)

    # Linear weights stored as (in, out) = PyTorch W.T; biases as (1, out).
    params = {
        "ln1_g": jnp.ones((1, D), jnp.float32),
        "ln1_b": jnp.zeros((1, D), jnp.float32),
        "wq": w(ks[0], (D, D)), "bq": w(ks[1], (1, D)),
        "wk": w(ks[2], (D, D)), "bk": w(ks[3], (1, D)),
        "wv": w(ks[4], (D, D)), "bv": w(ks[5], (1, D)),
        "wo": w(ks[6], (D, D)), "bo": w(ks[7], (1, D)),
        "ln2_g": jnp.ones((1, D), jnp.float32),
        "ln2_b": jnp.zeros((1, D), jnp.float32),
        "w1": w(ks[8], (D, 4 * D)), "b1": w(ks[9], (1, 4 * D)),
        "w2": w(ks[10], (4 * D, D)), "b2": w(ks[11], (1, D)),
    }
    x = jax.random.normal(ks[12], (B, S, D), jnp.float32)

    probe_single_buffering()   # decide pl.Buffered(1) support before tracing

    fn = jax.jit(functools.partial(transformer_layer, num_heads=H,
                                   rope_base=10000.0))
    out = jax.block_until_ready(fn(x, params))

    ref = reference(x, params, num_heads=H, rope_base=10000.0)
    assert out.shape == (B, S, D)
    err = float(jnp.max(jnp.abs(out - ref)))
    # bf16 matmul inputs -> looser tolerance than pure f32
    assert jnp.allclose(out, ref, rtol=2e-2, atol=2e-2), f"max abs err = {err}"
    print("KERNEL_OK")
</pallas_src>

<mosaic_0001>
module attributes {stable_mosaic.version = 11 : i64} {
  func.func @_probe_copy_kernel(%arg0: i32, %arg1: memref<8x128xf32, #tpu.memory_space<vmem>>, %arg2: memref<8x128xf32, #tpu.memory_space<vmem>>) attributes {dimension_semantics = [#tpu.dimension_semantics<arbitrary>], iteration_bounds = array<i64: 2>, scalar_prefetch = 0 : i64, scratch_operands = 0 : i64, tpu.core_type = #tpu.core_type<tc>, window_params = [{pipeline_mode = #tpu.pipeline_mode<synchronous>, transform_indices = @transform_0, window_bounds = array<i64: 8, 128>}, {pipeline_mode = #tpu.pipeline_mode<synchronous>, transform_indices = @transform_1, window_bounds = array<i64: 8, 128>}]} {
    %c0 = arith.constant 0 : index
    %c0_0 = arith.constant 0 : index
    %0 = vector.load %arg1[%c0, %c0_0] : memref<8x128xf32, #tpu.memory_space<vmem>>, vector<8x128xf32>
    %c0_1 = arith.constant 0 : index
    %c0_2 = arith.constant 0 : index
    %1 = vector.load %arg2[%c0_1, %c0_2] : memref<8x128xf32, #tpu.memory_space<vmem>>, vector<8x128xf32>
    tpu.vector_store %arg2[%c0_1, %c0_2], %0 {strides = array<i32>} : memref<8x128xf32, #tpu.memory_space<vmem>>, vector<8x128xf32>,
    return
  }
  func.func @transform_0(%arg0: i32) -> (i32, i32) {
    %c0_i32 = arith.constant 0 : i32
    %c0_i32_0 = arith.constant 0 : i32
    %c0_i32_1 = arith.constant 0 : i32
    return %c0_i32, %c0_i32_0 : i32, i32
  }
  func.func @transform_1(%arg0: i32) -> (i32, i32) {
    %c0_i32 = arith.constant 0 : i32
    %c0_i32_0 = arith.constant 0 : i32
    %c0_i32_1 = arith.constant 0 : i32
    return %c0_i32, %c0_i32_0 : i32, i32
  }
}

module attributes {stable_mosaic.version = 11 : i64} {
  func.func @out_mlp_kernel(%arg0: i32, %arg1: i32, %arg2: i32, %arg3: memref<1x8x32xf32, #tpu.memory_space<vmem>>, %arg4: memref<1x8x32xbf16, #tpu.memory_space<vmem>>, %arg5: memref<32x32xbf16, #tpu.memory_space<vmem>>, %arg6: memref<1x32xf32, #tpu.memory_space<vmem>>, %arg7: memref<1x32xf32, #tpu.memory_space<vmem>>, %arg8: memref<1x32xf32, #tpu.memory_space<vmem>>, %arg9: memref<32x128xbf16, #tpu.memory_space<vmem>>, %arg10: memref<1x128xf32, #tpu.memory_space<vmem>>, %arg11: memref<128x32xbf16, #tpu.memory_space<vmem>>, %arg12: memref<1x32xf32, #tpu.memory_space<vmem>>, %arg13: memref<1x8x32xf32, #tpu.memory_space<vmem>>, %arg14: memref<8x32xf32, #tpu.memory_space<vmem>>, %arg15: memref<8x32xbf16, #tpu.memory_space<vmem>>, %arg16: memref<8x32xf32, #tpu.memory_space<vmem>>) attributes {dimension_semantics = [#tpu.dimension_semantics<parallel>, #tpu.dimension_semantics<parallel>, #tpu.dimension_semantics<arbitrary>], iteration_bounds = array<i64: 2, 1, 1>, scalar_prefetch = 0 : i64, scratch_operands = 3 : i64, tpu.core_type = #tpu.core_type<tc>, window_params = [{transform_indices = @transform_0, window_bounds = array<i64: 1, 8, 32>}, {transform_indices = @transform_1, window_bounds = array<i64: 1, 8, 32>}, {pipeline_mode = #tpu.pipeline_mode<synchronous>, transform_indices = @transform_2, window_bounds = array<i64: 32, 32>}, {pipeline_mode = #tpu.pipeline_mode<synchronous>, transform_indices = @transform_3, window_bounds = array<i64: 1, 32>}, {pipeline_mode = #tpu.pipeline_mode<synchronous>, transform_indices = @transform_4, window_bounds = array<i64: 1, 32>}, {pipeline_mode = #tpu.pipeline_mode<synchronous>, transform_indices = @transform_5, window_bounds = array<i64: 1, 32>}, {transform_indices = @transform_6, window_bounds = array<i64: 32, 128>}, {transform_indices = @transform_7, window_bounds = array<i64: 1, 128>}, {transform_indices = @transform_8, window_bounds = array<i64: 128, 32>}, {pipeline_mode = #tpu.pipeline_mode<synchronous>, transform_indices = @transform_9, window_bounds = array<i64: 1, 32>}, {transform_indices = @transform_10, window_bounds = array<i64: 1, 8, 32>}]} {
    %c0_i32 = arith.constant 0 : i32
    %0 = arith.cmpi eq, %arg2, %c0_i32 : i32
    %1 = arith.extui %0 : i1 to i32
    %c0_i32_0 = arith.constant 0 : i32
    %2 = arith.cmpi ne, %1, %c0_i32_0 : i32
    scf.if %2 {
      %c0_18 = arith.constant 0 : index
      %c0_19 = arith.constant 0 : index
      %c0_20 = arith.constant 0 : index
      %26 = vector.load %arg3[%c0_18, %c0_19, %c0_20] : memref<1x8x32xf32, #tpu.memory_space<vmem>>, vector<1x8x32xf32>
      %27 = vector.shape_cast %26 : vector<1x8x32xf32> to vector<8x32xf32>
      %c0_21 = arith.constant 0 : index
      %c0_22 = arith.constant 0 : index
      %c0_23 = arith.constant 0 : index
      %28 = vector.load %arg4[%c0_21, %c0_22, %c0_23] : memref<1x8x32xbf16, #tpu.memory_space<vmem>>, vector<1x8x32xbf16>
      %29 = vector.shape_cast %28 : vector<1x8x32xbf16> to vector<8x32xbf16>
      %c0_24 = arith.constant 0 : index
      %c0_25 = arith.constant 0 : index
      %30 = vector.load %arg5[%c0_24, %c0_25] : memref<32x32xbf16, #tpu.memory_space<vmem>>, vector<32x32xbf16>
      %cst_26 = arith.constant dense<0.000000e+00> : vector<8x32xf32>
      %31 = tpu.matmul %29, %30, %cst_26 {dimension_numbers = #tpu.dot_dimension_numbers<[1], [0], [0], [1], [0, 0, 1, 1], [], []>} : vector<8x32xbf16>, vector<32x32xbf16>, vector<8x32xf32> -> vector<8x32xf32>
      %c0_27 = arith.constant 0 : index
      %c0_28 = arith.constant 0 : index
      %32 = vector.load %arg6[%c0_27, %c0_28] : memref<1x32xf32, #tpu.memory_space<vmem>>, vector<1x32xf32>
      %33 = vector.broadcast %32 : vector<1x32xf32> to vector<8x32xf32>
      %34 = arith.addf %31, %33 : vector<8x32xf32>
      %35 = arith.addf %27, %34 : vector<8x32xf32>
      %c0_29 = arith.constant 0 : index
      %c0_30 = arith.constant 0 : index
      %36 = vector.load %arg14[%c0_29, %c0_30] : memref<8x32xf32, #tpu.memory_space<vmem>>, vector<8x32xf32>
      tpu.vector_store %arg14[%c0_29, %c0_30], %35 {strides = array<i32>} : memref<8x32xf32, #tpu.memory_space<vmem>>, vector<8x32xf32>,
      %c0_31 = arith.constant 0 : index
      %c0_32 = arith.constant 0 : index
      %37 = vector.load %arg7[%c0_31, %c0_32] : memref<1x32xf32, #tpu.memory_space<vmem>>, vector<1x32xf32>
      %c0_33 = arith.constant 0 : index
      %c0_34 = arith.constant 0 : index
      %38 = vector.load %arg8[%c0_33, %c0_34] : memref<1x32xf32, #tpu.memory_space<vmem>>, vector<1x32xf32>
      %cst_35 = arith.constant dense<0.000000e+00> : vector<8xf32>
      %39 = vector.multi_reduction <add>, %35, %cst_35 [1] : vector<8x32xf32> to vector<8xf32>
      %40 = vector.shape_cast %39 : vector<8xf32> to vector<8x1xf32>
      %cst_36 = arith.constant 3.200000e+01 : f32
      %41 = vector.broadcast %cst_36 : f32 to vector<8x1xf32>
      %42 = arith.divf %40, %41 : vector<8x1xf32>
      %43 = vector.broadcast %42 : vector<8x1xf32> to vector<8x32xf32>
      %44 = arith.subf %35, %43 : vector<8x32xf32>
      %45 = arith.mulf %44, %44 : vector<8x32xf32>
      %cst_37 = arith.constant dense<0.000000e+00> : vector<8xf32>
      %46 = vector.multi_reduction <add>, %45, %cst_37 [1] : vector<8x32xf32> to vector<8xf32>
      %47 = vector.shape_cast %46 : vector<8xf32> to vector<8x1xf32>
      %cst_38 = arith.constant 3.200000e+01 : f32
      %48 = vector.broadcast %cst_38 : f32 to vector<8x1xf32>
      %49 = arith.divf %47, %48 : vector<8x1xf32>
      %50 = vector.broadcast %42 : vector<8x1xf32> to vector<8x32xf32>
      %51 = arith.subf %35, %50 : vector<8x32xf32>
      %cst_39 = arith.constant 9.99999974E-6 : f32
      %52 = vector.broadcast %cst_39 : f32 to vector<8x1xf32>
      %53 = arith.addf %49, %52 : vector<8x1xf32>
      %54 = math.rsqrt %53 : vector<8x1xf32>
      %55 = vector.broadcast %54 : vector<8x1xf32> to vector<8x32xf32>
      %56 = arith.mulf %51, %55 : vector<8x32xf32>
      %57 = vector.broadcast %37 : vector<1x32xf32> to vector<8x32xf32>
      %58 = arith.mulf %56, %57 : vector<8x32xf32>
      %59 = vector.broadcast %38 : vector<1x32xf32> to vector<8x32xf32>
      %60 = arith.addf %58, %59 : vector<8x32xf32>
      %61 = arith.truncf %60 : vector<8x32xf32> to vector<8x32xbf16>
      %c0_40 = arith.constant 0 : index
      %c0_41 = arith.constant 0 : index
      %62 = vector.load %arg15[%c0_40, %c0_41] : memref<8x32xbf16, #tpu.memory_space<vmem>>, vector<8x32xbf16>
      tpu.vector_store %arg15[%c0_40, %c0_41], %61 {strides = array<i32>} : memref<8x32xbf16, #tpu.memory_space<vmem>>, vector<8x32xbf16>,
      %cst_42 = arith.constant 0.000000e+00 : f32
      %63 = vector.broadcast %cst_42 : f32 to vector<8x32xf32>
      %c0_43 = arith.constant 0 : index
      %c0_44 = arith.constant 0 : index
      %64 = vector.load %arg16[%c0_43, %c0_44] : memref<8x32xf32, #tpu.memory_space<vmem>>, vector<8x32xf32>
      tpu.vector_store %arg16[%c0_43, %c0_44], %63 {strides = array<i32>} : memref<8x32xf32, #tpu.memory_space<vmem>>, vector<8x32xf32>,
    } else {
    }
    %c0 = arith.constant 0 : index
    %c0_1 = arith.constant 0 : index
    %3 = vector.load %arg15[%c0, %c0_1] : memref<8x32xbf16, #tpu.memory_space<vmem>>, vector<8x32xbf16>
    %c0_2 = arith.constant 0 : index
    %c0_3 = arith.constant 0 : index
    %4 = vector.load %arg9[%c0_2, %c0_3] : memref<32x128xbf16, #tpu.memory_space<vmem>>, vector<32x128xbf16>
    %cst = arith.constant dense<0.000000e+00> : vector<8x128xf32>
    %5 = tpu.matmul %3, %4, %cst {dimension_numbers = #tpu.dot_dimension_numbers<[1], [0], [0], [1], [0, 0, 1, 1], [], []>} : vector<8x32xbf16>, vector<32x128xbf16>, vector<8x128xf32> -> vector<8x128xf32>
    %c0_4 = arith.constant 0 : index
    %c0_5 = arith.constant 0 : index
    %6 = vector.load %arg10[%c0_4, %c0_5] : memref<1x128xf32, #tpu.memory_space<vmem>>, vector<1x128xf32>
    %7 = vector.broadcast %6 : vector<1x128xf32> to vector<8x128xf32>
    %8 = arith.addf %5, %7 : vector<8x128xf32>
    %cst_6 = arith.constant 5.000000e-01 : f32
    %9 = vector.broadcast %cst_6 : f32 to vector<8x128xf32>
    %10 = arith.mulf %9, %8 : vector<8x128xf32>
    %cst_7 = arith.constant 0.707106769 : f32
    %11 = vector.broadcast %cst_7 : f32 to vector<8x128xf32>
    %12 = arith.mulf %8, %11 : vector<8x128xf32>
    %13 = math.erf %12 : vector<8x128xf32>
    %cst_8 = arith.constant 1.000000e+00 : f32
    %14 = vector.broadcast %cst_8 : f32 to vector<8x128xf32>
    %15 = arith.addf %14, %13 : vector<8x128xf32>
    %16 = arith.mulf %10, %15 : vector<8x128xf32>
    %c0_9 = arith.constant 0 : index
    %c0_10 = arith.constant 0 : index
    %17 = vector.load %arg16[%c0_9, %c0_10] : memref<8x32xf32, #tpu.memory_space<vmem>>, vector<8x32xf32>
    %18 = arith.truncf %16 : vector<8x128xf32> to vector<8x128xbf16>
    %c0_11 = arith.constant 0 : index
    %c0_12 = arith.constant 0 : index
    %19 = vector.load %arg11[%c0_11, %c0_12] : memref<128x32xbf16, #tpu.memory_space<vmem>>, vector<128x32xbf16>
    %cst_13 = arith.constant dense<0.000000e+00> : vector<8x32xf32>
    %20 = tpu.matmul %18, %19, %cst_13 {dimension_numbers = #tpu.dot_dimension_numbers<[1], [0], [0], [1], [0, 0, 1, 1], [], []>} : vector<8x128xbf16>, vector<128x32xbf16>, vector<8x32xf32> -> vector<8x32xf32>
    %21 = arith.addf %17, %20 : vector<8x32xf32>
    %c0_14 = arith.constant 0 : index
    %c0_15 = arith.constant 0 : index
    %22 = vector.load %arg16[%c0_14, %c0_15] : memref<8x32xf32, #tpu.memory_space<vmem>>, vector<8x32xf32>
    tpu.vector_store %arg16[%c0_14, %c0_15], %21 {strides = array<i32>} : memref<8x32xf32, #tpu.memory_space<vmem>>, vector<8x32xf32>,
    %c0_i32_16 = arith.constant 0 : i32
    %23 = arith.cmpi eq, %arg2, %c0_i32_16 : i32
    %24 = arith.extui %23 : i1 to i32
    %c0_i32_17 = arith.constant 0 : i32
    %25 = arith.cmpi ne, %24, %c0_i32_17 : i32
    scf.if %25 {
      %c0_18 = arith.constant 0 : index
      %c0_19 = arith.constant 0 : index
      %26 = vector.load %arg14[%c0_18, %c0_19] : memref<8x32xf32, #tpu.memory_space<vmem>>, vector<8x32xf32>
      %c0_20 = arith.constant 0 : index
      %c0_21 = arith.constant 0 : index
      %27 = vector.load %arg16[%c0_20, %c0_21] : memref<8x32xf32, #tpu.memory_space<vmem>>, vector<8x32xf32>
      %28 = arith.addf %26, %27 : vector<8x32xf32>
      %c0_22 = arith.constant 0 : index
      %c0_23 = arith.constant 0 : index
      %29 = vector.load %arg12[%c0_22, %c0_23] : memref<1x32xf32, #tpu.memory_space<vmem>>, vector<1x32xf32>
      %30 = vector.broadcast %29 : vector<1x32xf32> to vector<8x32xf32>
      %31 = arith.addf %28, %30 : vector<8x32xf32>
      %c0_24 = arith.constant 0 : index
      %c0_25 = arith.constant 0 : index
      %c0_26 = arith.constant 0 : index
      %32 = vector.load %arg13[%c0_24, %c0_25, %c0_26] : memref<1x8x32xf32, #tpu.memory_space<vmem>>, vector<1x8x32xf32>
      %33 = vector.shape_cast %32 : vector<1x8x32xf32> to vector<8x32xf32>
      %34 = vector.shape_cast %31 : vector<8x32xf32> to vector<1x8x32xf32>
      tpu.vector_store %arg13[%c0_24, %c0_25, %c0_26], %34 {strides = array<i32>} : memref<1x8x32xf32, #tpu.memory_space<vmem>>, vector<1x8x32xf32>,
    } else {
    }
    return
  }
  func.func @transform_0(%arg0: i32, %arg1: i32, %arg2: i32) -> (i32, i32, i32) {
    %c0_i32 = arith.constant 0 : i32
    %c0_i32_0 = arith.constant 0 : i32
    return %arg0, %arg1, %c0_i32 : i32, i32, i32
  }
  func.func @transform_1(%arg0: i32, %arg1: i32, %arg2: i32) -> (i32, i32, i32) {
    %c0_i32 = arith.constant 0 : i32
    %c0_i32_0 = arith.constant 0 : i32
    return %arg0, %arg1, %c0_i32 : i32, i32, i32
  }
  func.func @transform_2(%arg0: i32, %arg1: i32, %arg2: i32) -> (i32, i32) {
    %c0_i32 = arith.constant 0 : i32
    %c0_i32_0 = arith.constant 0 : i32
    %c0_i32_1 = arith.constant 0 : i32
    return %c0_i32, %c0_i32_0 : i32, i32
  }
  func.func @transform_3(%arg0: i32, %arg1: i32, %arg2: i32) -> (i32, i32) {
    %c0_i32 = arith.constant 0 : i32
    %c0_i32_0 = arith.constant 0 : i32
    %c0_i32_1 = arith.constant 0 : i32
    return %c0_i32, %c0_i32_0 : i32, i32
  }
  func.func @transform_4(%arg0: i32, %arg1: i32, %arg2: i32) -> (i32, i32) {
    %c0_i32 = arith.constant 0 : i32
    %c0_i32_0 = arith.constant 0 : i32
    %c0_i32_1 = arith.constant 0 : i32
    return %c0_i32, %c0_i32_0 : i32, i32
  }
  func.func @transform_5(%arg0: i32, %arg1: i32, %arg2: i32) -> (i32, i32) {
    %c0_i32 = arith.constant 0 : i32
    %c0_i32_0 = arith.constant 0 : i32
    %c0_i32_1 = arith.constant 0 : i32
    return %c0_i32, %c0_i32_0 : i32, i32
  }
  func.func @transform_6(%arg0: i32, %arg1: i32, %arg2: i32) -> (i32, i32) {
    %c0_i32 = arith.constant 0 : i32
    %c0_i32_0 = arith.constant 0 : i32
    return %c0_i32, %arg2 : i32, i32
  }
  func.func @transform_7(%arg0: i32, %arg1: i32, %arg2: i32) -> (i32, i32) {
    %c0_i32 = arith.constant 0 : i32
    %c0_i32_0 = arith.constant 0 : i32
    return %c0_i32, %arg2 : i32, i32
  }
  func.func @transform_8(%arg0: i32, %arg1: i32, %arg2: i32) -> (i32, i32) {
    %c0_i32 = arith.constant 0 : i32
    %c0_i32_0 = arith.constant 0 : i32
    return %arg2, %c0_i32 : i32, i32
  }
  func.func @transform_9(%arg0: i32, %arg1: i32, %arg2: i32) -> (i32, i32) {
    %c0_i32 = arith.constant 0 : i32
    %c0_i32_0 = arith.constant 0 : i32
    %c0_i32_1 = arith.constant 0 : i32
    return %c0_i32, %c0_i32_0 : i32, i32
  }
  func.func @transform_10(%arg0: i32, %arg1: i32, %arg2: i32) -> (i32, i32, i32) {
    %c0_i32 = arith.constant 0 : i32
    %c0_i32_0 = arith.constant 0 : i32
    return %arg0, %arg1, %c0_i32 : i32, i32, i32
  }
}

module attributes {stable_mosaic.version = 11 : i64} {
  func.func @qkv_rope_kernel(%arg0: i32, %arg1: i32, %arg2: memref<1x8x32xf32, #tpu.memory_space<vmem>>, %arg3: memref<1x32xf32, #tpu.memory_space<vmem>>, %arg4: memref<1x32xf32, #tpu.memory_space<vmem>>, %arg5: memref<32x96xbf16, #tpu.memory_space<vmem>>, %arg6: memref<1x96xf32, #tpu.memory_space<vmem>>, %arg7: memref<8x32xf32, #tpu.memory_space<vmem>>, %arg8: memref<8x32xf32, #tpu.memory_space<vmem>>, %arg9: memref<1x8x32xbf16, #tpu.memory_space<vmem>>, %arg10: memref<1x8x32xbf16, #tpu.memory_space<vmem>>, %arg11: memref<1x8x32xbf16, #tpu.memory_space<vmem>>) attributes {dimension_semantics = [#tpu.dimension_semantics<parallel>, #tpu.dimension_semantics<parallel>], iteration_bounds = array<i64: 2, 1>, scalar_prefetch = 0 : i64, scratch_operands = 0 : i64, tpu.core_type = #tpu.core_type<tc>, window_params = [{transform_indices = @transform_0, window_bounds = array<i64: 1, 8, 32>}, {pipeline_mode = #tpu.pipeline_mode<synchronous>, transform_indices = @transform_1, window_bounds = array<i64: 1, 32>}, {pipeline_mode = #tpu.pipeline_mode<synchronous>, transform_indices = @transform_2, window_bounds = array<i64: 1, 32>}, {pipeline_mode = #tpu.pipeline_mode<synchronous>, transform_indices = @transform_3, window_bounds = array<i64: 32, 96>}, {pipeline_mode = #tpu.pipeline_mode<synchronous>, transform_indices = @transform_4, window_bounds = array<i64: 1, 96>}, {transform_indices = @transform_5, window_bounds = array<i64: 8, 32>}, {transform_indices = @transform_6, window_bounds = array<i64: 8, 32>}, {transform_indices = @transform_7, window_bounds = array<i64: 1, 8, 32>}, {transform_indices = @transform_8, window_bounds = array<i64: 1, 8, 32>}, {transform_indices = @transform_9, window_bounds = array<i64: 1, 8, 32>}]} {
    %c0 = arith.constant 0 : index
    %c0_0 = arith.constant 0 : index
    %c0_1 = arith.constant 0 : index
    %0 = vector.load %arg2[%c0, %c0_0, %c0_1] : memref<1x8x32xf32, #tpu.memory_space<vmem>>, vector<1x8x32xf32>
    %1 = vector.shape_cast %0 : vector<1x8x32xf32> to vector<8x32xf32>
    %c0_2 = arith.constant 0 : index
    %c0_3 = arith.constant 0 : index
    %2 = vector.load %arg3[%c0_2, %c0_3] : memref<1x32xf32, #tpu.memory_space<vmem>>, vector<1x32xf32>
    %c0_4 = arith.constant 0 : index
    %c0_5 = arith.constant 0 : index
    %3 = vector.load %arg4[%c0_4, %c0_5] : memref<1x32xf32, #tpu.memory_space<vmem>>, vector<1x32xf32>
    %cst = arith.constant dense<0.000000e+00> : vector<8xf32>
    %4 = vector.multi_reduction <add>, %1, %cst [1] : vector<8x32xf32> to vector<8xf32>
    %5 = vector.shape_cast %4 : vector<8xf32> to vector<8x1xf32>
    %cst_6 = arith.constant 3.200000e+01 : f32
    %6 = vector.broadcast %cst_6 : f32 to vector<8x1xf32>
    %7 = arith.divf %5, %6 : vector<8x1xf32>
    %8 = vector.broadcast %7 : vector<8x1xf32> to vector<8x32xf32>
    %9 = arith.subf %1, %8 : vector<8x32xf32>
    %10 = arith.mulf %9, %9 : vector<8x32xf32>
    %cst_7 = arith.constant dense<0.000000e+00> : vector<8xf32>
    %11 = vector.multi_reduction <add>, %10, %cst_7 [1] : vector<8x32xf32> to vector<8xf32>
    %12 = vector.shape_cast %11 : vector<8xf32> to vector<8x1xf32>
    %cst_8 = arith.constant 3.200000e+01 : f32
    %13 = vector.broadcast %cst_8 : f32 to vector<8x1xf32>
    %14 = arith.divf %12, %13 : vector<8x1xf32>
    %15 = vector.broadcast %7 : vector<8x1xf32> to vector<8x32xf32>
    %16 = arith.subf %1, %15 : vector<8x32xf32>
    %cst_9 = arith.constant 9.99999974E-6 : f32
    %17 = vector.broadcast %cst_9 : f32 to vector<8x1xf32>
    %18 = arith.addf %14, %17 : vector<8x1xf32>
    %19 = math.rsqrt %18 : vector<8x1xf32>
    %20 = vector.broadcast %19 : vector<8x1xf32> to vector<8x32xf32>
    %21 = arith.mulf %16, %20 : vector<8x32xf32>
    %22 = vector.broadcast %2 : vector<1x32xf32> to vector<8x32xf32>
    %23 = arith.mulf %21, %22 : vector<8x32xf32>
    %24 = vector.broadcast %3 : vector<1x32xf32> to vector<8x32xf32>
    %25 = arith.addf %23, %24 : vector<8x32xf32>
    %26 = arith.truncf %25 : vector<8x32xf32> to vector<8x32xbf16>
    %c0_10 = arith.constant 0 : index
    %c0_11 = arith.constant 0 : index
    %27 = vector.load %arg5[%c0_10, %c0_11] : memref<32x96xbf16, #tpu.memory_space<vmem>>, vector<32x96xbf16>
    %cst_12 = arith.constant dense<0.000000e+00> : vector<8x96xf32>
    %28 = tpu.matmul %26, %27, %cst_12 {dimension_numbers = #tpu.dot_dimension_numbers<[1], [0], [0], [1], [0, 0, 1, 1], [], []>} : vector<8x32xbf16>, vector<32x96xbf16>, vector<8x96xf32> -> vector<8x96xf32>
    %c0_13 = arith.constant 0 : index
    %c0_14 = arith.constant 0 : index
    %29 = vector.load %arg6[%c0_13, %c0_14] : memref<1x96xf32, #tpu.memory_space<vmem>>, vector<1x96xf32>
    %30 = vector.broadcast %29 : vector<1x96xf32> to vector<8x96xf32>
    %31 = arith.addf %28, %30 : vector<8x96xf32>
    %c0_15 = arith.constant 0 : index
    %c0_16 = arith.constant 0 : index
    %32 = vector.load %arg7[%c0_15, %c0_16] : memref<8x32xf32, #tpu.memory_space<vmem>>, vector<8x32xf32>
    %c0_17 = arith.constant 0 : index
    %c0_18 = arith.constant 0 : index
    %33 = vector.load %arg8[%c0_17, %c0_18] : memref<8x32xf32, #tpu.memory_space<vmem>>, vector<8x32xf32>
    %34 = vector.extract_strided_slice %31 {offsets = [0, 0], sizes = [8, 32], strides = [1, 1]} : vector<8x96xf32> to vector<8x32xf32>
    %35 = arith.mulf %34, %32 : vector<8x32xf32>
    %36 = vector.extract_strided_slice %34 {offsets = [0, 16], sizes = [8, 16], strides = [1, 1]} : vector<8x32xf32> to vector<8x16xf32>
    %37 = vector.extract_strided_slice %34 {offsets = [0, 0], sizes = [8, 16], strides = [1, 1]} : vector<8x32xf32> to vector<8x16xf32>
    %38 = tpu.concatenate %36, %37 in 1 : vector<8x16xf32>, vector<8x16xf32> -> vector<8x32xf32>
    %39 = arith.mulf %38, %33 : vector<8x32xf32>
    %40 = arith.addf %35, %39 : vector<8x32xf32>
    %41 = arith.truncf %40 : vector<8x32xf32> to vector<8x32xbf16>
    %c0_19 = arith.constant 0 : index
    %c0_20 = arith.constant 0 : index
    %c0_21 = arith.constant 0 : index
    %42 = vector.load %arg9[%c0_19, %c0_20, %c0_21] : memref<1x8x32xbf16, #tpu.memory_space<vmem>>, vector<1x8x32xbf16>
    %43 = vector.shape_cast %42 : vector<1x8x32xbf16> to vector<8x32xbf16>
    %44 = vector.shape_cast %41 : vector<8x32xbf16> to vector<1x8x32xbf16>
    tpu.vector_store %arg9[%c0_19, %c0_20, %c0_21], %44 {strides = array<i32>} : memref<1x8x32xbf16, #tpu.memory_space<vmem>>, vector<1x8x32xbf16>,
    %45 = vector.extract_strided_slice %31 {offsets = [0, 32], sizes = [8, 32], strides = [1, 1]} : vector<8x96xf32> to vector<8x32xf32>
    %46 = arith.mulf %45, %32 : vector<8x32xf32>
    %47 = vector.extract_strided_slice %45 {offsets = [0, 16], sizes = [8, 16], strides = [1, 1]} : vector<8x32xf32> to vector<8x16xf32>
    %48 = vector.extract_strided_slice %45 {offsets = [0, 0], sizes = [8, 16], strides = [1, 1]} : vector<8x32xf32> to vector<8x16xf32>
    %49 = tpu.concatenate %47, %48 in 1 : vector<8x16xf32>, vector<8x16xf32> -> vector<8x32xf32>
    %50 = arith.mulf %49, %33 : vector<8x32xf32>
    %51 = arith.addf %46, %50 : vector<8x32xf32>
    %52 = arith.truncf %51 : vector<8x32xf32> to vector<8x32xbf16>
    %c0_22 = arith.constant 0 : index
    %c0_23 = arith.constant 0 : index
    %c0_24 = arith.constant 0 : index
    %53 = vector.load %arg10[%c0_22, %c0_23, %c0_24] : memref<1x8x32xbf16, #tpu.memory_space<vmem>>, vector<1x8x32xbf16>
    %54 = vector.shape_cast %53 : vector<1x8x32xbf16> to vector<8x32xbf16>
    %55 = vector.shape_cast %52 : vector<8x32xbf16> to vector<1x8x32xbf16>
    tpu.vector_store %arg10[%c0_22, %c0_23, %c0_24], %55 {strides = array<i32>} : memref<1x8x32xbf16, #tpu.memory_space<vmem>>, vector<1x8x32xbf16>,
    %56 = vector.extract_strided_slice %31 {offsets = [0, 64], sizes = [8, 32], strides = [1, 1]} : vector<8x96xf32> to vector<8x32xf32>
    %57 = arith.truncf %56 : vector<8x32xf32> to vector<8x32xbf16>
    %c0_25 = arith.constant 0 : index
    %c0_26 = arith.constant 0 : index
    %c0_27 = arith.constant 0 : index
    %58 = vector.load %arg11[%c0_25, %c0_26, %c0_27] : memref<1x8x32xbf16, #tpu.memory_space<vmem>>, vector<1x8x32xbf16>
    %59 = vector.shape_cast %58 : vector<1x8x32xbf16> to vector<8x32xbf16>
    %60 = vector.shape_cast %57 : vector<8x32xbf16> to vector<1x8x32xbf16>
    tpu.vector_store %arg11[%c0_25, %c0_26, %c0_27], %60 {strides = array<i32>} : memref<1x8x32xbf16, #tpu.memory_space<vmem>>, vector<1x8x32xbf16>,
    return
  }
  func.func @transform_0(%arg0: i32, %arg1: i32) -> (i32, i32, i32) {
    %c0_i32 = arith.constant 0 : i32
    %c0_i32_0 = arith.constant 0 : i32
    return %arg0, %arg1, %c0_i32 : i32, i32, i32
  }
  func.func @transform_1(%arg0: i32, %arg1: i32) -> (i32, i32) {
    %c0_i32 = arith.constant 0 : i32
    %c0_i32_0 = arith.constant 0 : i32
    %c0_i32_1 = arith.constant 0 : i32
    return %c0_i32, %c0_i32_0 : i32, i32
  }
  func.func @transform_2(%arg0: i32, %arg1: i32) -> (i32, i32) {
    %c0_i32 = arith.constant 0 : i32
    %c0_i32_0 = arith.constant 0 : i32
    %c0_i32_1 = arith.constant 0 : i32
    return %c0_i32, %c0_i32_0 : i32, i32
  }
  func.func @transform_3(%arg0: i32, %arg1: i32) -> (i32, i32) {
    %c0_i32 = arith.constant 0 : i32
    %c0_i32_0 = arith.constant 0 : i32
    %c0_i32_1 = arith.constant 0 : i32
    return %c0_i32, %c0_i32_0 : i32, i32
  }
  func.func @transform_4(%arg0: i32, %arg1: i32) -> (i32, i32) {
    %c0_i32 = arith.constant 0 : i32
    %c0_i32_0 = arith.constant 0 : i32
    %c0_i32_1 = arith.constant 0 : i32
    return %c0_i32, %c0_i32_0 : i32, i32
  }
  func.func @transform_5(%arg0: i32, %arg1: i32) -> (i32, i32) {
    %c0_i32 = arith.constant 0 : i32
    %c0_i32_0 = arith.constant 0 : i32
    return %arg1, %c0_i32 : i32, i32
  }
  func.func @transform_6(%arg0: i32, %arg1: i32) -> (i32, i32) {
    %c0_i32 = arith.constant 0 : i32
    %c0_i32_0 = arith.constant 0 : i32
    return %arg1, %c0_i32 : i32, i32
  }
  func.func @transform_7(%arg0: i32, %arg1: i32) -> (i32, i32, i32) {
    %c0_i32 = arith.constant 0 : i32
    %c0_i32_0 = arith.constant 0 : i32
    return %arg0, %arg1, %c0_i32 : i32, i32, i32
  }
  func.func @transform_8(%arg0: i32, %arg1: i32) -> (i32, i32, i32) {
    %c0_i32 = arith.constant 0 : i32
    %c0_i32_0 = arith.constant 0 : i32
    return %arg0, %arg1, %c0_i32 : i32, i32, i32
  }
  func.func @transform_9(%arg0: i32, %arg1: i32) -> (i32, i32, i32) {
    %c0_i32 = arith.constant 0 : i32
    %c0_i32_0 = arith.constant 0 : i32
    return %arg0, %arg1, %c0_i32 : i32, i32, i32
  }
}

module attributes {stable_mosaic.version = 11 : i64} {
  func.func @flash_attention_kernel(%arg0: i32, %arg1: i32, %arg2: i32, %arg3: memref<1x8x32xbf16, #tpu.memory_space<vmem>>, %arg4: memref<1x8x32xbf16, #tpu.memory_space<vmem>>, %arg5: memref<1x8x32xbf16, #tpu.memory_space<vmem>>, %arg6: memref<1x8x32xbf16, #tpu.memory_space<vmem>>, %arg7: memref<4x8x1xf32, #tpu.memory_space<vmem>>, %arg8: memref<4x8x1xf32, #tpu.memory_space<vmem>>, %arg9: memref<4x8x8xf32, #tpu.memory_space<vmem>>) attributes {dimension_semantics = [#tpu.dimension_semantics<parallel>, #tpu.dimension_semantics<parallel>, #tpu.dimension_semantics<arbitrary>], iteration_bounds = array<i64: 2, 1, 1>, scalar_prefetch = 0 : i64, scratch_operands = 3 : i64, tpu.core_type = #tpu.core_type<tc>, window_params = [{transform_indices = @transform_0, window_bounds = array<i64: 1, 8, 32>}, {transform_indices = @transform_1, window_bounds = array<i64: 1, 8, 32>}, {transform_indices = @transform_2, window_bounds = array<i64: 1, 8, 32>}, {transform_indices = @transform_3, window_bounds = array<i64: 1, 8, 32>}]} {
    %c0_i32 = arith.constant 0 : i32
    %0 = arith.cmpi eq, %arg2, %c0_i32 : i32
    %1 = arith.extui %0 : i1 to i32
    %c0_i32_0 = arith.constant 0 : i32
    %2 = arith.cmpi ne, %1, %c0_i32_0 : i32
    scf.if %2 {
      %cst = arith.constant -1.000000e+30 : f32
      %12 = vector.broadcast %cst : f32 to vector<4x8x1xf32>
      %c0 = arith.constant 0 : index
      %c0_5 = arith.constant 0 : index
      %c0_6 = arith.constant 0 : index
      %13 = vector.load %arg7[%c0, %c0_5, %c0_6] : memref<4x8x1xf32, #tpu.memory_space<vmem>>, vector<4x8x1xf32>
      tpu.vector_store %arg7[%c0, %c0_5, %c0_6], %12 {strides = array<i32>} : memref<4x8x1xf32, #tpu.memory_space<vmem>>, vector<4x8x1xf32>,
      %cst_7 = arith.constant 0.000000e+00 : f32
      %14 = vector.broadcast %cst_7 : f32 to vector<4x8x1xf32>
      %c0_8 = arith.constant 0 : index
      %c0_9 = arith.constant 0 : index
      %c0_10 = arith.constant 0 : index
      %15 = vector.load %arg8[%c0_8, %c0_9, %c0_10] : memref<4x8x1xf32, #tpu.memory_space<vmem>>, vector<4x8x1xf32>
      tpu.vector_store %arg8[%c0_8, %c0_9, %c0_10], %14 {strides = array<i32>} : memref<4x8x1xf32, #tpu.memory_space<vmem>>, vector<4x8x1xf32>,
      %cst_11 = arith.constant 0.000000e+00 : f32
      %16 = vector.broadcast %cst_11 : f32 to vector<4x8x8xf32>
      %c0_12 = arith.constant 0 : index
      %c0_13 = arith.constant 0 : index
      %c0_14 = arith.constant 0 : index
      %17 = vector.load %arg9[%c0_12, %c0_13, %c0_14] : memref<4x8x8xf32, #tpu.memory_space<vmem>>, vector<4x8x8xf32>
      tpu.vector_store %arg9[%c0_12, %c0_13, %c0_14], %16 {strides = array<i32>} : memref<4x8x8xf32, #tpu.memory_space<vmem>>, vector<4x8x8xf32>,
    } else {
    }
    %3 = arith.cmpi slt, %arg2, %arg1 : i32
    %4 = arith.extui %3 : i1 to i32
    %c0_i32_1 = arith.constant 0 : i32
    %5 = arith.cmpi ne, %4, %c0_i32_1 : i32
    scf.if %5 {
      %c0 = arith.constant 0 : index
      %c0_5 = arith.constant 0 : index
      %c0_6 = arith.constant 0 : index
      %12 = vector.load %arg3[%c0, %c0_5, %c0_6] : memref<1x8x32xbf16, #tpu.memory_space<vmem>>, vector<1x8x32xbf16>
      %13 = vector.shape_cast %12 : vector<1x8x32xbf16> to vector<8x32xbf16>
      %c0_7 = arith.constant 0 : index
      %c0_8 = arith.constant 0 : index
      %c0_9 = arith.constant 0 : index
      %14 = vector.load %arg4[%c0_7, %c0_8, %c0_9] : memref<1x8x32xbf16, #tpu.memory_space<vmem>>, vector<1x8x32xbf16>
      %15 = vector.shape_cast %14 : vector<1x8x32xbf16> to vector<8x32xbf16>
      %c0_10 = arith.constant 0 : index
      %c0_11 = arith.constant 0 : index
      %c0_12 = arith.constant 0 : index
      %16 = vector.load %arg5[%c0_10, %c0_11, %c0_12] : memref<1x8x32xbf16, #tpu.memory_space<vmem>>, vector<1x8x32xbf16>
      %17 = vector.shape_cast %16 : vector<1x8x32xbf16> to vector<8x32xbf16>
      %18 = vector.extract_strided_slice %13 {offsets = [0, 0], sizes = [8, 4], strides = [1, 1]} : vector<8x32xbf16> to vector<8x4xbf16>
      %19 = vector.extract_strided_slice %13 {offsets = [0, 16], sizes = [8, 4], strides = [1, 1]} : vector<8x32xbf16> to vector<8x4xbf16>
      %20 = vector.extract_strided_slice %15 {offsets = [0, 0], sizes = [8, 4], strides = [1, 1]} : vector<8x32xbf16> to vector<8x4xbf16>
      %21 = vector.extract_strided_slice %15 {offsets = [0, 16], sizes = [8, 4], strides = [1, 1]} : vector<8x32xbf16> to vector<8x4xbf16>
      %cst = arith.constant dense<0.000000e+00> : vector<8x8xf32>
      %22 = tpu.matmul %18, %20, %cst {dimension_numbers = #tpu.dot_dimension_numbers<[1], [1], [0], [0], [0, 0, 1, 0], [], []>} : vector<8x4xbf16>, vector<8x4xbf16>, vector<8x8xf32> -> vector<8x8xf32>
      %cst_13 = arith.constant dense<0.000000e+00> : vector<8x8xf32>
      %23 = tpu.matmul %19, %21, %cst_13 {dimension_numbers = #tpu.dot_dimension_numbers<[1], [1], [0], [0], [0, 0, 1, 0], [], []>} : vector<8x4xbf16>, vector<8x4xbf16>, vector<8x8xf32> -> vector<8x8xf32>
      %24 = arith.addf %22, %23 : vector<8x8xf32>
      %c0_14 = arith.constant 0 : index
      %c0_15 = arith.constant 0 : index
      %c0_16 = arith.constant 0 : index
      %25 = vector.load %arg7[%c0_14, %c0_15, %c0_16] : memref<4x8x1xf32, #tpu.memory_space<vmem>>, vector<1x8x1xf32>
      %26 = vector.shape_cast %25 : vector<1x8x1xf32> to vector<8x1xf32>
      %cst_17 = arith.constant dense<0xFF800000> : vector<8xf32>
      %27 = vector.multi_reduction <maximumf>, %24, %cst_17 [1] : vector<8x8xf32> to vector<8xf32>
      %28 = vector.shape_cast %27 : vector<8xf32> to vector<8x1xf32>
      %29 = arith.maximumf %26, %28 : vector<8x1xf32>
      %30 = arith.subf %26, %29 : vector<8x1xf32>
      %31 = math.exp %30 : vector<8x1xf32>
      %32 = vector.broadcast %29 : vector<8x1xf32> to vector<8x8xf32>
      %33 = arith.subf %24, %32 : vector<8x8xf32>
      %34 = math.exp %33 : vector<8x8xf32>
      %c0_18 = arith.constant 0 : index
      %c0_19 = arith.constant 0 : index
      %c0_20 = arith.constant 0 : index
      %35 = vector.load %arg8[%c0_18, %c0_19, %c0_20] : memref<4x8x1xf32, #tpu.memory_space<vmem>>, vector<1x8x1xf32>
      %36 = vector.shape_cast %35 : vector<1x8x1xf32> to vector<8x1xf32>
      %37 = arith.mulf %31, %36 : vector<8x1xf32>
      %cst_21 = arith.constant dense<0.000000e+00> : vector<8xf32>
      %38 = vector.multi_reduction <add>, %34, %cst_21 [1] : vector<8x8xf32> to vector<8xf32>
      %39 = vector.shape_cast %38 : vector<8xf32> to vector<8x1xf32>
      %40 = arith.addf %37, %39 : vector<8x1xf32>
      %c0_22 = arith.constant 0 : index
      %c0_23 = arith.constant 0 : index
      %c0_24 = arith.constant 0 : index
      %41 = vector.load %arg8[%c0_22, %c0_23, %c0_24] : memref<4x8x1xf32, #tpu.memory_space<vmem>>, vector<1x8x1xf32>
      %42 = vector.shape_cast %41 : vector<1x8x1xf32> to vector<8x1xf32>
      %43 = vector.shape_cast %40 : vector<8x1xf32> to vector<1x8x1xf32>
      tpu.vector_store %arg8[%c0_22, %c0_23, %c0_24], %43 {strides = array<i32>} : memref<4x8x1xf32, #tpu.memory_space<vmem>>, vector<1x8x1xf32>,
      %c0_25 = arith.constant 0 : index
      %c0_26 = arith.constant 0 : index
      %c0_27 = arith.constant 0 : index
      %44 = vector.load %arg9[%c0_25, %c0_26, %c0_27] : memref<4x8x8xf32, #tpu.memory_space<vmem>>, vector<1x8x8xf32>
      %45 = vector.shape_cast %44 : vector<1x8x8xf32> to vector<8x8xf32>
      %46 = vector.broadcast %31 : vector<8x1xf32> to vector<8x8xf32>
      %47 = arith.mulf %46, %45 : vector<8x8xf32>
      %48 = arith.truncf %34 : vector<8x8xf32> to vector<8x8xbf16>
      %49 = vector.extract_strided_slice %17 {offsets = [0, 0], sizes = [8, 8], strides = [1, 1]} : vector<8x32xbf16> to vector<8x8xbf16>
      %cst_28 = arith.constant dense<0.000000e+00> : vector<8x8xf32>
      %50 = tpu.matmul %48, %49, %cst_28 {dimension_numbers = #tpu.dot_dimension_numbers<[1], [0], [0], [1], [0, 0, 1, 1], [], []>} : vector<8x8xbf16>, vector<8x8xbf16>, vector<8x8xf32> -> vector<8x8xf32>
      %51 = arith.addf %47, %50 : vector<8x8xf32>
      %c0_29 = arith.constant 0 : index
      %c0_30 = arith.constant 0 : index
      %c0_31 = arith.constant 0 : index
      %52 = vector.load %arg9[%c0_29, %c0_30, %c0_31] : memref<4x8x8xf32, #tpu.memory_space<vmem>>, vector<1x8x8xf32>
      %53 = vector.shape_cast %52 : vector<1x8x8xf32> to vector<8x8xf32>
      %54 = vector.shape_cast %51 : vector<8x8xf32> to vector<1x8x8xf32>
      tpu.vector_store %arg9[%c0_29, %c0_30, %c0_31], %54 {strides = array<i32>} : memref<4x8x8xf32, #tpu.memory_space<vmem>>, vector<1x8x8xf32>,
      %c0_32 = arith.constant 0 : index
      %c0_33 = arith.constant 0 : index
      %c0_34 = arith.constant 0 : index
      %55 = vector.load %arg7[%c0_32, %c0_33, %c0_34] : memref<4x8x1xf32, #tpu.memory_space<vmem>>, vector<1x8x1xf32>
      %56 = vector.shape_cast %55 : vector<1x8x1xf32> to vector<8x1xf32>
      %57 = vector.shape_cast %29 : vector<8x1xf32> to vector<1x8x1xf32>
      tpu.vector_store %arg7[%c0_32, %c0_33, %c0_34], %57 {strides = array<i32>} : memref<4x8x1xf32, #tpu.memory_space<vmem>>, vector<1x8x1xf32>,
      %58 = vector.extract_strided_slice %13 {offsets = [0, 4], sizes = [8, 4], strides = [1, 1]} : vector<8x32xbf16> to vector<8x4xbf16>
      %59 = vector.extract_strided_slice %13 {offsets = [0, 20], sizes = [8, 4], strides = [1, 1]} : vector<8x32xbf16> to vector<8x4xbf16>
      %60 = vector.extract_strided_slice %15 {offsets = [0, 4], sizes = [8, 4], strides = [1, 1]} : vector<8x32xbf16> to vector<8x4xbf16>
      %61 = vector.extract_strided_slice %15 {offsets = [0, 20], sizes = [8, 4], strides = [1, 1]} : vector<8x32xbf16> to vector<8x4xbf16>
      %cst_35 = arith.constant dense<0.000000e+00> : vector<8x8xf32>
      %62 = tpu.matmul %58, %60, %cst_35 {dimension_numbers = #tpu.dot_dimension_numbers<[1], [1], [0], [0], [0, 0, 1, 0], [], []>} : vector<8x4xbf16>, vector<8x4xbf16>, vector<8x8xf32> -> vector<8x8xf32>
      %cst_36 = arith.constant dense<0.000000e+00> : vector<8x8xf32>
      %63 = tpu.matmul %59, %61, %cst_36 {dimension_numbers = #tpu.dot_dimension_numbers<[1], [1], [0], [0], [0, 0, 1, 0], [], []>} : vector<8x4xbf16>, vector<8x4xbf16>, vector<8x8xf32> -> vector<8x8xf32>
      %64 = arith.addf %62, %63 : vector<8x8xf32>
      %c1 = arith.constant 1 : index
      %c0_37 = arith.constant 0 : index
      %c0_38 = arith.constant 0 : index
      %65 = vector.load %arg7[%c1, %c0_37, %c0_38] : memref<4x8x1xf32, #tpu.memory_space<vmem>>, vector<1x8x1xf32>
      %66 = vector.shape_cast %65 : vector<1x8x1xf32> to vector<8x1xf32>
      %cst_39 = arith.constant dense<0xFF800000> : vector<8xf32>
      %67 = vector.multi_reduction <maximumf>, %64, %cst_39 [1] : vector<8x8xf32> to vector<8xf32>
      %68 = vector.shape_cast %67 : vector<8xf32> to vector<8x1xf32>
      %69 = arith.maximumf %66, %68 : vector<8x1xf32>
      %70 = arith.subf %66, %69 : vector<8x1xf32>
      %71 = math.exp %70 : vector<8x1xf32>
      %72 = vector.broadcast %69 : vector<8x1xf32> to vector<8x8xf32>
      %73 = arith.subf %64, %72 : vector<8x8xf32>
      %74 = math.exp %73 : vector<8x8xf32>
      %c1_40 = arith.constant 1 : index
      %c0_41 = arith.constant 0 : index
      %c0_42 = arith.constant 0 : index
      %75 = vector.load %arg8[%c1_40, %c0_41, %c0_42] : memref<4x8x1xf32, #tpu.memory_space<vmem>>, vector<1x8x1xf32>
      %76 = vector.shape_cast %75 : vector<1x8x1xf32> to vector<8x1xf32>
      %77 = arith.mulf %71, %76 : vector<8x1xf32>
      %cst_43 = arith.constant dense<0.000000e+00> : vector<8xf32>
      %78 = vector.multi_reduction <add>, %74, %cst_43 [1] : vector<8x8xf32> to vector<8xf32>
      %79 = vector.shape_cast %78 : vector<8xf32> to vector<8x1xf32>
      %80 = arith.addf %77, %79 : vector<8x1xf32>
      %c1_44 = arith.constant 1 : index
      %c0_45 = arith.constant 0 : index
      %c0_46 = arith.constant 0 : index
      %81 = vector.load %arg8[%c1_44, %c0_45, %c0_46] : memref<4x8x1xf32, #tpu.memory_space<vmem>>, vector<1x8x1xf32>
      %82 = vector.shape_cast %81 : vector<1x8x1xf32> to vector<8x1xf32>
      %83 = vector.shape_cast %80 : vector<8x1xf32> to vector<1x8x1xf32>
      tpu.vector_store %arg8[%c1_44, %c0_45, %c0_46], %83 {strides = array<i32>} : memref<4x8x1xf32, #tpu.memory_space<vmem>>, vector<1x8x1xf32>,
      %c1_47 = arith.constant 1 : index
      %c0_48 = arith.constant 0 : index
      %c0_49 = arith.constant 0 : index
      %84 = vector.load %arg9[%c1_47, %c0_48, %c0_49] : memref<4x8x8xf32, #tpu.memory_space<vmem>>, vector<1x8x8xf32>
      %85 = vector.shape_cast %84 : vector<1x8x8xf32> to vector<8x8xf32>
      %86 = vector.broadcast %71 : vector<8x1xf32> to vector<8x8xf32>
      %87 = arith.mulf %86, %85 : vector<8x8xf32>
      %88 = arith.truncf %74 : vector<8x8xf32> to vector<8x8xbf16>
      %89 = vector.extract_strided_slice %17 {offsets = [0, 8], sizes = [8, 8], strides = [1, 1]} : vector<8x32xbf16> to vector<8x8xbf16>
      %cst_50 = arith.constant dense<0.000000e+00> : vector<8x8xf32>
      %90 = tpu.matmul %88, %89, %cst_50 {dimension_numbers = #tpu.dot_dimension_numbers<[1], [0], [0], [1], [0, 0, 1, 1], [], []>} : vector<8x8xbf16>, vector<8x8xbf16>, vector<8x8xf32> -> vector<8x8xf32>
      %91 = arith.addf %87, %90 : vector<8x8xf32>
      %c1_51 = arith.constant 1 : index
      %c0_52 = arith.constant 0 : index
      %c0_53 = arith.constant 0 : index
      %92 = vector.load %arg9[%c1_51, %c0_52, %c0_53] : memref<4x8x8xf32, #tpu.memory_space<vmem>>, vector<1x8x8xf32>
      %93 = vector.shape_cast %92 : vector<1x8x8xf32> to vector<8x8xf32>
      %94 = vector.shape_cast %91 : vector<8x8xf32> to vector<1x8x8xf32>
      tpu.vector_store %arg9[%c1_51, %c0_52, %c0_53], %94 {strides = array<i32>} : memref<4x8x8xf32, #tpu.memory_space<vmem>>, vector<1x8x8xf32>,
      %c1_54 = arith.constant 1 : index
      %c0_55 = arith.constant 0 : index
      %c0_56 = arith.constant 0 : index
      %95 = vector.load %arg7[%c1_54, %c0_55, %c0_56] : memref<4x8x1xf32, #tpu.memory_space<vmem>>, vector<1x8x1xf32>
      %96 = vector.shape_cast %95 : vector<1x8x1xf32> to vector<8x1xf32>
      %97 = vector.shape_cast %69 : vector<8x1xf32> to vector<1x8x1xf32>
      tpu.vector_store %arg7[%c1_54, %c0_55, %c0_56], %97 {strides = array<i32>} : memref<4x8x1xf32, #tpu.memory_space<vmem>>, vector<1x8x1xf32>,
      %98 = vector.extract_strided_slice %13 {offsets = [0, 8], sizes = [8, 4], strides = [1, 1]} : vector<8x32xbf16> to vector<8x4xbf16>
      %99 = vector.extract_strided_slice %13 {offsets = [0, 24], sizes = [8, 4], strides = [1, 1]} : vector<8x32xbf16> to vector<8x4xbf16>
      %100 = vector.extract_strided_slice %15 {offsets = [0, 8], sizes = [8, 4], strides = [1, 1]} : vector<8x32xbf16> to vector<8x4xbf16>
      %101 = vector.extract_strided_slice %15 {offsets = [0, 24], sizes = [8, 4], strides = [1, 1]} : vector<8x32xbf16> to vector<8x4xbf16>
      %cst_57 = arith.constant dense<0.000000e+00> : vector<8x8xf32>
      %102 = tpu.matmul %98, %100, %cst_57 {dimension_numbers = #tpu.dot_dimension_numbers<[1], [1], [0], [0], [0, 0, 1, 0], [], []>} : vector<8x4xbf16>, vector<8x4xbf16>, vector<8x8xf32> -> vector<8x8xf32>
      %cst_58 = arith.constant dense<0.000000e+00> : vector<8x8xf32>
      %103 = tpu.matmul %99, %101, %cst_58 {dimension_numbers = #tpu.dot_dimension_numbers<[1], [1], [0], [0], [0, 0, 1, 0], [], []>} : vector<8x4xbf16>, vector<8x4xbf16>, vector<8x8xf32> -> vector<8x8xf32>
      %104 = arith.addf %102, %103 : vector<8x8xf32>
      %c2 = arith.constant 2 : index
      %c0_59 = arith.constant 0 : index
      %c0_60 = arith.constant 0 : index
      %105 = vector.load %arg7[%c2, %c0_59, %c0_60] : memref<4x8x1xf32, #tpu.memory_space<vmem>>, vector<1x8x1xf32>
      %106 = vector.shape_cast %105 : vector<1x8x1xf32> to vector<8x1xf32>
      %cst_61 = arith.constant dense<0xFF800000> : vector<8xf32>
      %107 = vector.multi_reduction <maximumf>, %104, %cst_61 [1] : vector<8x8xf32> to vector<8xf32>
      %108 = vector.shape_cast %107 : vector<8xf32> to vector<8x1xf32>
      %109 = arith.maximumf %106, %108 : vector<8x1xf32>
      %110 = arith.subf %106, %109 : vector<8x1xf32>
      %111 = math.exp %110 : vector<8x1xf32>
      %112 = vector.broadcast %109 : vector<8x1xf32> to vector<8x8xf32>
      %113 = arith.subf %104, %112 : vector<8x8xf32>
      %114 = math.exp %113 : vector<8x8xf32>
      %c2_62 = arith.constant 2 : index
      %c0_63 = arith.constant 0 : index
      %c0_64 = arith.constant 0 : index
      %115 = vector.load %arg8[%c2_62, %c0_63, %c0_64] : memref<4x8x1xf32, #tpu.memory_space<vmem>>, vector<1x8x1xf32>
      %116 = vector.shape_cast %115 : vector<1x8x1xf32> to vector<8x1xf32>
      %117 = arith.mulf %111, %116 : vector<8x1xf32>
      %cst_65 = arith.constant dense<0.000000e+00> : vector<8xf32>
      %118 = vector.multi_reduction <add>, %114, %cst_65 [1] : vector<8x8xf32> to vector<8xf32>
      %119 = vector.shape_cast %118 : vector<8xf32> to vector<8x1xf32>
      %120 = arith.addf %117, %119 : vector<8x1xf32>
      %c2_66 = arith.constant 2 : index
      %c0_67 = arith.constant 0 : index
      %c0_68 = arith.constant 0 : index
      %121 = vector.load %arg8[%c2_66, %c0_67, %c0_68] : memref<4x8x1xf32, #tpu.memory_space<vmem>>, vector<1x8x1xf32>
      %122 = vector.shape_cast %121 : vector<1x8x1xf32> to vector<8x1xf32>
      %123 = vector.shape_cast %120 : vector<8x1xf32> to vector<1x8x1xf32>
      tpu.vector_store %arg8[%c2_66, %c0_67, %c0_68], %123 {strides = array<i32>} : memref<4x8x1xf32, #tpu.memory_space<vmem>>, vector<1x8x1xf32>,
      %c2_69 = arith.constant 2 : index
      %c0_70 = arith.constant 0 : index
      %c0_71 = arith.constant 0 : index
      %124 = vector.load %arg9[%c2_69, %c0_70, %c0_71] : memref<4x8x8xf32, #tpu.memory_space<vmem>>, vector<1x8x8xf32>
      %125 = vector.shape_cast %124 : vector<1x8x8xf32> to vector<8x8xf32>
      %126 = vector.broadcast %111 : vector<8x1xf32> to vector<8x8xf32>
      %127 = arith.mulf %126, %125 : vector<8x8xf32>
      %128 = arith.truncf %114 : vector<8x8xf32> to vector<8x8xbf16>
      %129 = vector.extract_strided_slice %17 {offsets = [0, 16], sizes = [8, 8], strides = [1, 1]} : vector<8x32xbf16> to vector<8x8xbf16>
      %cst_72 = arith.constant dense<0.000000e+00> : vector<8x8xf32>
      %130 = tpu.matmul %128, %129, %cst_72 {dimension_numbers = #tpu.dot_dimension_numbers<[1], [0], [0], [1], [0, 0, 1, 1], [], []>} : vector<8x8xbf16>, vector<8x8xbf16>, vector<8x8xf32> -> vector<8x8xf32>
      %131 = arith.addf %127, %130 : vector<8x8xf32>
      %c2_73 = arith.constant 2 : index
      %c0_74 = arith.constant 0 : index
      %c0_75 = arith.constant 0 : index
      %132 = vector.load %arg9[%c2_73, %c0_74, %c0_75] : memref<4x8x8xf32, #tpu.memory_space<vmem>>, vector<1x8x8xf32>
      %133 = vector.shape_cast %132 : vector<1x8x8xf32> to vector<8x8xf32>
      %134 = vector.shape_cast %131 : vector<8x8xf32> to vector<1x8x8xf32>
      tpu.vector_store %arg9[%c2_73, %c0_74, %c0_75], %134 {strides = array<i32>} : memref<4x8x8xf32, #tpu.memory_space<vmem>>, vector<1x8x8xf32>,
      %c2_76 = arith.constant 2 : index
      %c0_77 = arith.constant 0 : index
      %c0_78 = arith.constant 0 : index
      %135 = vector.load %arg7[%c2_76, %c0_77, %c0_78] : memref<4x8x1xf32, #tpu.memory_space<vmem>>, vector<1x8x1xf32>
      %136 = vector.shape_cast %135 : vector<1x8x1xf32> to vector<8x1xf32>
      %137 = vector.shape_cast %109 : vector<8x1xf32> to vector<1x8x1xf32>
      tpu.vector_store %arg7[%c2_76, %c0_77, %c0_78], %137 {strides = array<i32>} : memref<4x8x1xf32, #tpu.memory_space<vmem>>, vector<1x8x1xf32>,
      %138 = vector.extract_strided_slice %13 {offsets = [0, 12], sizes = [8, 4], strides = [1, 1]} : vector<8x32xbf16> to vector<8x4xbf16>
      %139 = vector.extract_strided_slice %13 {offsets = [0, 28], sizes = [8, 4], strides = [1, 1]} : vector<8x32xbf16> to vector<8x4xbf16>
      %140 = vector.extract_strided_slice %15 {offsets = [0, 12], sizes = [8, 4], strides = [1, 1]} : vector<8x32xbf16> to vector<8x4xbf16>
      %141 = vector.extract_strided_slice %15 {offsets = [0, 28], sizes = [8, 4], strides = [1, 1]} : vector<8x32xbf16> to vector<8x4xbf16>
      %cst_79 = arith.constant dense<0.000000e+00> : vector<8x8xf32>
      %142 = tpu.matmul %138, %140, %cst_79 {dimension_numbers = #tpu.dot_dimension_numbers<[1], [1], [0], [0], [0, 0, 1, 0], [], []>} : vector<8x4xbf16>, vector<8x4xbf16>, vector<8x8xf32> -> vector<8x8xf32>
      %cst_80 = arith.constant dense<0.000000e+00> : vector<8x8xf32>
      %143 = tpu.matmul %139, %141, %cst_80 {dimension_numbers = #tpu.dot_dimension_numbers<[1], [1], [0], [0], [0, 0, 1, 0], [], []>} : vector<8x4xbf16>, vector<8x4xbf16>, vector<8x8xf32> -> vector<8x8xf32>
      %144 = arith.addf %142, %143 : vector<8x8xf32>
      %c3 = arith.constant 3 : index
      %c0_81 = arith.constant 0 : index
      %c0_82 = arith.constant 0 : index
      %145 = vector.load %arg7[%c3, %c0_81, %c0_82] : memref<4x8x1xf32, #tpu.memory_space<vmem>>, vector<1x8x1xf32>
      %146 = vector.shape_cast %145 : vector<1x8x1xf32> to vector<8x1xf32>
      %cst_83 = arith.constant dense<0xFF800000> : vector<8xf32>
      %147 = vector.multi_reduction <maximumf>, %144, %cst_83 [1] : vector<8x8xf32> to vector<8xf32>
      %148 = vector.shape_cast %147 : vector<8xf32> to vector<8x1xf32>
      %149 = arith.maximumf %146, %148 : vector<8x1xf32>
      %150 = arith.subf %146, %149 : vector<8x1xf32>
      %151 = math.exp %150 : vector<8x1xf32>
      %152 = vector.broadcast %149 : vector<8x1xf32> to vector<8x8xf32>
      %153 = arith.subf %144, %152 : vector<8x8xf32>
      %154 = math.exp %153 : vector<8x8xf32>
      %c3_84 = arith.constant 3 : index
      %c0_85 = arith.constant 0 : index
      %c0_86 = arith.constant 0 : index
      %155 = vector.load %arg8[%c3_84, %c0_85, %c0_86] : memref<4x8x1xf32, #tpu.memory_space<vmem>>, vector<1x8x1xf32>
      %156 = vector.shape_cast %155 : vector<1x8x1xf32> to vector<8x1xf32>
      %157 = arith.mulf %151, %156 : vector<8x1xf32>
      %cst_87 = arith.constant dense<0.000000e+00> : vector<8xf32>
      %158 = vector.multi_reduction <add>, %154, %cst_87 [1] : vector<8x8xf32> to vector<8xf32>
      %159 = vector.shape_cast %158 : vector<8xf32> to vector<8x1xf32>
      %160 = arith.addf %157, %159 : vector<8x1xf32>
      %c3_88 = arith.constant 3 : index
      %c0_89 = arith.constant 0 : index
      %c0_90 = arith.constant 0 : index
      %161 = vector.load %arg8[%c3_88, %c0_89, %c0_90] : memref<4x8x1xf32, #tpu.memory_space<vmem>>, vector<1x8x1xf32>
      %162 = vector.shape_cast %161 : vector<1x8x1xf32> to vector<8x1xf32>
      %163 = vector.shape_cast %160 : vector<8x1xf32> to vector<1x8x1xf32>
      tpu.vector_store %arg8[%c3_88, %c0_89, %c0_90], %163 {strides = array<i32>} : memref<4x8x1xf32, #tpu.memory_space<vmem>>, vector<1x8x1xf32>,
      %c3_91 = arith.constant 3 : index
      %c0_92 = arith.constant 0 : index
      %c0_93 = arith.constant 0 : index
      %164 = vector.load %arg9[%c3_91, %c0_92, %c0_93] : memref<4x8x8xf32, #tpu.memory_space<vmem>>, vector<1x8x8xf32>
      %165 = vector.shape_cast %164 : vector<1x8x8xf32> to vector<8x8xf32>
      %166 = vector.broadcast %151 : vector<8x1xf32> to vector<8x8xf32>
      %167 = arith.mulf %166, %165 : vector<8x8xf32>
      %168 = arith.truncf %154 : vector<8x8xf32> to vector<8x8xbf16>
      %169 = vector.extract_strided_slice %17 {offsets = [0, 24], sizes = [8, 8], strides = [1, 1]} : vector<8x32xbf16> to vector<8x8xbf16>
      %cst_94 = arith.constant dense<0.000000e+00> : vector<8x8xf32>
      %170 = tpu.matmul %168, %169, %cst_94 {dimension_numbers = #tpu.dot_dimension_numbers<[1], [0], [0], [1], [0, 0, 1, 1], [], []>} : vector<8x8xbf16>, vector<8x8xbf16>, vector<8x8xf32> -> vector<8x8xf32>
      %171 = arith.addf %167, %170 : vector<8x8xf32>
      %c3_95 = arith.constant 3 : index
      %c0_96 = arith.constant 0 : index
      %c0_97 = arith.constant 0 : index
      %172 = vector.load %arg9[%c3_95, %c0_96, %c0_97] : memref<4x8x8xf32, #tpu.memory_space<vmem>>, vector<1x8x8xf32>
      %173 = vector.shape_cast %172 : vector<1x8x8xf32> to vector<8x8xf32>
      %174 = vector.shape_cast %171 : vector<8x8xf32> to vector<1x8x8xf32>
      tpu.vector_store %arg9[%c3_95, %c0_96, %c0_97], %174 {strides = array<i32>} : memref<4x8x8xf32, #tpu.memory_space<vmem>>, vector<1x8x8xf32>,
      %c3_98 = arith.constant 3 : index
      %c0_99 = arith.constant 0 : index
      %c0_100 = arith.constant 0 : index
      %175 = vector.load %arg7[%c3_98, %c0_99, %c0_100] : memref<4x8x1xf32, #tpu.memory_space<vmem>>, vector<1x8x1xf32>
      %176 = vector.shape_cast %175 : vector<1x8x1xf32> to vector<8x1xf32>
      %177 = vector.shape_cast %149 : vector<8x1xf32> to vector<1x8x1xf32>
      tpu.vector_store %arg7[%c3_98, %c0_99, %c0_100], %177 {strides = array<i32>} : memref<4x8x1xf32, #tpu.memory_space<vmem>>, vector<1x8x1xf32>,
    } else {
    }
    %6 = arith.cmpi eq, %arg2, %arg1 : i32
    %7 = arith.extui %6 : i1 to i32
    %c0_i32_2 = arith.constant 0 : i32
    %8 = arith.cmpi ne, %7, %c0_i32_2 : i32
    scf.if %8 {
      %c0 = arith.constant 0 : index
      %c0_5 = arith.constant 0 : index
      %c0_6 = arith.constant 0 : index
      %12 = vector.load %arg3[%c0, %c0_5, %c0_6] : memref<1x8x32xbf16, #tpu.memory_space<vmem>>, vector<1x8x32xbf16>
      %13 = vector.shape_cast %12 : vector<1x8x32xbf16> to vector<8x32xbf16>
      %c0_7 = arith.constant 0 : index
      %c0_8 = arith.constant 0 : index
      %c0_9 = arith.constant 0 : index
      %14 = vector.load %arg4[%c0_7, %c0_8, %c0_9] : memref<1x8x32xbf16, #tpu.memory_space<vmem>>, vector<1x8x32xbf16>
      %15 = vector.shape_cast %14 : vector<1x8x32xbf16> to vector<8x32xbf16>
      %c0_10 = arith.constant 0 : index
      %c0_11 = arith.constant 0 : index
      %c0_12 = arith.constant 0 : index
      %16 = vector.load %arg5[%c0_10, %c0_11, %c0_12] : memref<1x8x32xbf16, #tpu.memory_space<vmem>>, vector<1x8x32xbf16>
      %17 = vector.shape_cast %16 : vector<1x8x32xbf16> to vector<8x32xbf16>
      %c8_i32 = arith.constant 8 : i32
      %18 = arith.muli %arg1, %c8_i32 : i32
      %19 = tpu.iota {dimensions = array<i32: 0>} : vector<8x8xi32>
      %20 = vector.broadcast %18 : i32 to vector<8x8xi32>
      %21 = arith.addi %20, %19 : vector<8x8xi32>
      %c8_i32_13 = arith.constant 8 : i32
      %22 = arith.muli %arg2, %c8_i32_13 : i32
      %23 = tpu.iota {dimensions = array<i32: 1>} : vector<8x8xi32>
      %24 = vector.broadcast %22 : i32 to vector<8x8xi32>
      %25 = arith.addi %24, %23 : vector<8x8xi32>
      %26 = arith.cmpi sgt, %25, %21 : vector<8x8xi32>
      %27 = vector.extract_strided_slice %13 {offsets = [0, 0], sizes = [8, 4], strides = [1, 1]} : vector<8x32xbf16> to vector<8x4xbf16>
      %28 = vector.extract_strided_slice %13 {offsets = [0, 16], sizes = [8, 4], strides = [1, 1]} : vector<8x32xbf16> to vector<8x4xbf16>
      %29 = vector.extract_strided_slice %15 {offsets = [0, 0], sizes = [8, 4], strides = [1, 1]} : vector<8x32xbf16> to vector<8x4xbf16>
      %30 = vector.extract_strided_slice %15 {offsets = [0, 16], sizes = [8, 4], strides = [1, 1]} : vector<8x32xbf16> to vector<8x4xbf16>
      %cst = arith.constant dense<0.000000e+00> : vector<8x8xf32>
      %31 = tpu.matmul %27, %29, %cst {dimension_numbers = #tpu.dot_dimension_numbers<[1], [1], [0], [0], [0, 0, 1, 0], [], []>} : vector<8x4xbf16>, vector<8x4xbf16>, vector<8x8xf32> -> vector<8x8xf32>
      %cst_14 = arith.constant dense<0.000000e+00> : vector<8x8xf32>
      %32 = tpu.matmul %28, %30, %cst_14 {dimension_numbers = #tpu.dot_dimension_numbers<[1], [1], [0], [0], [0, 0, 1, 0], [], []>} : vector<8x4xbf16>, vector<8x4xbf16>, vector<8x8xf32> -> vector<8x8xf32>
      %33 = arith.addf %31, %32 : vector<8x8xf32>
      %cst_15 = arith.constant -1.000000e+30 : f32
      %34 = vector.broadcast %cst_15 : f32 to vector<8x8xf32>
      %35 = arith.select %26, %34, %33 : vector<8x8xi1>, vector<8x8xf32>
      %c0_16 = arith.constant 0 : index
      %c0_17 = arith.constant 0 : index
      %c0_18 = arith.constant 0 : index
      %36 = vector.load %arg7[%c0_16, %c0_17, %c0_18] : memref<4x8x1xf32, #tpu.memory_space<vmem>>, vector<1x8x1xf32>
      %37 = vector.shape_cast %36 : vector<1x8x1xf32> to vector<8x1xf32>
      %cst_19 = arith.constant dense<0xFF800000> : vector<8xf32>
      %38 = vector.multi_reduction <maximumf>, %35, %cst_19 [1] : vector<8x8xf32> to vector<8xf32>
      %39 = vector.shape_cast %38 : vector<8xf32> to vector<8x1xf32>
      %40 = arith.maximumf %37, %39 : vector<8x1xf32>
      %41 = arith.subf %37, %40 : vector<8x1xf32>
      %42 = math.exp %41 : vector<8x1xf32>
      %43 = vector.broadcast %40 : vector<8x1xf32> to vector<8x8xf32>
      %44 = arith.subf %35, %43 : vector<8x8xf32>
      %45 = math.exp %44 : vector<8x8xf32>
      %c0_20 = arith.constant 0 : index
      %c0_21 = arith.constant 0 : index
      %c0_22 = arith.constant 0 : index
      %46 = vector.load %arg8[%c0_20, %c0_21, %c0_22] : memref<4x8x1xf32, #tpu.memory_space<vmem>>, vector<1x8x1xf32>
      %47 = vector.shape_cast %46 : vector<1x8x1xf32> to vector<8x1xf32>
      %48 = arith.mulf %42, %47 : vector<8x1xf32>
      %cst_23 = arith.constant dense<0.000000e+00> : vector<8xf32>
      %49 = vector.multi_reduction <add>, %45, %cst_23 [1] : vector<8x8xf32> to vector<8xf32>
      %50 = vector.shape_cast %49 : vector<8xf32> to vector<8x1xf32>
      %51 = arith.addf %48, %50 : vector<8x1xf32>
      %c0_24 = arith.constant 0 : index
      %c0_25 = arith.constant 0 : index
      %c0_26 = arith.constant 0 : index
      %52 = vector.load %arg8[%c0_24, %c0_25, %c0_26] : memref<4x8x1xf32, #tpu.memory_space<vmem>>, vector<1x8x1xf32>
      %53 = vector.shape_cast %52 : vector<1x8x1xf32> to vector<8x1xf32>
      %54 = vector.shape_cast %51 : vector<8x1xf32> to vector<1x8x1xf32>
      tpu.vector_store %arg8[%c0_24, %c0_25, %c0_26], %54 {strides = array<i32>} : memref<4x8x1xf32, #tpu.memory_space<vmem>>, vector<1x8x1xf32>,
      %c0_27 = arith.constant 0 : index
      %c0_28 = arith.constant 0 : index
      %c0_29 = arith.constant 0 : index
      %55 = vector.load %arg9[%c0_27, %c0_28, %c0_29] : memref<4x8x8xf32, #tpu.memory_space<vmem>>, vector<1x8x8xf32>
      %56 = vector.shape_cast %55 : vector<1x8x8xf32> to vector<8x8xf32>
      %57 = vector.broadcast %42 : vector<8x1xf32> to vector<8x8xf32>
      %58 = arith.mulf %57, %56 : vector<8x8xf32>
      %59 = arith.truncf %45 : vector<8x8xf32> to vector<8x8xbf16>
      %60 = vector.extract_strided_slice %17 {offsets = [0, 0], sizes = [8, 8], strides = [1, 1]} : vector<8x32xbf16> to vector<8x8xbf16>
      %cst_30 = arith.constant dense<0.000000e+00> : vector<8x8xf32>
      %61 = tpu.matmul %59, %60, %cst_30 {dimension_numbers = #tpu.dot_dimension_numbers<[1], [0], [0], [1], [0, 0, 1, 1], [], []>} : vector<8x8xbf16>, vector<8x8xbf16>, vector<8x8xf32> -> vector<8x8xf32>
      %62 = arith.addf %58, %61 : vector<8x8xf32>
      %c0_31 = arith.constant 0 : index
      %c0_32 = arith.constant 0 : index
      %c0_33 = arith.constant 0 : index
      %63 = vector.load %arg9[%c0_31, %c0_32, %c0_33] : memref<4x8x8xf32, #tpu.memory_space<vmem>>, vector<1x8x8xf32>
      %64 = vector.shape_cast %63 : vector<1x8x8xf32> to vector<8x8xf32>
      %65 = vector.shape_cast %62 : vector<8x8xf32> to vector<1x8x8xf32>
      tpu.vector_store %arg9[%c0_31, %c0_32, %c0_33], %65 {strides = array<i32>} : memref<4x8x8xf32, #tpu.memory_space<vmem>>, vector<1x8x8xf32>,
      %c0_34 = arith.constant 0 : index
      %c0_35 = arith.constant 0 : index
      %c0_36 = arith.constant 0 : index
      %66 = vector.load %arg7[%c0_34, %c0_35, %c0_36] : memref<4x8x1xf32, #tpu.memory_space<vmem>>, vector<1x8x1xf32>
      %67 = vector.shape_cast %66 : vector<1x8x1xf32> to vector<8x1xf32>
      %68 = vector.shape_cast %40 : vector<8x1xf32> to vector<1x8x1xf32>
      tpu.vector_store %arg7[%c0_34, %c0_35, %c0_36], %68 {strides = array<i32>} : memref<4x8x1xf32, #tpu.memory_space<vmem>>, vector<1x8x1xf32>,
      %69 = vector.extract_strided_slice %13 {offsets = [0, 4], sizes = [8, 4], strides = [1, 1]} : vector<8x32xbf16> to vector<8x4xbf16>
      %70 = vector.extract_strided_slice %13 {offsets = [0, 20], sizes = [8, 4], strides = [1, 1]} : vector<8x32xbf16> to vector<8x4xbf16>
      %71 = vector.extract_strided_slice %15 {offsets = [0, 4], sizes = [8, 4], strides = [1, 1]} : vector<8x32xbf16> to vector<8x4xbf16>
      %72 = vector.extract_strided_slice %15 {offsets = [0, 20], sizes = [8, 4], strides = [1, 1]} : vector<8x32xbf16> to vector<8x4xbf16>
      %cst_37 = arith.constant dense<0.000000e+00> : vector<8x8xf32>
      %73 = tpu.matmul %69, %71, %cst_37 {dimension_numbers = #tpu.dot_dimension_numbers<[1], [1], [0], [0], [0, 0, 1, 0], [], []>} : vector<8x4xbf16>, vector<8x4xbf16>, vector<8x8xf32> -> vector<8x8xf32>
      %cst_38 = arith.constant dense<0.000000e+00> : vector<8x8xf32>
      %74 = tpu.matmul %70, %72, %cst_38 {dimension_numbers = #tpu.dot_dimension_numbers<[1], [1], [0], [0], [0, 0, 1, 0], [], []>} : vector<8x4xbf16>, vector<8x4xbf16>, vector<8x8xf32> -> vector<8x8xf32>
      %75 = arith.addf %73, %74 : vector<8x8xf32>
      %cst_39 = arith.constant -1.000000e+30 : f32
      %76 = vector.broadcast %cst_39 : f32 to vector<8x8xf32>
      %77 = arith.select %26, %76, %75 : vector<8x8xi1>, vector<8x8xf32>
      %c1 = arith.constant 1 : index
      %c0_40 = arith.constant 0 : index
      %c0_41 = arith.constant 0 : index
      %78 = vector.load %arg7[%c1, %c0_40, %c0_41] : memref<4x8x1xf32, #tpu.memory_space<vmem>>, vector<1x8x1xf32>
      %79 = vector.shape_cast %78 : vector<1x8x1xf32> to vector<8x1xf32>
      %cst_42 = arith.constant dense<0xFF800000> : vector<8xf32>
      %80 = vector.multi_reduction <maximumf>, %77, %cst_42 [1] : vector<8x8xf32> to vector<8xf32>
      %81 = vector.shape_cast %80 : vector<8xf32> to vector<8x1xf32>
      %82 = arith.maximumf %79, %81 : vector<8x1xf32>
      %83 = arith.subf %79, %82 : vector<8x1xf32>
      %84 = math.exp %83 : vector<8x1xf32>
      %85 = vector.broadcast %82 : vector<8x1xf32> to vector<8x8xf32>
      %86 = arith.subf %77, %85 : vector<8x8xf32>
      %87 = math.exp %86 : vector<8x8xf32>
      %c1_43 = arith.constant 1 : index
      %c0_44 = arith.constant 0 : index
      %c0_45 = arith.constant 0 : index
      %88 = vector.load %arg8[%c1_43, %c0_44, %c0_45] : memref<4x8x1xf32, #tpu.memory_space<vmem>>, vector<1x8x1xf32>
      %89 = vector.shape_cast %88 : vector<1x8x1xf32> to vector<8x1xf32>
      %90 = arith.mulf %84, %89 : vector<8x1xf32>
      %cst_46 = arith.constant dense<0.000000e+00> : vector<8xf32>
      %91 = vector.multi_reduction <add>, %87, %cst_46 [1] : vector<8x8xf32> to vector<8xf32>
      %92 = vector.shape_cast %91 : vector<8xf32> to vector<8x1xf32>
      %93 = arith.addf %90, %92 : vector<8x1xf32>
      %c1_47 = arith.constant 1 : index
      %c0_48 = arith.constant 0 : index
      %c0_49 = arith.constant 0 : index
      %94 = vector.load %arg8[%c1_47, %c0_48, %c0_49] : memref<4x8x1xf32, #tpu.memory_space<vmem>>, vector<1x8x1xf32>
      %95 = vector.shape_cast %94 : vector<1x8x1xf32> to vector<8x1xf32>
      %96 = vector.shape_cast %93 : vector<8x1xf32> to vector<1x8x1xf32>
      tpu.vector_store %arg8[%c1_47, %c0_48, %c0_49], %96 {strides = array<i32>} : memref<4x8x1xf32, #tpu.memory_space<vmem>>, vector<1x8x1xf32>,
      %c1_50 = arith.constant 1 : index
      %c0_51 = arith.constant 0 : index
      %c0_52 = arith.constant 0 : index
      %97 = vector.load %arg9[%c1_50, %c0_51, %c0_52] : memref<4x8x8xf32, #tpu.memory_space<vmem>>, vector<1x8x8xf32>
      %98 = vector.shape_cast %97 : vector<1x8x8xf32> to vector<8x8xf32>
      %99 = vector.broadcast %84 : vector<8x1xf32> to vector<8x8xf32>
      %100 = arith.mulf %99, %98 : vector<8x8xf32>
      %101 = arith.truncf %87 : vector<8x8xf32> to vector<8x8xbf16>
      %102 = vector.extract_strided_slice %17 {offsets = [0, 8], sizes = [8, 8], strides = [1, 1]} : vector<8x32xbf16> to vector<8x8xbf16>
      %cst_53 = arith.constant dense<0.000000e+00> : vector<8x8xf32>
      %103 = tpu.matmul %101, %102, %cst_53 {dimension_numbers = #tpu.dot_dimension_numbers<[1], [0], [0], [1], [0, 0, 1, 1], [], []>} : vector<8x8xbf16>, vector<8x8xbf16>, vector<8x8xf32> -> vector<8x8xf32>
      %104 = arith.addf %100, %103 : vector<8x8xf32>
      %c1_54 = arith.constant 1 : index
      %c0_55 = arith.constant 0 : index
      %c0_56 = arith.constant 0 : index
      %105 = vector.load %arg9[%c1_54, %c0_55, %c0_56] : memref<4x8x8xf32, #tpu.memory_space<vmem>>, vector<1x8x8xf32>
      %106 = vector.shape_cast %105 : vector<1x8x8xf32> to vector<8x8xf32>
      %107 = vector.shape_cast %104 : vector<8x8xf32> to vector<1x8x8xf32>
      tpu.vector_store %arg9[%c1_54, %c0_55, %c0_56], %107 {strides = array<i32>} : memref<4x8x8xf32, #tpu.memory_space<vmem>>, vector<1x8x8xf32>,
      %c1_57 = arith.constant 1 : index
      %c0_58 = arith.constant 0 : index
      %c0_59 = arith.constant 0 : index
      %108 = vector.load %arg7[%c1_57, %c0_58, %c0_59] : memref<4x8x1xf32, #tpu.memory_space<vmem>>, vector<1x8x1xf32>
      %109 = vector.shape_cast %108 : vector<1x8x1xf32> to vector<8x1xf32>
      %110 = vector.shape_cast %82 : vector<8x1xf32> to vector<1x8x1xf32>
      tpu.vector_store %arg7[%c1_57, %c0_58, %c0_59], %110 {strides = array<i32>} : memref<4x8x1xf32, #tpu.memory_space<vmem>>, vector<1x8x1xf32>,
      %111 = vector.extract_strided_slice %13 {offsets = [0, 8], sizes = [8, 4], strides = [1, 1]} : vector<8x32xbf16> to vector<8x4xbf16>
      %112 = vector.extract_strided_slice %13 {offsets = [0, 24], sizes = [8, 4], strides = [1, 1]} : vector<8x32xbf16> to vector<8x4xbf16>
      %113 = vector.extract_strided_slice %15 {offsets = [0, 8], sizes = [8, 4], strides = [1, 1]} : vector<8x32xbf16> to vector<8x4xbf16>
      %114 = vector.extract_strided_slice %15 {offsets = [0, 24], sizes = [8, 4], strides = [1, 1]} : vector<8x32xbf16> to vector<8x4xbf16>
      %cst_60 = arith.constant dense<0.000000e+00> : vector<8x8xf32>
      %115 = tpu.matmul %111, %113, %cst_60 {dimension_numbers = #tpu.dot_dimension_numbers<[1], [1], [0], [0], [0, 0, 1, 0], [], []>} : vector<8x4xbf16>, vector<8x4xbf16>, vector<8x8xf32> -> vector<8x8xf32>
      %cst_61 = arith.constant dense<0.000000e+00> : vector<8x8xf32>
      %116 = tpu.matmul %112, %114, %cst_61 {dimension_numbers = #tpu.dot_dimension_numbers<[1], [1], [0], [0], [0, 0, 1, 0], [], []>} : vector<8x4xbf16>, vector<8x4xbf16>, vector<8x8xf32> -> vector<8x8xf32>
      %117 = arith.addf %115, %116 : vector<8x8xf32>
      %cst_62 = arith.constant -1.000000e+30 : f32
      %118 = vector.broadcast %cst_62 : f32 to vector<8x8xf32>
      %119 = arith.select %26, %118, %117 : vector<8x8xi1>, vector<8x8xf32>
      %c2 = arith.constant 2 : index
      %c0_63 = arith.constant 0 : index
      %c0_64 = arith.constant 0 : index
      %120 = vector.load %arg7[%c2, %c0_63, %c0_64] : memref<4x8x1xf32, #tpu.memory_space<vmem>>, vector<1x8x1xf32>
      %121 = vector.shape_cast %120 : vector<1x8x1xf32> to vector<8x1xf32>
      %cst_65 = arith.constant dense<0xFF800000> : vector<8xf32>
      %122 = vector.multi_reduction <maximumf>, %119, %cst_65 [1] : vector<8x8xf32> to vector<8xf32>
      %123 = vector.shape_cast %122 : vector<8xf32> to vector<8x1xf32>
      %124 = arith.maximumf %121, %123 : vector<8x1xf32>
      %125 = arith.subf %121, %124 : vector<8x1xf32>
      %126 = math.exp %125 : vector<8x1xf32>
      %127 = vector.broadcast %124 : vector<8x1xf32> to vector<8x8xf32>
      %128 = arith.subf %119, %127 : vector<8x8xf32>
      %129 = math.exp %128 : vector<8x8xf32>
      %c2_66 = arith.constant 2 : index
      %c0_67 = arith.constant 0 : index
      %c0_68 = arith.constant 0 : index
      %130 = vector.load %arg8[%c2_66, %c0_67, %c0_68] : memref<4x8x1xf32, #tpu.memory_space<vmem>>, vector<1x8x1xf32>
      %131 = vector.shape_cast %130 : vector<1x8x1xf32> to vector<8x1xf32>
      %132 = arith.mulf %126, %131 : vector<8x1xf32>
      %cst_69 = arith.constant dense<0.000000e+00> : vector<8xf32>
      %133 = vector.multi_reduction <add>, %129, %cst_69 [1] : vector<8x8xf32> to vector<8xf32>
      %134 = vector.shape_cast %133 : vector<8xf32> to vector<8x1xf32>
      %135 = arith.addf %132, %134 : vector<8x1xf32>
      %c2_70 = arith.constant 2 : index
      %c0_71 = arith.constant 0 : index
      %c0_72 = arith.constant 0 : index
      %136 = vector.load %arg8[%c2_70, %c0_71, %c0_72] : memref<4x8x1xf32, #tpu.memory_space<vmem>>, vector<1x8x1xf32>
      %137 = vector.shape_cast %136 : vector<1x8x1xf32> to vector<8x1xf32>
      %138 = vector.shape_cast %135 : vector<8x1xf32> to vector<1x8x1xf32>
      tpu.vector_store %arg8[%c2_70, %c0_71, %c0_72], %138 {strides = array<i32>} : memref<4x8x1xf32, #tpu.memory_space<vmem>>, vector<1x8x1xf32>,
      %c2_73 = arith.constant 2 : index
      %c0_74 = arith.constant 0 : index
      %c0_75 = arith.constant 0 : index
      %139 = vector.load %arg9[%c2_73, %c0_74, %c0_75] : memref<4x8x8xf32, #tpu.memory_space<vmem>>, vector<1x8x8xf32>
      %140 = vector.shape_cast %139 : vector<1x8x8xf32> to vector<8x8xf32>
      %141 = vector.broadcast %126 : vector<8x1xf32> to vector<8x8xf32>
      %142 = arith.mulf %141, %140 : vector<8x8xf32>
      %143 = arith.truncf %129 : vector<8x8xf32> to vector<8x8xbf16>
      %144 = vector.extract_strided_slice %17 {offsets = [0, 16], sizes = [8, 8], strides = [1, 1]} : vector<8x32xbf16> to vector<8x8xbf16>
      %cst_76 = arith.constant dense<0.000000e+00> : vector<8x8xf32>
      %145 = tpu.matmul %143, %144, %cst_76 {dimension_numbers = #tpu.dot_dimension_numbers<[1], [0], [0], [1], [0, 0, 1, 1], [], []>} : vector<8x8xbf16>, vector<8x8xbf16>, vector<8x8xf32> -> vector<8x8xf32>
      %146 = arith.addf %142, %145 : vector<8x8xf32>
      %c2_77 = arith.constant 2 : index
      %c0_78 = arith.constant 0 : index
      %c0_79 = arith.constant 0 : index
      %147 = vector.load %arg9[%c2_77, %c0_78, %c0_79] : memref<4x8x8xf32, #tpu.memory_space<vmem>>, vector<1x8x8xf32>
      %148 = vector.shape_cast %147 : vector<1x8x8xf32> to vector<8x8xf32>
      %149 = vector.shape_cast %146 : vector<8x8xf32> to vector<1x8x8xf32>
      tpu.vector_store %arg9[%c2_77, %c0_78, %c0_79], %149 {strides = array<i32>} : memref<4x8x8xf32, #tpu.memory_space<vmem>>, vector<1x8x8xf32>,
      %c2_80 = arith.constant 2 : index
      %c0_81 = arith.constant 0 : index
      %c0_82 = arith.constant 0 : index
      %150 = vector.load %arg7[%c2_80, %c0_81, %c0_82] : memref<4x8x1xf32, #tpu.memory_space<vmem>>, vector<1x8x1xf32>
      %151 = vector.shape_cast %150 : vector<1x8x1xf32> to vector<8x1xf32>
      %152 = vector.shape_cast %124 : vector<8x1xf32> to vector<1x8x1xf32>
      tpu.vector_store %arg7[%c2_80, %c0_81, %c0_82], %152 {strides = array<i32>} : memref<4x8x1xf32, #tpu.memory_space<vmem>>, vector<1x8x1xf32>,
      %153 = vector.extract_strided_slice %13 {offsets = [0, 12], sizes = [8, 4], strides = [1, 1]} : vector<8x32xbf16> to vector<8x4xbf16>
      %154 = vector.extract_strided_slice %13 {offsets = [0, 28], sizes = [8, 4], strides = [1, 1]} : vector<8x32xbf16> to vector<8x4xbf16>
      %155 = vector.extract_strided_slice %15 {offsets = [0, 12], sizes = [8, 4], strides = [1, 1]} : vector<8x32xbf16> to vector<8x4xbf16>
      %156 = vector.extract_strided_slice %15 {offsets = [0, 28], sizes = [8, 4], strides = [1, 1]} : vector<8x32xbf16> to vector<8x4xbf16>
      %cst_83 = arith.constant dense<0.000000e+00> : vector<8x8xf32>
      %157 = tpu.matmul %153, %155, %cst_83 {dimension_numbers = #tpu.dot_dimension_numbers<[1], [1], [0], [0], [0, 0, 1, 0], [], []>} : vector<8x4xbf16>, vector<8x4xbf16>, vector<8x8xf32> -> vector<8x8xf32>
      %cst_84 = arith.constant dense<0.000000e+00> : vector<8x8xf32>
      %158 = tpu.matmul %154, %156, %cst_84 {dimension_numbers = #tpu.dot_dimension_numbers<[1], [1], [0], [0], [0, 0, 1, 0], [], []>} : vector<8x4xbf16>, vector<8x4xbf16>, vector<8x8xf32> -> vector<8x8xf32>
      %159 = arith.addf %157, %158 : vector<8x8xf32>
      %cst_85 = arith.constant -1.000000e+30 : f32
      %160 = vector.broadcast %cst_85 : f32 to vector<8x8xf32>
      %161 = arith.select %26, %160, %159 : vector<8x8xi1>, vector<8x8xf32>
      %c3 = arith.constant 3 : index
      %c0_86 = arith.constant 0 : index
      %c0_87 = arith.constant 0 : index
      %162 = vector.load %arg7[%c3, %c0_86, %c0_87] : memref<4x8x1xf32, #tpu.memory_space<vmem>>, vector<1x8x1xf32>
      %163 = vector.shape_cast %162 : vector<1x8x1xf32> to vector<8x1xf32>
      %cst_88 = arith.constant dense<0xFF800000> : vector<8xf32>
      %164 = vector.multi_reduction <maximumf>, %161, %cst_88 [1] : vector<8x8xf32> to vector<8xf32>
      %165 = vector.shape_cast %164 : vector<8xf32> to vector<8x1xf32>
      %166 = arith.maximumf %163, %165 : vector<8x1xf32>
      %167 = arith.subf %163, %166 : vector<8x1xf32>
      %168 = math.exp %167 : vector<8x1xf32>
      %169 = vector.broadcast %166 : vector<8x1xf32> to vector<8x8xf32>
      %170 = arith.subf %161, %169 : vector<8x8xf32>
      %171 = math.exp %170 : vector<8x8xf32>
      %c3_89 = arith.constant 3 : index
      %c0_90 = arith.constant 0 : index
      %c0_91 = arith.constant 0 : index
      %172 = vector.load %arg8[%c3_89, %c0_90, %c0_91] : memref<4x8x1xf32, #tpu.memory_space<vmem>>, vector<1x8x1xf32>
      %173 = vector.shape_cast %172 : vector<1x8x1xf32> to vector<8x1xf32>
      %174 = arith.mulf %168, %173 : vector<8x1xf32>
      %cst_92 = arith.constant dense<0.000000e+00> : vector<8xf32>
      %175 = vector.multi_reduction <add>, %171, %cst_92 [1] : vector<8x8xf32> to vector<8xf32>
      %176 = vector.shape_cast %175 : vector<8xf32> to vector<8x1xf32>
      %177 = arith.addf %174, %176 : vector<8x1xf32>
      %c3_93 = arith.constant 3 : index
      %c0_94 = arith.constant 0 : index
      %c0_95 = arith.constant 0 : index
      %178 = vector.load %arg8[%c3_93, %c0_94, %c0_95] : memref<4x8x1xf32, #tpu.memory_space<vmem>>, vector<1x8x1xf32>
      %179 = vector.shape_cast %178 : vector<1x8x1xf32> to vector<8x1xf32>
      %180 = vector.shape_cast %177 : vector<8x1xf32> to vector<1x8x1xf32>
      tpu.vector_store %arg8[%c3_93, %c0_94, %c0_95], %180 {strides = array<i32>} : memref<4x8x1xf32, #tpu.memory_space<vmem>>, vector<1x8x1xf32>,
      %c3_96 = arith.constant 3 : index
      %c0_97 = arith.constant 0 : index
      %c0_98 = arith.constant 0 : index
      %181 = vector.load %arg9[%c3_96, %c0_97, %c0_98] : memref<4x8x8xf32, #tpu.memory_space<vmem>>, vector<1x8x8xf32>
      %182 = vector.shape_cast %181 : vector<1x8x8xf32> to vector<8x8xf32>
      %183 = vector.broadcast %168 : vector<8x1xf32> to vector<8x8xf32>
      %184 = arith.mulf %183, %182 : vector<8x8xf32>
      %185 = arith.truncf %171 : vector<8x8xf32> to vector<8x8xbf16>
      %186 = vector.extract_strided_slice %17 {offsets = [0, 24], sizes = [8, 8], strides = [1, 1]} : vector<8x32xbf16> to vector<8x8xbf16>
      %cst_99 = arith.constant dense<0.000000e+00> : vector<8x8xf32>
      %187 = tpu.matmul %185, %186, %cst_99 {dimension_numbers = #tpu.dot_dimension_numbers<[1], [0], [0], [1], [0, 0, 1, 1], [], []>} : vector<8x8xbf16>, vector<8x8xbf16>, vector<8x8xf32> -> vector<8x8xf32>
      %188 = arith.addf %184, %187 : vector<8x8xf32>
      %c3_100 = arith.constant 3 : index
      %c0_101 = arith.constant 0 : index
      %c0_102 = arith.constant 0 : index
      %189 = vector.load %arg9[%c3_100, %c0_101, %c0_102] : memref<4x8x8xf32, #tpu.memory_space<vmem>>, vector<1x8x8xf32>
      %190 = vector.shape_cast %189 : vector<1x8x8xf32> to vector<8x8xf32>
      %191 = vector.shape_cast %188 : vector<8x8xf32> to vector<1x8x8xf32>
      tpu.vector_store %arg9[%c3_100, %c0_101, %c0_102], %191 {strides = array<i32>} : memref<4x8x8xf32, #tpu.memory_space<vmem>>, vector<1x8x8xf32>,
      %c3_103 = arith.constant 3 : index
      %c0_104 = arith.constant 0 : index
      %c0_105 = arith.constant 0 : index
      %192 = vector.load %arg7[%c3_103, %c0_104, %c0_105] : memref<4x8x1xf32, #tpu.memory_space<vmem>>, vector<1x8x1xf32>
      %193 = vector.shape_cast %192 : vector<1x8x1xf32> to vector<8x1xf32>
      %194 = vector.shape_cast %166 : vector<8x1xf32> to vector<1x8x1xf32>
      tpu.vector_store %arg7[%c3_103, %c0_104, %c0_105], %194 {strides = array<i32>} : memref<4x8x1xf32, #tpu.memory_space<vmem>>, vector<1x8x1xf32>,
    } else {
    }
    %c0_i32_3 = arith.constant 0 : i32
    %9 = arith.cmpi eq, %arg2, %c0_i32_3 : i32
    %10 = arith.extui %9 : i1 to i32
    %c0_i32_4 = arith.constant 0 : i32
    %11 = arith.cmpi ne, %10, %c0_i32_4 : i32
    scf.if %11 {
      %c0 = arith.constant 0 : index
      %c0_5 = arith.constant 0 : index
      %c0_6 = arith.constant 0 : index
      %12 = vector.load %arg9[%c0, %c0_5, %c0_6] : memref<4x8x8xf32, #tpu.memory_space<vmem>>, vector<1x8x8xf32>
      %13 = vector.shape_cast %12 : vector<1x8x8xf32> to vector<8x8xf32>
      %c0_7 = arith.constant 0 : index
      %c0_8 = arith.constant 0 : index
      %c0_9 = arith.constant 0 : index
      %14 = vector.load %arg8[%c0_7, %c0_8, %c0_9] : memref<4x8x1xf32, #tpu.memory_space<vmem>>, vector<1x8x1xf32>
      %15 = vector.shape_cast %14 : vector<1x8x1xf32> to vector<8x1xf32>
      %16 = vector.broadcast %15 : vector<8x1xf32> to vector<8x8xf32>
      %17 = arith.divf %13, %16 : vector<8x8xf32>
      %18 = arith.truncf %17 : vector<8x8xf32> to vector<8x8xbf16>
      %c0_10 = arith.constant 0 : index
      %c0_11 = arith.constant 0 : index
      %c0_12 = arith.constant 0 : index
      %19 = vector.load %arg6[%c0_10, %c0_11, %c0_12] : memref<1x8x32xbf16, #tpu.memory_space<vmem>>, vector<1x8x8xbf16>
      %20 = vector.shape_cast %19 : vector<1x8x8xbf16> to vector<8x8xbf16>
      %21 = vector.shape_cast %18 : vector<8x8xbf16> to vector<1x8x8xbf16>
      tpu.vector_store %arg6[%c0_10, %c0_11, %c0_12], %21 {strides = array<i32>} : memref<1x8x32xbf16, #tpu.memory_space<vmem>>, vector<1x8x8xbf16>,
      %c1 = arith.constant 1 : index
      %c0_13 = arith.constant 0 : index
      %c0_14 = arith.constant 0 : index
      %22 = vector.load %arg9[%c1, %c0_13, %c0_14] : memref<4x8x8xf32, #tpu.memory_space<vmem>>, vector<1x8x8xf32>
      %23 = vector.shape_cast %22 : vector<1x8x8xf32> to vector<8x8xf32>
      %c1_15 = arith.constant 1 : index
      %c0_16 = arith.constant 0 : index
      %c0_17 = arith.constant 0 : index
      %24 = vector.load %arg8[%c1_15, %c0_16, %c0_17] : memref<4x8x1xf32, #tpu.memory_space<vmem>>, vector<1x8x1xf32>
      %25 = vector.shape_cast %24 : vector<1x8x1xf32> to vector<8x1xf32>
      %26 = vector.broadcast %25 : vector<8x1xf32> to vector<8x8xf32>
      %27 = arith.divf %23, %26 : vector<8x8xf32>
      %28 = arith.truncf %27 : vector<8x8xf32> to vector<8x8xbf16>
      %c0_18 = arith.constant 0 : index
      %c0_19 = arith.constant 0 : index
      %c8 = arith.constant 8 : index
      %29 = vector.load %arg6[%c0_18, %c0_19, %c8] : memref<1x8x32xbf16, #tpu.memory_space<vmem>>, vector<1x8x8xbf16>
      %30 = vector.shape_cast %29 : vector<1x8x8xbf16> to vector<8x8xbf16>
      %31 = vector.shape_cast %28 : vector<8x8xbf16> to vector<1x8x8xbf16>
      tpu.vector_store %arg6[%c0_18, %c0_19, %c8], %31 {strides = array<i32>} : memref<1x8x32xbf16, #tpu.memory_space<vmem>>, vector<1x8x8xbf16>,
      %c2 = arith.constant 2 : index
      %c0_20 = arith.constant 0 : index
      %c0_21 = arith.constant 0 : index
      %32 = vector.load %arg9[%c2, %c0_20, %c0_21] : memref<4x8x8xf32, #tpu.memory_space<vmem>>, vector<1x8x8xf32>
      %33 = vector.shape_cast %32 : vector<1x8x8xf32> to vector<8x8xf32>
      %c2_22 = arith.constant 2 : index
      %c0_23 = arith.constant 0 : index
      %c0_24 = arith.constant 0 : index
      %34 = vector.load %arg8[%c2_22, %c0_23, %c0_24] : memref<4x8x1xf32, #tpu.memory_space<vmem>>, vector<1x8x1xf32>
      %35 = vector.shape_cast %34 : vector<1x8x1xf32> to vector<8x1xf32>
      %36 = vector.broadcast %35 : vector<8x1xf32> to vector<8x8xf32>
      %37 = arith.divf %33, %36 : vector<8x8xf32>
      %38 = arith.truncf %37 : vector<8x8xf32> to vector<8x8xbf16>
      %c0_25 = arith.constant 0 : index
      %c0_26 = arith.constant 0 : index
      %c16 = arith.constant 16 : index
      %39 = vector.load %arg6[%c0_25, %c0_26, %c16] : memref<1x8x32xbf16, #tpu.memory_space<vmem>>, vector<1x8x8xbf16>
      %40 = vector.shape_cast %39 : vector<1x8x8xbf16> to vector<8x8xbf16>
      %41 = vector.shape_cast %38 : vector<8x8xbf16> to vector<1x8x8xbf16>
      tpu.vector_store %arg6[%c0_25, %c0_26, %c16], %41 {strides = array<i32>} : memref<1x8x32xbf16, #tpu.memory_space<vmem>>, vector<1x8x8xbf16>,
      %c3 = arith.constant 3 : index
      %c0_27 = arith.constant 0 : index
      %c0_28 = arith.constant 0 : index
      %42 = vector.load %arg9[%c3, %c0_27, %c0_28] : memref<4x8x8xf32, #tpu.memory_space<vmem>>, vector<1x8x8xf32>
      %43 = vector.shape_cast %42 : vector<1x8x8xf32> to vector<8x8xf32>
      %c3_29 = arith.constant 3 : index
      %c0_30 = arith.constant 0 : index
      %c0_31 = arith.constant 0 : index
      %44 = vector.load %arg8[%c3_29, %c0_30, %c0_31] : memref<4x8x1xf32, #tpu.memory_space<vmem>>, vector<1x8x1xf32>
      %45 = vector.shape_cast %44 : vector<1x8x1xf32> to vector<8x1xf32>
      %46 = vector.broadcast %45 : vector<8x1xf32> to vector<8x8xf32>
      %47 = arith.divf %43, %46 : vector<8x8xf32>
      %48 = arith.truncf %47 : vector<8x8xf32> to vector<8x8xbf16>
      %c0_32 = arith.constant 0 : index
      %c0_33 = arith.constant 0 : index
      %c24 = arith.constant 24 : index
      %49 = vector.load %arg6[%c0_32, %c0_33, %c24] : memref<1x8x32xbf16, #tpu.memory_space<vmem>>, vector<1x8x8xbf16>
      %50 = vector.shape_cast %49 : vector<1x8x8xbf16> to vector<8x8xbf16>
      %51 = vector.shape_cast %48 : vector<8x8xbf16> to vector<1x8x8xbf16>
      tpu.vector_store %arg6[%c0_32, %c0_33, %c24], %51 {strides = array<i32>} : memref<1x8x32xbf16, #tpu.memory_space<vmem>>, vector<1x8x8xbf16>,
    } else {
    }
    return
  }
  func.func @transform_0(%arg0: i32, %arg1: i32, %arg2: i32) -> (i32, i32, i32) {
    %c0_i32 = arith.constant 0 : i32
    %c0_i32_0 = arith.constant 0 : i32
    return %arg0, %arg1, %c0_i32 : i32, i32, i32
  }
  func.func @transform_1(%arg0: i32, %arg1: i32, %arg2: i32) -> (i32, i32, i32) {
    %0 = arith.minsi %arg2, %arg1 : i32
    %c0_i32 = arith.constant 0 : i32
    %c0_i32_0 = arith.constant 0 : i32
    return %arg0, %0, %c0_i32 : i32, i32, i32
  }
  func.func @transform_2(%arg0: i32, %arg1: i32, %arg2: i32) -> (i32, i32, i32) {
    %0 = arith.minsi %arg2, %arg1 : i32
    %c0_i32 = arith.constant 0 : i32
    %c0_i32_0 = arith.constant 0 : i32
    return %arg0, %0, %c0_i32 : i32, i32, i32
  }
  func.func @transform_3(%arg0: i32, %arg1: i32, %arg2: i32) -> (i32, i32, i32) {
    %c0_i32 = arith.constant 0 : i32
    %c0_i32_0 = arith.constant 0 : i32
    return %arg0, %arg1, %c0_i32 : i32, i32, i32
  }
}

</mosaic_0001>

<bundles_post_ra>
// kernel: tpu_custom_call.1
= control target key start
LH: loop header
LB: loop body
LE: loop exit
PB: predicated region body
PF: predicated region fallthrough
CT: control target
= control target key end

     0   :  { %6 = vsyncpa [#allocation3], 0  ;;  %s286_s0 = inlined_call_operand.hbm [shape: f32[8,128], index: 0, kind: input, shape index: {}]   ;;  %s287_s1 = inlined_call_operand.hbm [shape: f32[8,128], index: 1, kind: output, shape index: {}]  }
   0x1   :  { %7 = vsyncpa [#allocation4], 0  ;;  %s269_s6 = smov 0  }
   0x2 LB: > { %s148_s7 = sadd.s32 4294967295, %s255_s6   ;;  %p149_p0 = scmp.ge.s32.totalorder %s255_s6, 1  ;;  %s255_s6 = sphi %s269_s6, %s13_s6  }
   0x3   : > { %p60_p1 = scmp.lt.s32.totalorder %s255_s6, 3  ;;  %s72_s10 = sshll.u32 %s286_s0, 4  ;;  %s73_s10 = int_to_ptr.hbm [resolvable:$true] %s72_s10 }
   0x4   : > { %p169_p3 = scmp.eq.s32.totalorder %s148_s7, 0  ;;  %s257_s11 = smov [#allocation2]  }
   0x5   : > { %p61_p2 = pnand %p149_p0, %p60_p1  ;;  %s74_s12 = sshll.u32 %s257_s11, 4  ;;  %s75_s12 = int_to_ptr.vmem [resolvable:$true] %s74_s12 }
   0x7   : > { %p165_p4 = pneg %p61_p2  ;;  %87 = sbr.rel (%p61_p2) target bundleno = 19 (0x13), region = 24 }
   0x9   : > { %p166_p5 = pnand %p169_p3, %p165_p4 }
   0xb   : > { %168 = dma.hbm_to_vmem [thread:$0]  (!%p166_p5), %s73_s10, 128, %s75_s12, [#allocation3]  }
   0xc   : > { %246 = dma.done.wait (%p169_p3), [#allocation3], 128  }
   0xd   : > { %248 = vsyncadd (%p169_p3), [#allocation3], 4294967168  ;;  %s258_s13 = smov [#allocation5]   ;;  %s108_s17 = sshll.u32 %s287_s1, 4  ;;  %v98_v0 = vld [vmem:[#allocation2] sm:$0xff]  ;;  %s109_s17 = int_to_ptr.hbm [resolvable:$true] %s108_s17 }
   0xe   : > { %s106_s14 = sshll.u32 %s258_s13, 4  ;;  %p171_p6 = scmp.eq.s32.totalorder %s148_s7, 1  ;;  %99 = vst [vmem:[#allocation5] sm:$0xff] %v98_v0  ;;  %s107_s14 = int_to_ptr.vmem [resolvable:$true] %s106_s14 }
  0x10   : > { %162 = dma.vmem_to_hbm [thread:$0]  (%p171_p6), %s107_s14, 128, %s109_s17, [#allocation4]  }
  0x11   : > { %250 = dma.done.wait (%p171_p6), [#allocation4], 128  }
  0x12   : > { %252 = vsyncadd (%p171_p6), [#allocation4], 4294967168 }
  0x13 PF: > { %s13_s6 = sadd.s32 1, %s255_s6  }
  0x14   : > { %p10_p7 = scmp.ge.s32.totalorder %s13_s6, 4  }
  0x16   :  { %12 = sbr.rel (!%p10_p7) target bundleno = 2 (0x2), region = 53 }
  0x1b   :  { %122 = vsyncpa [#allocation3], 1 }
  0x1c   :  { %124 = vsyncpa [#allocation3 + $0x1], 1 }
  0x1d   :  { %125 = vsyncpa [#allocation4], 1 }
  0x1e   :  { %127 = vsyncpa [#allocation4 + $0x1], 1 }

// kernel: neg.3
= control target key start
LH: loop header
LB: loop body
LE: loop exit
PB: predicated region body
PF: predicated region fallthrough
CT: control target
= control target key end

     0   :  { %s24_s0 = inlined_call_operand.vmem [shape: f32[8,16], index: 0, kind: input, shape index: {}]   ;;  %s25_s1 = inlined_call_operand.vmem [shape: f32[8,16], index: 1, kind: output, shape index: {}]  }
   0x1   :  { %v2_v0 = vld [vmem:[%s24_s0] sm:$0xff] }
   0x2   :  { %v5_v1 = vxor.u32 2147483648, %v2_v0 }
   0x4   :  { %7 = vst [vmem:[%s25_s1] sm:$0xff] %v5_v1 }

// kernel: transformer_layer.5
= control target key start
LH: loop header
LB: loop body
LE: loop exit
PB: predicated region body
PF: predicated region fallthrough
CT: control target
= control target key end

     0   :  { %15 = vsyncpa [#allocation6], 0  ;;  %s1322_s0 = inlined_call_operand.vmem [shape: f32[2,8,32], index: 0, kind: input, shape index: {}]   ;;  %s1323_s1 = inlined_call_operand.vmem [shape: bf16[2,8,32], index: 1, kind: input, shape index: {}]   ;;  %s1324_s2 = inlined_call_operand.vmem [shape: bf16[32,32], index: 2, kind: input, shape index: {}]   ;;  %s1325_s3 = inlined_call_operand.vmem [shape: f32[1,32], index: 3, kind: input, shape index: {}]   ;;  %s1326_s4 = inlined_call_operand.vmem [shape: f32[1,32], index: 4, kind: input, shape index: {}]   ;;  %s1327_s5 = inlined_call_operand.vmem [shape: f32[1,32], index: 5, kind: input, shape index: {}]   ;;  %s1328_s6 = inlined_call_operand.vmem [shape: bf16[32,128], index: 6, kind: input, shape index: {}]   ;;  %s1329_s7 = inlined_call_operand.vmem [shape: f32[1,128], index: 7, kind: input, shape index: {}]   ;;  %s1330_s8 = inlined_call_operand.vmem [shape: bf16[128,32], index: 8, kind: input, shape index: {}]   ;;  %s1331_s9 = inlined_call_operand.vmem [shape: f32[1,32], index: 9, kind: input, shape index: {}]   ;;  %s1332_s10 = inlined_call_operand.hbm [shape: f32[2,8,32], index: 10, kind: output, shape index: {}]  }
   0x1   :  { %17 = vsyncpa [#allocation6 + $0x1], 0  ;;  %s1163_s13 = smov 0   ;;  %s1165_s14 = smov 0  }
   0x2   :  { %s1167_s15 = smov 0   ;;  %s1169_s16 = smov 0  }
   0x3   :  { %s1171_s17 = smov 0   ;;  %s1173_s18 = smov 0  }
   0x4 LB: > { %1335 = sst [smem:[#allocation8_spill]] %s1100_s17  ;;  %s880_s19 = sadd.s32 4294967295, %s1104_s18   ;;  %s1104_s18 = sphi %s1173_s18, %s23_s18   ;;  %s1100_s17 = sphi %s1171_s17, %s1342_s17   ;;  %s1096_s16 = sphi %s1169_s16, %s1341_s16   ;;  %s1092_s15 = sphi %s1167_s15, %s1345_s15   ;;  %s1088_s14 = sphi %s1165_s14, %s1344_s14   ;;  %s1084_s13 = sphi %s1163_s13, %s1343_s13  }
   0x5   : > { %s881_s20 = sadd.s32 4294967294, %s1104_s18   ;;  %s42_s21 = sadd.s32 1, %s1100_s17 }
   0x6   : > { %s290_s22 = sadd.s32 1, %s1092_s15  ;;  %p44_p0 = scmp.ge.s32.totalorder %s42_s21, 2 }
   0x7   : > { %p300_p1 = scmp.ne.s32.totalorder %s1092_s15, %s1088_s14  ;;  %p301_p2 = scmp.eq.s32.totalorder %s880_s19, 1 }
   0x8   : > { %p306_p3 = scmp.ne.s32.totalorder %s1088_s14, %s1084_s13  ;;  %s1347_s21 = smov (%p44_p0, %s42_s21), 0 }
   0x9   : > { %1336 = sst [smem:[#allocation9_spill]] %s1347_s21  ;;  %p1203_p4 = por %p301_p2, %p300_p1 }
   0xa   : > { %p307_p5 = scmp.eq.s32.totalorder %s881_s20, 1  ;;  %s285_s24 = ssub.s32 %s1100_s17, %s1347_s21 }
   0xb   : > { %p887_p6 = scmp.ge.s32.totalorder %s1104_s18, 1  ;;  %p288_p7 = scmp.eq.s32.totalorder %s285_s24, 0 }
   0xc   : > { %p1210_p8 = por %p307_p5, %p306_p3  ;;  %p382_p9 = scmp.lt.s32.totalorder %s1104_s18, 3 }
   0xd   : > { %s1216_s26 = scalar_select %p288_p7, %s1092_s15, %s290_s22  }
   0xe   : > { %p383_p10 = pnand %p887_p6, %p382_p9 }
   0xf   : > { %1339 = sst [smem:[#allocation10_spill]] %s1216_s26  ;;  %p441_p11 = scmp.lt.s32.totalorder (!%p383_p10), %s1096_s16, 1 }
  0x10   : > { %386 = sbr.rel (%p383_p10) target bundleno = 767 (0x2ff), region = 60  ;;  %s438_s17 = sand.u32 (!%p383_p10), 1, %s1088_s14  }
  0x11   : > { %s943_s26 = sshll.u32 (!%p383_p10), %s1096_s16, 3 }
  0x15   : > { %v947_v0 = vld [vmem:[%s1324_s2 + $0x8] sm:$0xff]  ;;  %v946_v1 = vld [vmem:[%s1324_s2] sm:$0xff]  ;;  %s442_s11 = scalar_select %p441_p11, %s1096_s16, 1  ;;  %vm495_vm0 = vcmask 261120   ;;  %v1106_v10 = vmov 32.0   ;;  %vm554_vm5 = vcmask 257024  }
  0x16   : > { %505 = vmatpush.bf16.msra.mxu0 %v947_v0  ;;  %v1015_v3 = vld [vmem:[%s1325_s3] ss:$0 sm:$0xff]  ;;  %1020 = vrcp.f32 %v1106_v10  ;;  %v949_v22 = vld [vmem:[%s1328_s6 + $0x8] sm:$0xff]  ;;  %v957_v41 = vld [vmem:[%s1330_s8 + $0x38] sm:$0xff]  ;;  %s733_s16 = scalar_lea.sflag [#allocation6], %s438_s17 }
  0x17   : > { %s890_s12 = sshll.u32 %s442_s11, 2  ;;  %s889_s24 = sshll.u32 %s442_s11, 3  ;;  %588 = vmatpush.bf16.msra.mxu1 %v949_v22  ;;  %v948_v24 = vld [vmem:[%s1328_s6] sm:$0xff]  ;;  %705 = vmatpush.bf16.msra.mxu2 %v957_v41  ;;  %v956_v42 = vld [vmem:[%s1330_s8 + $0x30] sm:$0xff]  ;;  %v955_v44 = vld [vmem:[%s1330_s8 + $0x28] sm:$0xff] }
  0x18   : > { %s454_s22 = scalar_lea.vmem %s1323_s1, %s890_s12  ;;  %s447_s21 = scalar_lea.vmem %s1322_s0, %s889_s24  ;;  %v1016_v33 = vld [vmem:[%s1326_s4] ss:$0 sm:$0xff]  ;;  %v953_v50 = vld [vmem:[%s1330_s8 + $0x18] sm:$0xff]  ;;  %v952_v54 = vld [vmem:[%s1330_s8 + $0x10] sm:$0xff] }
  0x19   : > { %v474_v2 = vld [vmem:[%s454_s22] sm:$0xf]  ;;  %v951_v59 = vld [vmem:[%s1330_s8 + $0x8] sm:$0xff]  ;;  %s744_s11 = scalar_lea.hbm %s1332_s10, %s943_s26 }
  0x1a   : > { %506 = vmatpush.bf16.msra.mxu0 %v946_v1  ;;  %v473_v4 = vld [vmem:[%s447_s21] sm:$0xff]  ;;  %s888_s21 = sshll.u32 %s438_s17, 3  ;;  %s748_s24 = sshll.u32 %s744_s11, 4  ;;  %s749_s24 = int_to_ptr.hbm [resolvable:$true] %s748_s24 }
  0x1b   : > { %589 = vmatpush.bf16.msra.mxu1 %v948_v24  ;;  %v1017_v35 = vld [vmem:[%s1327_s5] ss:$0 sm:$0xff]  ;;  %706 = vmatpush.bf16.msra.mxu2 %v956_v42  ;;  %s440_s20 = scalar_lea.vmem [#allocation5], %s888_s21  ;;  %s1040_s27 = sshra.s32 %s749_s24, 4  ;;  %s1041_s27 = int_to_ptr.hbm [resolvable:$true] %s1040_s27 }
  0x1c   : > { %v1021_v11 = vpop.eup %1020  ;;  %v1018_v43 = vld [vmem:[%s1329_s7] ss:$0 sm:$0xff]  ;;  %s746_s22 = sshll.u32 %s440_s20, 4  ;;  %s1042_s28 = scalar_lea.hbm %s1041_s27, 8  ;;  %s747_s22 = int_to_ptr.vmem [resolvable:$true] %s746_s22 }
  0x1d   : > { %899 = vmatmul.msk.bf16.vlgmr.msra.gmra.mxu0 %vm495_vm0, %v474_v2  ;;  %v520_v12 = vmul.f32 32.0, %v1021_v11  ;;  %vm524_vm1 = vweird.f32 %v1021_v11  ;;  %v954_v47 = vld [vmem:[%s1330_s8 + $0x20] sm:$0xff]  ;;  %p1043_p12 = scmp.ne.s32.totalorder %s1041_s27, %s1042_s28  ;;  %s1046_s21 = scalar_lea.hbm %s1332_s10, 16 }
  0x1e   : > { %v950_v63 = vld [vmem:[%s1330_s8] sm:$0xff]  ;;  %p1047_p1 = scmp.lt.s32.totalorder %s1041_s27, %s1332_s10  ;;  %p1048_p2 = scmp.lt.s32.totalorder %s1046_s21, %s1042_s28 }
  0x1f   : > { %v521_v13 = vsub.f32 1.0, %v520_v12  ;;  %707 = vmatpush.bf16.msra.mxu2 %v955_v44  ;;  %p1044_p13 = pnand %p1043_p12, %p1203_p4 }
  0x20   : > { %p1049_p3 = por %p1048_p2, %p1047_p1 }
  0x21   : > { %v522_v14 = vmul.f32 %v1021_v11, %v521_v13  ;;  %p1045_p0 = pneg %p1044_p13 }
  0x23   : > { %v523_v15 = vadd.f32 %v1021_v11, %v522_v14  ;;  %708 = vmatpush.bf16.msra.mxu2 %v954_v47  ;;  %p1050_p5 = pnand %p1049_p3, %p1045_p0 }
  0x25   : > { %v525_v16 = vsel %vm524_vm1, %v1021_v11, %v523_v15 }
  0x27   : > { %709 = vmatpush.bf16.msra.mxu2 %v953_v50 }
  0x2b   : > { %710 = vmatpush.bf16.msra.mxu2 %v952_v54 }
  0x2f   : > { %711 = vmatpush.bf16.msra.mxu2 %v951_v59 }
  0x33   : > { %712 = vmatpush.bf16.msra.mxu2 %v950_v63 }
  0x9a   : > { %v508_v5 = vpop.f32.mrf.mxu0 }
  0x9b   : > { %v509_v6 = vadd.f32 %v1015_v3, %v508_v5 }
  0x9d   : > { %v512_v7 = vadd.f32 %v509_v6, %v473_v4 }
  0x9f   : > { %513 = vst.msk [vmem:[#allocation2] sm:$0xff] %vm495_vm0, %v512_v7  ;;  %v516_v8 = vsel %vm495_vm0, %v512_v7, 0.0 }
  0xa0   : > { %517 = vadd.xlane.f32.xlu0 %v516_v8 }
  0xa2   : > { %v510_v9 = vpop.f32.mrf.mxu0 }
 0x113   : > { %v518_v17 = vpop.xlane.xlu0 %517 }
 0x114   : > { %v526_v18 = vmul.f32 %v525_v16, %v518_v17 }
 0x116   : > { %v527_v19 = vsub.f32 %v512_v7, %v526_v18  ;;  %v1107_v7 = vmov 0.0  }
 0x117   : > { %556 = vst.msk [vmem:[#allocation4] sm:$0xff] %vm495_vm0, %v1107_v7 }
 0x118   : > { %v528_v20 = vmul.f32 %v527_v19, %v527_v19 }
 0x11a   : > { %v529_v21 = vsel %vm495_vm0, %v528_v20, 0.0 }
 0x11b   : > { %530 = vadd.xlane.f32.xlu0 %v529_v21 }
 0x18e   : > { %v531_v23 = vpop.xlane.xlu0 %530 }
 0x18f   : > { %v532_v25 = vmul.f32 %v531_v23, %v525_v16 }
 0x191   : > { %v533_v26 = vadd.f32 1e-05, %v532_v25 }
 0x193   : > { %1022 = vrsqrt.f32 %v533_v26  ;;  %vm540_vm3 = vweird.f32 %v533_v26 }
 0x199   : > { %v1023_v27 = vpop.eup %1022 }
 0x19a   : > { %v535_v28 = vmul.f32 %v1023_v27, %v533_v26  ;;  %vm541_vm2 = vweird.f32 %v1023_v27 }
 0x19b   : > { %vm542_vm4 = vmor %vm540_vm3, %vm541_vm2 }
 0x19c   : > { %v536_v29 = vmul.f32 %v1023_v27, %v535_v28 }
 0x19e   : > { %v537_v30 = vmul.f32 0.5, %v536_v29 }
 0x1a0   : > { %v538_v31 = vsub.f32 1.5, %v537_v30  ;;  %v639_v30 = vld [vmem:[#allocation4] sm:$0xff] }
 0x1a2   : > { %v539_v32 = vmul.f32 %v1023_v27, %v538_v31 }
 0x1a4   : > { %v543_v34 = vsel %vm542_vm4, %v1023_v27, %v539_v32 }
 0x1a5   : > { %v544_v36 = vmul.f32 %v543_v34, %v527_v19  ;;  %v1019_v34 = vld [vmem:[%s1331_s9] ss:$0 sm:$0xff] }
 0x1a7   : > { %v548_v37 = vmul.f32 %v1016_v33, %v544_v36 }
 0x1a9   : > { %v552_v38 = vadd.f32 %v1017_v35, %v548_v37  ;;  %v723_v35 = vld [vmem:[#allocation2] sm:$0xff] }
 0x1ab   : > { %v553_v39 = vpack.c.bf16 %v552_v38, %v552_v38 }
 0x1ad   : > { %555 = vst.msk [vmem:[#allocation3] sm:$0xf] %vm554_vm5, %v553_v39 }
 0x1b4   : > { %v557_v40 = vld [vmem:[#allocation3] sm:$0xf] }
 0x1b5   : > { %908 = vmatmul.msk.bf16.vlgmr.msra.gmra.mxu1 %vm495_vm0, %v557_v40 }
 0x232   : > { %v591_v45 = vpop.f32.mrf.mxu1 }
 0x233   : > { %v592_v46 = vadd.f32 %v1018_v43, %v591_v45 }
 0x235   : > { %v596_v48 = vmul.f32 0.70710677, %v592_v46  ;;  %v595_v26 = vmul.f32 0.5, %v592_v46 }
 0x237   : > { %v597_v49 = vmul.f32 %v596_v48, %v596_v48 }
 0x239   : > { %v598_v51 = vmin.f32 %v597_v49, 16.0 }
 0x23a   : > { %v593_v52 = vpop.f32.mrf.mxu1 }
 0x23b   : > { %v599_v53 = vmul.f32 2.1237322e-06, %v598_v51  ;;  %v610_v55 = vmul.f32 3.8918573e-05, %v598_v51 }
 0x23d   : > { %v600_v56 = vadd.f32 0.00028619796, %v599_v53  ;;  %v611_v57 = vadd.f32 0.001143296, %v610_v55 }
 0x23f   : > { %v601_v58 = vmul.f32 %v600_v56, %v598_v51  ;;  %v612_v60 = vmul.f32 %v611_v57, %v598_v51 }
 0x241   : > { %v613_v61 = vadd.f32 0.014752088, %v612_v60  ;;  %v602_v62 = vadd.f32 0.0036580483, %v601_v58 }
 0x243   : > { %v614_v0 = vmul.f32 %v613_v61, %v598_v51  ;;  %v603_v2 = vmul.f32 %v602_v62, %v598_v51 }
 0x245   : > { %v615_v1 = vadd.f32 0.112945676, %v614_v0  ;;  %v604_v5 = vadd.f32 0.05243302, %v603_v2 }
 0x247   : > { %v616_v3 = vmul.f32 %v615_v1, %v598_v51  ;;  %v605_v9 = vmul.f32 %v604_v5, %v598_v51 }
 0x249   : > { %v617_v4 = vadd.f32 0.4994258, %v616_v3  ;;  %v606_v10 = vadd.f32 0.18741608, %v605_v9 }
 0x24b   : > { %v618_v6 = vmul.f32 %v617_v4, %v598_v51  ;;  %v607_v12 = vmul.f32 %v606_v10, %v598_v51 }
 0x24d   : > { %v619_v8 = vadd.f32 1.0, %v618_v6  ;;  %v608_v16 = vadd.f32 1.1283791, %v607_v12 }
 0x24f   : > { %1024 = vrcp.f32 %v619_v8  ;;  %v631_v15 = vand.u32 2147483648, %v619_v8  ;;  %v629_v18 = vand.u32 2147483647, %v619_v8  ;;  %vm625_vm7 = vweird.f32 %v619_v8 }
 0x250   : > { %v609_v21 = vmul.f32 %v608_v16, %v596_v48 }
 0x251   : > { %v632_v20 = vor.u32 1.1754944e-38, %v631_v15  ;;  %vm630_vm9 = vcmp.eq.f32.partialorder %v629_v18, 8.507059e+37 }
 0x255   : > { %v1025_v11 = vpop.eup %1024 }
 0x256   : > { %v621_v13 = vmul.f32 %v1025_v11, %v619_v8  ;;  %vm626_vm6 = vweird.f32 %v1025_v11 }
 0x257   : > { %vm627_vm8 = vmor %vm625_vm7, %vm626_vm6 }
 0x258   : > { %v622_v14 = vsub.f32 1.0, %v621_v13 }
 0x25a   : > { %v623_v17 = vmul.f32 %v1025_v11, %v622_v14 }
 0x25c   : > { %v624_v19 = vadd.f32 %v1025_v11, %v623_v17 }
 0x25e   : > { %v628_v22 = vsel %vm627_vm8, %v1025_v11, %v624_v19 }
 0x25f   : > { %v633_v23 = vsel %vm630_vm9, %v632_v20, %v628_v22 }
 0x260   : > { %v634_v24 = vmul.f32 %v633_v23, %v609_v21 }
 0x262   : > { %v909_v25 = vclamps-f32 %v634_v24, 1.0 }
 0x264   : > { %v637_v27 = vadd.f32 1.0, %v909_v25 }
 0x266   : > { %v638_v28 = vmul.f32 %v637_v27, %v595_v26 }
 0x268   : > { %v640_v29 = vpack.c.bf16 %v638_v28, %v638_v28 }
 0x26a   : > { %713 = vmatmul.bf16.vlgmr.msra.gmra.mxu2 %v640_v29 }
 0x2ed   : > { %v714_v31 = vpop.f32.mrf.mxu2 }
 0x2ee   : > { %v718_v32 = vadd.f32 %v714_v31, %v639_v30 }
 0x2f0   : > { %719 = vst.msk [vmem:[#allocation4] sm:$0xff] %vm495_vm0, %v718_v32 }
 0x2f5   : > { %v716_v33 = vpop.f32.mrf.mxu2 }
 0x2f7   : > { %v724_v36 = vld [vmem:[#allocation4] sm:$0xff] }
 0x2f8   : > { %v725_v37 = vadd.f32 %v724_v36, %v723_v35 }
 0x2fa   : > { %v730_v38 = vadd.f32 %v1019_v34, %v725_v37 }
 0x2fc   : > { %731 = vst.msk [vmem:[%s440_s20] sm:$0xff] %vm495_vm0, %v730_v38 }
 0x2fd   : > { %1053 = shalt.err (!%p1050_p5)
}
 0x2fe   : > { %958 = dma.vmem_to_hbm [thread:$0]  (%p1203_p4), %s747_s22, 128, %s749_s24, %s733_s16  }
 0x2ff PF: > { %p964_p6 = scmp.ge.s32.totalorder %s1104_s18, 2  ;;  %s760_s17 = sand.u32 1, %s1084_s13  }
 0x300   : > { %s761_s12 = scalar_lea.sflag [#allocation6], %s760_s17 }
 0x301   : > { %p961_p7 = pnand %p964_p6, %p1210_p8 }
 0x303   : > { %p962_p9 = pneg %p961_p7 }
 0x305   : > { %1079 = dma.done.wait (%p962_p9), %s761_s12, 128  }
 0x306   : > { %1081 = vsyncadd (%p962_p9), %s761_s12, 4294967168  ;;  %s23_s18 = sadd.s32 1, %s1104_s18   ;;  %s1340_s19 = sld [smem:[#allocation10_spill]] }
 0x307   : > { %p20_p10 = scmp.ge.s32.totalorder %s23_s18, 4   ;;  %s1341_s16 = sld [smem:[#allocation8_spill]] }
 0x308   : > { %s1342_s17 = sld [smem:[#allocation9_spill]]  ;;  %s1343_s13 = smov %s1088_s14 }
 0x309   : > { %s1344_s14 = smov %s1092_s15  ;;  %22 = sbr.rel (!%p20_p10) target bundleno = 4 (0x4), region = 115 }
 0x30c   : > { %s1345_s15 = smov %s1340_s19 }
 0x30e   :  { %767 = vsyncpa [#allocation6], 1 }
 0x30f   :  { %769 = vsyncpa [#allocation6 + $0x1], 1 }

// kernel: transformer_layer.3
= control target key start
LH: loop header
LB: loop body
LE: loop exit
PB: predicated region body
PF: predicated region fallthrough
CT: control target
= control target key end

     0   :  { %s883_s30 = smov 0   ;;  %s885_s10 = smov 0   ;;  %s955_s0 = inlined_call_operand.vmem [shape: f32[2,8,32], index: 0, kind: input, shape index: {}]   ;;  %s956_s1 = inlined_call_operand.vmem [shape: f32[1,32], index: 1, kind: input, shape index: {}]   ;;  %s957_s2 = inlined_call_operand.vmem [shape: f32[1,32], index: 2, kind: input, shape index: {}]   ;;  %s958_s3 = inlined_call_operand.vmem [shape: bf16[32,96], index: 3, kind: input, shape index: {}]   ;;  %s959_s4 = inlined_call_operand.vmem [shape: f32[1,96], index: 4, kind: input, shape index: {}]   ;;  %s960_s5 = inlined_call_operand.vmem [shape: f32[8,32], index: 5, kind: input, shape index: {}]   ;;  %s961_s6 = inlined_call_operand.vmem [shape: f32[8,32], index: 6, kind: input, shape index: {}]   ;;  %s962_s7 = inlined_call_operand.vmem [shape: bf16[2,8,32], index: 7, kind: output, shape index: {0}]   ;;  %s963_s8 = inlined_call_operand.vmem [shape: bf16[2,8,32], index: 8, kind: output, shape index: {1}]   ;;  %s964_s9 = inlined_call_operand.vmem [shape: bf16[2,8,32], index: 9, kind: output, shape index: {2}]  }
   0x1   :  { %s887_s11 = smov 0  }
   0x2 LB: > { %s32_s12 = sadd.s32 1, %s820_s10  ;;  %p746_p0 = scmp.ge.s32.totalorder %s824_s11, 1  ;;  %s824_s11 = sphi %s887_s11, %s20_s11   ;;  %s820_s10 = sphi %s885_s10, %s966_s10   ;;  %s816_s30 = sphi %s883_s30, %s965_s30  }
   0x3   : > { %p34_p1 = scmp.ge.s32.totalorder %s32_s12, 2  ;;  %p332_p2 = scmp.lt.s32.totalorder %s824_s11, 3 }
   0x5   : > { %s968_s12 = smov (%p34_p1, %s32_s12), 0  ;;  %p333_p3 = pnand %p746_p0, %p332_p2 }
   0x6   : > { %p394_p4 = scmp.lt.s32.totalorder (!%p333_p3), %s816_s30, 1  ;;  %s827_s23 = smov (!%p333_p3), 32  }
   0x7   : > { %336 = sbr.rel (%p333_p3) target bundleno = 751 (0x2ef), region = 48  ;;  %s829_s14 = smov (!%p333_p3), 112  }
   0x8   : > { %s830_s15 = smov (!%p333_p3), 80   ;;  %s831_s22 = smov (!%p333_p3), 64  }
   0xc   : > { %s970_s30 = smov (!%p394_p4, %s816_s30), 1  ;;  %vm434_vm0 = vcmask 261120   ;;  %v826_v2 = vmov 32.0   ;;  %v763_v14 = vld [vmem:[%s958_s3 + $0x8] sm:$0xff]  ;;  %v762_v15 = vld [vmem:[%s958_s3] sm:$0xff]  ;;  %vm519_vm5 = vcmask 130048  }
   0xd   : > { %s747_s13 = sshll.u32 %s970_s30, 3  ;;  %798 = vrcp.f32 %v826_v2  ;;  %502 = vmatpush.bf16.msra.mxu0 %v763_v14  ;;  %v509_v16 = vld [vmem:[%s960_s5] sm:$0xff]  ;;  %s748_s18 = sshll.u32 %s970_s30, 2  ;;  %vm524_vm6 = vcmask 257024  }
   0xe   : > { %s400_s16 = scalar_lea.vmem %s955_s0, %s747_s13  ;;  %527 = vrot.lane.b32.xlu2 %v509_v16, %s827_s23  ;;  %v795_v26 = vld [vmem:[%s956_s1] ss:$0 sm:$0xff]  ;;  %s828_s13 = smov 16  }
   0xf   : > { %v431_v0 = vld [vmem:[%s400_s16] sm:$0xff]  ;;  %s415_s21 = scalar_lea.vmem %s962_s7, %s748_s18  ;;  %s832_s30 = smov 96  }
  0x10   : > { %v435_v1 = vsel %vm434_vm0, %v431_v0, 0.0  ;;  %v796_v29 = vld [vmem:[%s957_s2] ss:$0 sm:$0xff]  ;;  %s429_s26 = scalar_lea.vmem %s964_s9, %s748_s18 }
  0x11   : > { %436 = vadd.xlane.f32.xlu0 %v435_v1  ;;  %503 = vmatpush.bf16.msra.mxu0 %v762_v15  ;;  %v797_v33 = vld [vmem:[%s959_s4] ss:$0 sm:$0xff] }
  0x12   : > { %v510_v37 = vld [vmem:[%s961_s6] sm:$0xff] }
  0x13   : > { %v799_v3 = vpop.eup %798 }
  0x14   : > { %v439_v4 = vmul.f32 32.0, %v799_v3  ;;  %vm443_vm1 = vweird.f32 %v799_v3 }
  0x16   : > { %v440_v5 = vsub.f32 1.0, %v439_v4 }
  0x18   : > { %v441_v6 = vmul.f32 %v799_v3, %v440_v5 }
  0x1a   : > { %v442_v7 = vadd.f32 %v799_v3, %v441_v6 }
  0x1c   : > { %v444_v8 = vsel %vm443_vm1, %v799_v3, %v442_v7 }
  0x68   : > { %v528_v49 = vpop.permute.xlu2 %527 }
  0x84   : > { %v437_v9 = vpop.xlane.xlu0 %436 }
  0x85   : > { %v445_v10 = vmul.f32 %v444_v8, %v437_v9 }
  0x87   : > { %v446_v11 = vsub.f32 %v431_v0, %v445_v10 }
  0x89   : > { %v447_v12 = vmul.f32 %v446_v11, %v446_v11 }
  0x8b   : > { %v448_v13 = vsel %vm434_vm0, %v447_v12, 0.0 }
  0x8c   : > { %449 = vadd.xlane.f32.xlu0 %v448_v13 }
  0xff   : > { %v450_v17 = vpop.xlane.xlu0 %449 }
 0x100   : > { %v451_v18 = vmul.f32 %v450_v17, %v444_v8 }
 0x102   : > { %v452_v19 = vadd.f32 1e-05, %v451_v18 }
 0x104   : > { %800 = vrsqrt.f32 %v452_v19  ;;  %vm459_vm3 = vweird.f32 %v452_v19 }
 0x10a   : > { %v801_v20 = vpop.eup %800 }
 0x10b   : > { %v454_v21 = vmul.f32 %v801_v20, %v452_v19  ;;  %vm460_vm2 = vweird.f32 %v801_v20 }
 0x10c   : > { %vm461_vm4 = vmor %vm459_vm3, %vm460_vm2 }
 0x10d   : > { %v455_v22 = vmul.f32 %v801_v20, %v454_v21 }
 0x10f   : > { %v456_v23 = vmul.f32 0.5, %v455_v22 }
 0x111   : > { %v457_v24 = vsub.f32 1.5, %v456_v23 }
 0x113   : > { %v458_v25 = vmul.f32 %v801_v20, %v457_v24 }
 0x115   : > { %v462_v27 = vsel %vm461_vm4, %v801_v20, %v458_v25 }
 0x116   : > { %v463_v28 = vmul.f32 %v462_v27, %v446_v11 }
 0x118   : > { %v467_v30 = vmul.f32 %v795_v26, %v463_v28 }
 0x11a   : > { %v471_v31 = vadd.f32 %v796_v29, %v467_v30 }
 0x11c   : > { %v472_v32 = vpack.c.bf16 %v471_v31, %v471_v31 }
 0x11e   : > { %759 = vmatmul.msk.bf16.vlgmr.msra.gmra.mxu0 %vm434_vm0, %v472_v32 }
 0x19b   : > { %v505_v34 = vpop.f32.mrf.mxu0 }
 0x19c   : > { %v506_v35 = vadd.f32 %v797_v33, %v505_v34 }
 0x19e   : > { %516 = vrot.lane.b32.xlu0 %v506_v35, %s828_s13  ;;  %513 = vrot.lane.b32.xlu1 %v506_v35, %s829_s14  ;;  %v511_v41 = vmul.f32 %v509_v16, %v506_v35  ;;  %v547_v48 = vpack.c.bf16 %v506_v35, %v506_v35  ;;  %v530_v50 = vmul.f32 %v528_v49, %v506_v35 }
 0x1a3   : > { %v507_v36 = vpop.f32.mrf.mxu0 }
 0x1a6   : > { %531 = vrot.lane.b32.xlu1 %v506_v35, %s830_s15 }
 0x210   : > { %v517_v38 = vpop.permute.xlu0 %516  ;;  %v514_v39 = vpop.permute.xlu1 %513 }
 0x211   : > { %v520_v40 = vsel %vm519_vm5, %v514_v39, %v517_v38 }
 0x212   : > { %v521_v42 = vmul.f32 %v520_v40, %v510_v37 }
 0x214   : > { %v522_v43 = vadd.f32 %v521_v42, %v511_v41 }
 0x216   : > { %v523_v44 = vpack.c.bf16 %v522_v43, %v522_v43 }
 0x218   : > { %v532_v45 = vpop.permute.xlu1 %531  ;;  %525 = vst.msk [vmem:[%s415_s21] sm:$0xf] %vm524_vm6, %v523_v44 }
 0x219   : > { %v534_v46 = vsel %vm519_vm5, %v532_v45, %v514_v39 }
 0x21a   : > { %v535_v47 = vmul.f32 %v534_v46, %v510_v37 }
 0x21c   : > { %537 = vrot.lane.b32.xlu2 %v535_v47, %s827_s23  ;;  %s422_s23 = scalar_lea.vmem %s963_s8, %s748_s18 }
 0x224   : > { %549 = vrot.lane.b32.xlu2 %v547_v48, %s831_s22 }
 0x276   : > { %v538_v51 = vpop.permute.xlu2 %537 }
 0x277   : > { %v540_v52 = vadd.f32 %v538_v51, %v530_v50 }
 0x279   : > { %v541_v53 = vpack.c.bf16 %v540_v52, %v540_v52 }
 0x27b   : > { %543 = vrot.lane.b32.xlu1 %v541_v53, %s832_s30 }
 0x27e   : > { %v550_v54 = vpop.permute.xlu2 %549 }
 0x27f   : > { %552 = vst.msk [vmem:[%s429_s26] sm:$0xf] %vm524_vm6, %v550_v54 }
 0x2ed   : > { %v544_v55 = vpop.permute.xlu1 %543 }
 0x2ee   : > { %546 = vst.msk [vmem:[%s422_s23] sm:$0xf] %vm524_vm6, %v544_v55 }
 0x2ef PF: > { %s20_s11 = sadd.s32 1, %s824_s11   ;;  %s965_s30 = smov %s820_s10 }
 0x2f0   : > { %p17_p5 = scmp.ge.s32.totalorder %s20_s11, 4   ;;  %s966_s10 = smov %s968_s12 }
 0x2f2   :  { %19 = sbr.rel (!%p17_p5) target bundleno = 2 (0x2), region = 108 }

// kernel: transformer_layer.4
= control target key start
LH: loop header
LB: loop body
LE: loop exit
PB: predicated region body
PF: predicated region fallthrough
CT: control target
= control target key end

     0   :  { %s1560_s12 = smov 0   ;;  %s1562_s13 = smov 0   ;;  %s1752_s0 = inlined_call_operand.vmem [shape: bf16[2,8,32], index: 0, kind: input, shape index: {}]   ;;  %s1753_s1 = inlined_call_operand.vmem [shape: bf16[2,8,32], index: 1, kind: input, shape index: {}]   ;;  %s1754_s2 = inlined_call_operand.vmem [shape: bf16[2,8,32], index: 2, kind: input, shape index: {}]   ;;  %s1755_s3 = inlined_call_operand.vmem [shape: bf16[2,8,32], index: 3, kind: output, shape index: {}]  }
   0x1   :  { %s1564_s14 = smov 0  }
   0x2 LB: > { %s32_s15 = sadd.s32 1, %s1521_s13  ;;  %p1408_p0 = scmp.ge.s32.totalorder %s1525_s14, 1  ;;  %s1525_s14 = sphi %s1564_s14, %s13_s14   ;;  %s1521_s13 = sphi %s1562_s13, %s1757_s13   ;;  %s1517_s12 = sphi %s1560_s12, %s1756_s12  }
   0x3   : > { %p34_p1 = scmp.ge.s32.totalorder %s32_s15, 2  ;;  %p206_p2 = scmp.lt.s32.totalorder %s1525_s14, 3 }
   0x5   : > { %s1759_s15 = smov (%p34_p1, %s32_s15), 0  ;;  %p207_p3 = pnand %p1408_p0, %p206_p2 }
   0x6   : > { %p252_p4 = scmp.lt.s32.totalorder (!%p207_p3), %s1517_s12, 1  ;;  %s1527_s23 = smov (!%p207_p3), 112  }
   0x7   : > { %210 = sbr.rel (%p207_p3) target bundleno = 1640 (0x668), region = 32  ;;  %s1529_s24 = smov (!%p207_p3), 108  }
   0x8   : > { %s1530_s25 = smov (!%p207_p3), 124   ;;  %s1533_s29 = smov (!%p207_p3), 120  }
   0x9   : > { %s1534_s30 = smov (!%p207_p3), 104   ;;  %s1535_s4 = smov (!%p207_p3), 116  }
   0xa   : > { %s1536_s5 = smov (!%p207_p3), 100   ;;  %s1537_s6 = smov (!%p207_p3), 8  }
   0xb   : > { %s1538_s10 = smov (!%p207_p3), 16   ;;  %s1539_s11 = smov (!%p207_p3), 24  }
   0xc   : > { %s1761_s12 = smov (!%p252_p4, %s1517_s12), 1  ;;  %vm762_vm0 = vcmask 31744   ;;  %vm293_vm1 = vcmask 7168   ;;  %v1528_v12 = vmov -1e+30   ;;  %v742_v13 = vlaneseq }
   0xd   : > { %s1578_s16 = sshll.u32 %s1761_s12, 2  ;;  %294 = vst.msk [vmem:[#allocation2] sm:$0xff] %vm293_vm1, %v1528_v12  ;;  %vm302_vm3 = vcmask 64512   ;;  %v1531_v21 = vmov 0   ;;  %v1532_v22 = vmov 0.0   ;;  %vm838_vm4 = vcmask 1043456  }
   0xe   : > { %s267_s19 = scalar_lea.vmem %s1753_s1, %s1578_s16  ;;  %s258_s22 = scalar_lea.vmem %s1752_s0, %s1578_s16  ;;  %295 = vst.msk [vmem:[#allocation2 + $0x8] sm:$0xff] %vm293_vm1, %v1528_v12  ;;  %v1604_v14 = vshrl.u32 %v742_v13, 7  ;;  %v1606_v15 = vand.u32 127, %v742_v13  ;;  %1476 = vset.pattern.permute.xlu1 %v1531_v21  ;;  %1477 = vset.pattern.permute.xlu2 %v1531_v21  ;;  %vm1202_vm13 = vcmask 60416   ;;  %vm1233_vm14 = vcmask 126016  }
   0xf   : > { %v739_v0 = vld [vmem:[%s267_s19] sm:$0xf]  ;;  %296 = vst.msk [vmem:[#allocation2 + $0x10] sm:$0xff] %vm293_vm1, %v1528_v12  ;;  %1478 = vset.pattern.permute.xlu0 %v1531_v21  ;;  %s278_s28 = scalar_lea.vmem %s1754_s2, %s1578_s16  ;;  %s1737_s9 = scalar_lea.vmem %s1755_s3, %s1578_s16 }
  0x10   : > { %v758_v1 = vunpack.c.l.b16 %v739_v0  ;;  %v786_v2 = vsel %vm762_vm0, %v739_v0, 0  ;;  %v738_v3 = vld [vmem:[%s258_s22] sm:$0xf]  ;;  %297 = vst.msk [vmem:[#allocation2 + $0x18] sm:$0xff] %vm293_vm1, %v1528_v12  ;;  %vm751_vm2 = vcmp.gt.s32.totalorder %v1606_v15, %v1604_v14 }
  0x11   : > { %795 = vmatpush.bf16.xpose.msra.mxu1 %v786_v2  ;;  %v753_v5 = vunpack.c.l.b16 %v738_v3  ;;  %299 = vst.msk [vmem:[#allocation3 + $0x8] sm:$0xff] %vm293_vm1, %v1532_v22  ;;  %v740_v28 = vld [vmem:[%s278_s28] sm:$0xf] }
  0x12   : > { %v1589_v4 = vpack.c.b16 %v758_v1, %v758_v1  ;;  %298 = vst.msk [vmem:[#allocation3] sm:$0xff] %vm293_vm1, %v1532_v22  ;;  %v840_v30 = vsel %vm838_vm4, %v740_v28, 0  ;;  %v940_v40 = vunpack.c.l.b16 %v740_v28 }
  0x13   : > { %v1593_v6 = vpack.c.b16 %v753_v5, %v753_v5  ;;  %300 = vst.msk [vmem:[#allocation3 + $0x10] sm:$0xff] %vm293_vm1, %v1532_v22  ;;  %849 = vmatpush.bf16.msra.mxu2 %v840_v30 }
  0x14   : > { %760 = vrot.lane.b32.xlu0 %v1589_v4, %s1527_s23  ;;  %860 = vrot.lane.b32.xlu2 %v1589_v4, %s1529_s24  ;;  %301 = vst.msk [vmem:[#allocation3 + $0x18] sm:$0xff] %vm293_vm1, %v1532_v22  ;;  %v1626_v23 = vld [vmem:[#allocation2] sm:$0xff]  ;;  %v1650_v41 = vpack.c.b16 %v940_v40, %v940_v40 }
  0x15   : > { %303 = vst.msk [vmem:[#allocation4] sm:$0xff] %vm302_vm3, %v1532_v22  ;;  %v1666_v51 = vld [vmem:[#allocation2 + $0x8] sm:$0xff] }
  0x16   : > { %304 = vst.msk [vmem:[#allocation4 + $0x8] sm:$0xff] %vm302_vm3, %v1532_v22  ;;  %v1014_v15 = vld [vmem:[#allocation2 + $0x10] sm:$0xff] }
  0x17   : > { %305 = vst.msk [vmem:[#allocation4 + $0x10] sm:$0xff] %vm302_vm3, %v1532_v22 }
  0x18   : > { %1426 = vmatmul.msk.bf16.vlgmr.msra.gmra.mxu1 %vm762_vm0, %v738_v3  ;;  %306 = vst.msk [vmem:[#allocation4 + $0x18] sm:$0xff] %vm302_vm3, %v1532_v22 }
  0x1c   : > { %755 = vrot.lane.b32.xlu0 %v1593_v6, %s1527_s23  ;;  %883 = vrot.lane.b32.xlu2 %v1589_v4, %s1530_s25 }
  0x24   : > { %858 = vrot.lane.b32.xlu0 %v1593_v6, %s1529_s24  ;;  %881 = vrot.lane.b32.xlu2 %v1593_v6, %s1530_s25 }
  0x2c   : > { %968 = vrot.lane.b32.xlu2 %v1589_v4, %s1534_s30 }
  0x6e   : > { %v861_v27 = vpop.permute.xlu2 %860 }
  0x6f   : > { %v866_v29 = vsel %vm762_vm0, %v861_v27, 0 }
  0x70   : > { %875 = vmatpush.bf16.xpose.msra.mxu3 %v866_v29 }
  0x76   : > { %v884_v31 = vpop.permute.xlu2 %883 }
  0x77   : > { %v889_v32 = vsel %vm762_vm0, %v884_v31, 0 }
  0x78   : > { %898 = vmatpush.bf16.xpose.msrb.mxu2 %v889_v32 }
  0x7e   : > { %v882_v39 = vpop.permute.xlu2 %881 }
  0x86   : > { %v761_v7 = vpop.permute.xlu0 %760  ;;  %v969_v55 = vpop.permute.xlu2 %968 }
  0x87   : > { %v767_v8 = vsel %vm762_vm0, %v761_v7, 0  ;;  %v974_v56 = vsel %vm762_vm0, %v969_v55, 0 }
  0x88   : > { %776 = vmatpush.bf16.xpose.msra.mxu0 %v767_v8  ;;  %983 = vmatpush.bf16.xpose.msrb.mxu1 %v974_v56 }
  0x8e   : > { %v756_v9 = vpop.permute.xlu0 %755 }
  0x8f   : > { %1425 = vmatmul.msk.bf16.vlgmr.msra.gmra.mxu0 %vm762_vm0, %v756_v9 }
  0x95   : > { %v797_v10 = vpop.f32.mrf.mxu1 }
  0x96   : > { %v859_v33 = vpop.permute.xlu0 %858 }
  0x97   : > { %1428 = vmatmul.msk.bf16.vlgmr.msra.gmra.mxu3 %vm762_vm0, %v859_v33 }
  0x9d   : > { %v799_v11 = vpop.f32.mrf.mxu1 }
 0x10c   : > { %v778_v16 = vpop.f32.mrf.mxu0 }
 0x10d   : > { %v798_v17 = vadd.f32 %v797_v10, %v778_v16 }
 0x10f   : > { %v801_v18 = vsel %vm751_vm2, -1e+30, %v798_v17 }
 0x110   : > { %v804_v19 = vsel %vm302_vm3, %v801_v18, -inf }
 0x111   : > { %805 = vmax.xlane.f32.xlu1 %v804_v19 }
 0x114   : > { %v780_v20 = vpop.f32.mrf.mxu0 }
 0x11a   : > { %v877_v42 = vpop.f32.mrf.mxu3 }
 0x122   : > { %v879_v43 = vpop.f32.mrf.mxu3 }
 0x184   : > { %v806_v24 = vpop.xlane.xlu1 %805 }
 0x185   : > { %v1629_v25 = vmax.f32 %v1626_v23, %v806_v24 }
 0x187   : > { %v808_v26 = vsub.f32 %v1626_v23, %v1629_v25  ;;  %857 = vst.msk [vmem:[#allocation2] sm:$0xff] %vm293_vm1, %v1629_v25  ;;  %813 = vperm.xlu1 %1476, %v1629_v25   ;;  %v923_v23 = vld [vmem:[#allocation3 + $0x8] sm:$0xff] }
 0x189   : > { %v809_v32 = vmul.f32 1.442695, %v808_v26 }
 0x18f   : > { %942 = vrot.lane.b32.xlu1 %v1650_v41, %s1533_s29 }
 0x197   : > { %991 = vrot.lane.b32.xlu1 %v1589_v4, %s1533_s29 }
 0x19f   : > { %1096 = vrot.lane.b32.xlu1 %v1589_v4, %s1535_s4 }
 0x1a7   : > { %1071 = vrot.lane.b32.xlu1 %v1593_v6, %s1536_s5 }
 0x1f9   : > { %v814_v34 = vpop.permute.xlu1 %813 }
 0x1fa   : > { %v816_v35 = vsub.f32 %v801_v18, %v814_v34 }
 0x1fc   : > { %v817_v36 = vmul.f32 1.442695, %v816_v35  ;;  %v1119_v35 = vld [vmem:[#allocation2 + $0x18] sm:$0xff] }
 0x1fe   : > { %1479 = vpow2.f32 %v817_v36 }
 0x201   : > { %v943_v57 = vpop.permute.xlu1 %942 }
 0x202   : > { %v948_v58 = vsel %vm838_vm4, %v943_v57, 0 }
 0x203   : > { %957 = vmatpush.bf16.msrb.mxu0 %v948_v58 }
 0x204   : > { %v1644_v37 = vpop.eup %1479 }
 0x205   : > { %v834_v38 = vpack.c.bf16 %v1644_v37, %v1644_v37 }
 0x207   : > { %1427 = vmatmul.msk.bf16.vlgmr.msra.gmra.mxu2 %vm302_vm3, %v834_v38 }
 0x209   : > { %v992_v59 = vpop.permute.xlu1 %991 }
 0x20a   : > { %v997_v60 = vsel %vm762_vm0, %v992_v59, 0 }
 0x20b   : > { %1006 = vmatpush.bf16.xpose.msrb.mxu3 %v997_v60 }
 0x211   : > { %v1097_v61 = vpop.permute.xlu1 %1096 }
 0x212   : > { %v1102_v62 = vsel %vm762_vm0, %v1097_v61, 0 }
 0x213   : > { %1111 = vmatpush.bf16.xpose.msra.mxu1 %v1102_v62 }
 0x217   : > { %1429 = vmatmul.msk.bf16.vlgmr.msrb.gmra.mxu2 %vm762_vm0, %v882_v39 }
 0x219   : > { %v1072_v8 = vpop.permute.xlu1 %1071 }
 0x28a   : > { %v1658_v44 = vpop.f32.mrf.mxu2 }
 0x292   : > { %v853_v45 = vpop.f32.mrf.mxu2 }
 0x29a   : > { %v900_v46 = vpop.f32.mrf.mxu2 }
 0x29b   : > { %v901_v47 = vadd.f32 %v900_v46, %v877_v42 }
 0x29d   : > { %v904_v48 = vsel %vm751_vm2, -1e+30, %v901_v47 }
 0x29e   : > { %v907_v49 = vsel %vm302_vm3, %v904_v48, -inf }
 0x29f   : > { %908 = vmax.xlane.f32.xlu0 %v907_v49 }
 0x2a2   : > { %v902_v50 = vpop.f32.mrf.mxu2 }
 0x312   : > { %v909_v52 = vpop.xlane.xlu0 %908 }
 0x313   : > { %v910_v53 = vmax.f32 %v1666_v51, %v909_v52  ;;  %v821_v52 = vsel %vm302_vm3, %v1644_v37, 0.0 }
 0x315   : > { %v911_v54 = vsub.f32 %v1666_v51, %v910_v53  ;;  %965 = vst.msk [vmem:[#allocation2 + $0x8] sm:$0xff] %vm293_vm1, %v910_v53  ;;  %916 = vperm.xlu2 %1477, %v910_v53  }
 0x317   : > { %v912_v14 = vmul.f32 1.442695, %v911_v54 }
 0x31d   : > { %966 = vrot.lane.b32.xlu2 %v1593_v6, %s1534_s30 }
 0x325   : > { %1073 = vrot.lane.b32.xlu2 %v1589_v4, %s1536_s5 }
 0x32d   : > { %989 = vrot.lane.b32.xlu2 %v1593_v6, %s1533_s29 }
 0x335   : > { %1094 = vrot.lane.b32.xlu2 %v1593_v6, %s1535_s4 }
 0x36f   : > { %v917_v63 = vpop.permute.xlu2 %916 }
 0x370   : > { %v919_v0 = vsub.f32 %v904_v48, %v917_v63  ;;  %v827_v48 = vld [vmem:[#allocation4] sm:$0xff] }
 0x372   : > { %v920_v1 = vmul.f32 1.442695, %v919_v0 }
 0x374   : > { %1481 = vpow2.f32 %v920_v1 }
 0x375   : > { %1483 = vpow2.f32 %v809_v32 }
 0x376   : > { %1485 = vpow2.f32 %v912_v14 }
 0x377   : > { %v967_v2 = vpop.permute.xlu2 %966 }
 0x378   : > { %1431 = vmatmul.msk.bf16.vlgmr.msrb.gmra.mxu1 %vm762_vm0, %v967_v2 }
 0x37a   : > { %v1482_v3 = vpop.eup %1481 }
 0x37b   : > { %v938_v4 = vpack.c.bf16 %v1482_v3, %v1482_v3  ;;  %v925_v31 = vsel %vm302_vm3, %v1482_v3, 0.0  ;;  %v1704_v33 = vpop.eup %1483 }
 0x37c   : > { %v1486_v42 = vpop.eup %1485 }
 0x37d   : > { %1430 = vmatmul.msk.bf16.vlgmr.msrb.gmra.mxu0 %vm302_vm3, %v938_v4  ;;  %v924_v43 = vmul.f32 %v1486_v42, %v923_v23  ;;  %v1136_v23 = vld [vmem:[#allocation3 + $0x18] sm:$0xff] }
 0x37f   : > { %v1074_v5 = vpop.permute.xlu2 %1073 }
 0x380   : > { %v1079_v6 = vsel %vm762_vm0, %v1074_v5, 0  ;;  %v819_v5 = vld [vmem:[#allocation3] sm:$0xff] }
 0x381   : > { %1088 = vmatpush.bf16.xpose.msra.mxu0 %v1079_v6  ;;  %v820_v6 = vmul.f32 %v1704_v33, %v819_v5 }
 0x387   : > { %v990_v7 = vpop.permute.xlu2 %989 }
 0x388   : > { %1432 = vmatmul.msk.bf16.vlgmr.msrb.gmra.mxu3 %vm762_vm0, %v990_v7 }
 0x38d   : > { %1434 = vmatmul.msk.bf16.vlgmr.msra.gmra.mxu0 %vm762_vm0, %v1072_v8 }
 0x38f   : > { %v1095_v9 = vpop.permute.xlu2 %1094 }
 0x390   : > { %1435 = vmatmul.msk.bf16.vlgmr.msra.gmra.mxu1 %vm762_vm0, %v1095_v9  ;;  %v931_v9 = vld [vmem:[#allocation4 + $0x8] sm:$0xff] }
 0x3f5   : > { %v985_v10 = vpop.f32.mrf.mxu1 }
 0x3fa   : > { %v1687_v11 = vpop.f32.mrf.mxu0 }
 0x3fd   : > { %v987_v12 = vpop.f32.mrf.mxu1 }
 0x402   : > { %v961_v13 = vpop.f32.mrf.mxu0 }
 0x40a   : > { %v1090_v16 = vpop.f32.mrf.mxu0 }
 0x40b   : > { %v1008_v17 = vpop.f32.mrf.mxu3 }
 0x40c   : > { %v1009_v18 = vadd.f32 %v1008_v17, %v985_v10 }
 0x40d   : > { %v1113_v19 = vpop.f32.mrf.mxu1 }
 0x40e   : > { %v1114_v20 = vadd.f32 %v1113_v19, %v1090_v16  ;;  %v1012_v21 = vsel %vm751_vm2, -1e+30, %v1009_v18 }
 0x40f   : > { %v1015_v22 = vsel %vm302_vm3, %v1012_v21, -inf }
 0x410   : > { %1016 = vmax.xlane.f32.xlu1 %v1015_v22  ;;  %v1696_v24 = vsel %vm751_vm2, -1e+30, %v1114_v20 }
 0x411   : > { %v1120_v27 = vsel %vm302_vm3, %v1696_v24, -inf }
 0x412   : > { %1121 = vmax.xlane.f32.xlu0 %v1120_v27  ;;  %v1092_v28 = vpop.f32.mrf.mxu0 }
 0x413   : > { %v1010_v29 = vpop.f32.mrf.mxu3 }
 0x415   : > { %v1115_v30 = vpop.f32.mrf.mxu1 }
 0x418   : > { %926 = vadd.xlane.f32.xlu1 %v925_v31 }
 0x431   : > { %830 = vperm.xlu1 %1476, %v1704_v33  }
 0x483   : > { %v1017_v34 = vpop.xlane.xlu1 %1016 }
 0x484   : > { %v1018_v36 = vmax.f32 %v1014_v15, %v1017_v34  ;;  %v1039_v34 = vld [vmem:[#allocation4 + $0x10] sm:$0xff] }
 0x485   : > { %v1122_v38 = vpop.xlane.xlu0 %1121 }
 0x486   : > { %v1019_v39 = vsub.f32 %v1014_v15, %v1018_v36  ;;  %1070 = vst.msk [vmem:[#allocation2 + $0x10] sm:$0xff] %vm293_vm1, %v1018_v36  ;;  %v1123_v40 = vmax.f32 %v1119_v35, %v1122_v38  ;;  %1024 = vperm.xlu2 %1477, %v1018_v36  }
 0x488   : > { %v1020_v25 = vmul.f32 1.442695, %v1019_v39  ;;  %v1124_v26 = vsub.f32 %v1119_v35, %v1123_v40  ;;  %1175 = vst.msk [vmem:[#allocation2 + $0x18] sm:$0xff] %vm293_vm1, %v1123_v40  ;;  %1129 = vperm.xlu0 %1478, %v1123_v40  }
 0x48a   : > { %1487 = vpow2.f32 %v1020_v25  ;;  %v1125_v61 = vmul.f32 1.442695, %v1124_v26 }
 0x48b   : > { %v927_v45 = vpop.xlane.xlu1 %926 }
 0x48c   : > { %v928_v46 = vadd.f32 %v927_v45, %v924_v43 }
 0x48e   : > { %929 = vst.msk [vmem:[#allocation3 + $0x8] sm:$0xff] %vm293_vm1, %v928_v46  ;;  %1047 = vrot.lane.b32.xlu2 %v1650_v41, %s1527_s23 }
 0x490   : > { %v1488_v47 = vpop.eup %1487 }
 0x491   : > { %1042 = vperm.xlu1 %1476, %v1488_v47  }
 0x495   : > { %v1207_v53 = vld [vmem:[#allocation3 + $0x8] sm:$0xff] }
 0x496   : > { %1152 = vrot.lane.b32.xlu2 %v1650_v41, %s1534_s30 }
 0x4a3   : > { %v831_v49 = vpop.permute.xlu1 %830 }
 0x4a4   : > { %v833_v50 = vmul.f32 %v831_v49, %v827_v48 }
 0x4a6   : > { %v855_v51 = vadd.f32 %v1658_v44, %v833_v50 }
 0x4a8   : > { %856 = vst.msk [vmem:[#allocation4] sm:$0xff] %vm302_vm3, %v855_v51 }
 0x4bf   : > { %822 = vadd.xlane.f32.xlu2 %v821_v52 }
 0x4d7   : > { %934 = vperm.xlu2 %1477, %v1486_v42  }
 0x4df   : > { %1210 = vperm.xlu2 %1477, %v1207_v53  }
 0x4e0   : > { %v1025_v54 = vpop.permute.xlu2 %1024 }
 0x4e1   : > { %v1027_v55 = vsub.f32 %v1012_v21, %v1025_v54  ;;  %v1031_v21 = vld [vmem:[#allocation3 + $0x10] sm:$0xff] }
 0x4e3   : > { %v1028_v56 = vmul.f32 1.442695, %v1027_v55 }
 0x4e5   : > { %1489 = vpow2.f32 %v1028_v56 }
 0x4e6   : > { %1491 = vpow2.f32 %v1125_v61 }
 0x4e8   : > { %v1048_v57 = vpop.permute.xlu2 %1047 }
 0x4e9   : > { %v1053_v41 = vsel %vm838_vm4, %v1048_v57, 0 }
 0x4ea   : > { %1062 = vmatpush.bf16.msra.mxu2 %v1053_v41 }
 0x4eb   : > { %v1490_v58 = vpop.eup %1489 }
 0x4ec   : > { %v1046_v59 = vpack.c.bf16 %v1490_v58, %v1490_v58  ;;  %v1033_v44 = vsel %vm302_vm3, %v1490_v58, 0.0  ;;  %v1492_v1 = vpop.eup %1491 }
 0x4ed   : > { %1034 = vadd.xlane.f32.xlu0 %v1033_v44  ;;  %v1137_v26 = vmul.f32 %v1492_v1, %v1136_v23 }
 0x4ee   : > { %1433 = vmatmul.msk.bf16.vlgmr.msra.gmra.mxu2 %vm302_vm3, %v1046_v59 }
 0x4f0   : > { %v1153_v37 = vpop.permute.xlu2 %1152 }
 0x4f1   : > { %v1158_v60 = vsel %vm838_vm4, %v1153_v37, 0 }
 0x4f2   : > { %1167 = vmatpush.bf16.msra.mxu3 %v1158_v60  ;;  %v1179_v60 = vld [vmem:[#allocation4] sm:$0xff] }
 0x4fa   : > { %v1130_v62 = vpop.permute.xlu0 %1129 }
 0x4fb   : > { %v1132_v63 = vsub.f32 %v1696_v24, %v1130_v62  ;;  %v1032_v24 = vmul.f32 %v1488_v47, %v1031_v21  ;;  %v1144_v47 = vld [vmem:[#allocation4 + $0x18] sm:$0xff] }
 0x4fd   : > { %v1133_v0 = vmul.f32 1.442695, %v1132_v63 }
 0x4ff   : > { %1493 = vpow2.f32 %v1133_v0 }
 0x501   : > { %1147 = vperm.xlu0 %1478, %v1492_v1  }
 0x503   : > { %v1043_v35 = vpop.permute.xlu1 %1042 }
 0x504   : > { %v1045_v38 = vmul.f32 %v1043_v35, %v1039_v34 }
 0x505   : > { %v1494_v2 = vpop.eup %1493 }
 0x506   : > { %v1151_v3 = vpack.c.bf16 %v1494_v2, %v1494_v2  ;;  %v1138_v4 = vsel %vm302_vm3, %v1494_v2, 0.0 }
 0x507   : > { %1139 = vadd.xlane.f32.xlu1 %v1138_v4 }
 0x508   : > { %1436 = vmatmul.msk.bf16.vlgmr.msra.gmra.mxu3 %vm302_vm3, %v1151_v3 }
 0x532   : > { %v823_v7 = vpop.xlane.xlu2 %822 }
 0x533   : > { %v824_v8 = vadd.f32 %v823_v7, %v820_v6 }
 0x535   : > { %826 = vst.msk [vmem:[#allocation3] sm:$0xff] %vm293_vm1, %v824_v8 }
 0x53a   : > { %v935_v10 = vpop.permute.xlu2 %934 }
 0x53b   : > { %v937_v12 = vmul.f32 %v935_v10, %v931_v9 }
 0x53c   : > { %v1180_v13 = vld [vmem:[#allocation3] sm:$0xff] }
 0x53d   : > { %v963_v16 = vadd.f32 %v1687_v11, %v937_v12  ;;  %1183 = vperm.xlu1 %1476, %v1180_v13  }
 0x53f   : > { %964 = vst.msk [vmem:[#allocation4 + $0x8] sm:$0xff] %vm302_vm3, %v963_v16 }
 0x542   : > { %v1211_v17 = vpop.permute.xlu2 %1210 }
 0x543   : > { %1495 = vrcp.f32 %v1211_v17  ;;  %v1224_v30 = vand.u32 2147483648, %v1211_v17  ;;  %vm1218_vm6 = vweird.f32 %v1211_v17  ;;  %v1222_v11 = vand.u32 2147483647, %v1211_v17 }
 0x545   : > { %v1225_v32 = vor.u32 1.1754944e-38, %v1224_v30  ;;  %vm1223_vm8 = vcmp.eq.f32.partialorder %v1222_v11, 8.507059e+37 }
 0x546   : > { %v1205_v15 = vld [vmem:[#allocation4 + $0x8] sm:$0xff] }
 0x549   : > { %v1496_v18 = vpop.eup %1495 }
 0x54a   : > { %v1214_v19 = vmul.f32 %v1496_v18, %v1211_v17  ;;  %vm1219_vm5 = vweird.f32 %v1496_v18 }
 0x54b   : > { %vm1220_vm7 = vmor %vm1218_vm6, %vm1219_vm5 }
 0x54c   : > { %v1215_v20 = vsub.f32 1.0, %v1214_v19 }
 0x54e   : > { %v1216_v22 = vmul.f32 %v1496_v18, %v1215_v20 }
 0x550   : > { %v1217_v29 = vadd.f32 %v1496_v18, %v1216_v22 }
 0x552   : > { %v1221_v31 = vsel %vm1220_vm7, %v1496_v18, %v1217_v29  ;;  %vm1264_vm7 = vcmask 191616  }
 0x553   : > { %v1226_v14 = vsel %vm1223_vm8, %v1225_v32, %v1221_v31  ;;  %vm1295_vm8 = vcmask 257216  }
 0x554   : > { %v1227_v36 = vmul.f32 %v1226_v14, %v1205_v15 }
 0x556   : > { %v1228_v40 = vpack.c.bf16 %v1227_v36, %v1227_v36 }
 0x560   : > { %v1035_v27 = vpop.xlane.xlu0 %1034 }
 0x561   : > { %v1036_v28 = vadd.f32 %v1035_v27, %v1032_v24 }
 0x563   : > { %1037 = vst.msk [vmem:[#allocation3 + $0x10] sm:$0xff] %vm293_vm1, %v1036_v28 }
 0x56a   : > { %v1238_v33 = vld [vmem:[#allocation3 + $0x10] sm:$0xff] }
 0x56b   : > { %1241 = vperm.xlu1 %1476, %v1238_v33  }
 0x571   : > { %v1064_v39 = vpop.f32.mrf.mxu2 }
 0x572   : > { %v1068_v42 = vadd.f32 %v1064_v39, %v1045_v38 }
 0x573   : > { %1230 = vrot.lane.b32.xlu1 %v1228_v40, %s1537_s6  ;;  %v1148_v48 = vpop.permute.xlu0 %1147 }
 0x574   : > { %1069 = vst.msk [vmem:[#allocation4 + $0x10] sm:$0xff] %vm302_vm3, %v1068_v42  ;;  %v1150_v49 = vmul.f32 %v1148_v48, %v1144_v47 }
 0x579   : > { %v1066_v25 = vpop.f32.mrf.mxu2 }
 0x57a   : > { %v1140_v43 = vpop.xlane.xlu1 %1139 }
 0x57b   : > { %v1141_v45 = vadd.f32 %v1140_v43, %v1137_v26  ;;  %v1236_v24 = vld [vmem:[#allocation4 + $0x10] sm:$0xff] }
 0x57d   : > { %1142 = vst.msk [vmem:[#allocation3 + $0x18] sm:$0xff] %vm293_vm1, %v1141_v45 }
 0x584   : > { %v1269_v46 = vld [vmem:[#allocation3 + $0x18] sm:$0xff] }
 0x585   : > { %1272 = vperm.xlu2 %1477, %v1269_v46  }
 0x58b   : > { %v1169_v50 = vpop.f32.mrf.mxu3 }
 0x58c   : > { %v1173_v51 = vadd.f32 %v1169_v50, %v1150_v49 }
 0x58e   : > { %1174 = vst.msk [vmem:[#allocation4 + $0x18] sm:$0xff] %vm302_vm3, %v1173_v51 }
 0x593   : > { %v1171_v52 = vpop.f32.mrf.mxu3 }
 0x595   : > { %v1267_v30 = vld [vmem:[#allocation4 + $0x18] sm:$0xff] }
 0x5af   : > { %v1184_v53 = vpop.permute.xlu1 %1183 }
 0x5b0   : > { %1497 = vrcp.f32 %v1184_v53  ;;  %v1197_v57 = vand.u32 2147483648, %v1184_v53  ;;  %v1195_v58 = vand.u32 2147483647, %v1184_v53  ;;  %vm1191_vm10 = vweird.f32 %v1184_v53 }
 0x5b2   : > { %v1198_v44 = vor.u32 1.1754944e-38, %v1197_v57  ;;  %vm1196_vm12 = vcmp.eq.f32.partialorder %v1195_v58, 8.507059e+37 }
 0x5b6   : > { %v1498_v54 = vpop.eup %1497 }
 0x5b7   : > { %v1187_v55 = vmul.f32 %v1498_v54, %v1184_v53  ;;  %vm1192_vm9 = vweird.f32 %v1498_v54 }
 0x5b8   : > { %vm1193_vm11 = vmor %vm1191_vm10, %vm1192_vm9 }
 0x5b9   : > { %v1188_v56 = vsub.f32 1.0, %v1187_v55 }
 0x5bb   : > { %v1189_v41 = vmul.f32 %v1498_v54, %v1188_v56 }
 0x5bd   : > { %v1190_v59 = vadd.f32 %v1498_v54, %v1189_v41 }
 0x5bf   : > { %v1194_v37 = vsel %vm1193_vm11, %v1498_v54, %v1190_v59 }
 0x5c0   : > { %v1199_v61 = vsel %vm1196_vm12, %v1198_v44, %v1194_v37 }
 0x5c1   : > { %v1200_v62 = vmul.f32 %v1199_v61, %v1179_v60 }
 0x5c3   : > { %v1201_v63 = vpack.c.bf16 %v1200_v62, %v1200_v62 }
 0x5c5   : > { %1203 = vst.msk [vmem:[%s1737_s9] sm:$0xf] %vm1202_vm13, %v1201_v63 }
 0x5dd   : > { %v1242_v0 = vpop.permute.xlu1 %1241 }
 0x5de   : > { %1499 = vrcp.f32 %v1242_v0  ;;  %v1255_v8 = vand.u32 2147483648, %v1242_v0  ;;  %v1253_v12 = vand.u32 2147483647, %v1242_v0  ;;  %vm1249_vm0 = vweird.f32 %v1242_v0 }
 0x5df   : > { %v1273_v1 = vpop.permute.xlu2 %1272 }
 0x5e0   : > { %1501 = vrcp.f32 %v1273_v1  ;;  %v1286_v13 = vand.u32 2147483648, %v1273_v1  ;;  %v1284_v18 = vand.u32 2147483647, %v1273_v1  ;;  %v1256_v19 = vor.u32 1.1754944e-38, %v1255_v8 }
 0x5e1   : > { %vm1280_vm3 = vweird.f32 %v1273_v1  ;;  %vm1254_vm4 = vcmp.eq.f32.partialorder %v1253_v12, 8.507059e+37 }
 0x5e2   : > { %v1287_v22 = vor.u32 1.1754944e-38, %v1286_v13  ;;  %vm1285_vm6 = vcmp.eq.f32.partialorder %v1284_v18, 8.507059e+37 }
 0x5e4   : > { %v1500_v2 = vpop.eup %1499 }
 0x5e5   : > { %v1245_v3 = vmul.f32 %v1500_v2, %v1242_v0  ;;  %v1231_v4 = vpop.permute.xlu1 %1230  ;;  %vm1250_vm15 = vweird.f32 %v1500_v2 }
 0x5e6   : > { %v1502_v5 = vpop.eup %1501  ;;  %1234 = vst.msk [vmem:[%s1737_s9] sm:$0xf] %vm1233_vm14, %v1231_v4  ;;  %vm1251_vm2 = vmor %vm1249_vm0, %vm1250_vm15 }
 0x5e7   : > { %v1246_v6 = vsub.f32 1.0, %v1245_v3  ;;  %v1276_v7 = vmul.f32 %v1502_v5, %v1273_v1  ;;  %vm1281_vm1 = vweird.f32 %v1502_v5 }
 0x5e8   : > { %vm1282_vm5 = vmor %vm1280_vm3, %vm1281_vm1 }
 0x5e9   : > { %v1247_v9 = vmul.f32 %v1500_v2, %v1246_v6  ;;  %v1277_v10 = vsub.f32 1.0, %v1276_v7 }
 0x5eb   : > { %v1278_v16 = vmul.f32 %v1502_v5, %v1277_v10  ;;  %v1248_v17 = vadd.f32 %v1500_v2, %v1247_v9 }
 0x5ed   : > { %v1252_v20 = vsel %vm1251_vm2, %v1500_v2, %v1248_v17  ;;  %v1279_v21 = vadd.f32 %v1502_v5, %v1278_v16 }
 0x5ee   : > { %v1257_v27 = vsel %vm1254_vm4, %v1256_v19, %v1252_v20 }
 0x5ef   : > { %v1258_v28 = vmul.f32 %v1257_v27, %v1236_v24  ;;  %v1283_v29 = vsel %vm1282_vm5, %v1502_v5, %v1279_v21 }
 0x5f0   : > { %v1288_v11 = vsel %vm1285_vm6, %v1287_v22, %v1283_v29 }
 0x5f1   : > { %v1259_v31 = vpack.c.bf16 %v1258_v28, %v1258_v28  ;;  %v1289_v32 = vmul.f32 %v1288_v11, %v1267_v30 }
 0x5f3   : > { %1261 = vrot.lane.b32.xlu0 %v1259_v31, %s1538_s10  ;;  %v1290_v33 = vpack.c.bf16 %v1289_v32, %v1289_v32 }
 0x5f5   : > { %1292 = vrot.lane.b32.xlu2 %v1290_v33, %s1539_s11 }
 0x64f   : > { %v1293_v15 = vpop.permute.xlu2 %1292 }
 0x665   : > { %v1262_v14 = vpop.permute.xlu0 %1261 }
 0x666   : > { %1265 = vst.msk [vmem:[%s1737_s9] sm:$0xf] %vm1264_vm7, %v1262_v14 }
 0x667   : > { %1296 = vst.msk [vmem:[%s1737_s9] sm:$0xf] %vm1295_vm8, %v1293_v15 }
 0x668 PF: > { %s13_s14 = sadd.s32 1, %s1525_s14   ;;  %s1756_s12 = smov %s1521_s13 }
 0x669   : > { %p10_p5 = scmp.ge.s32.totalorder %s13_s14, 4   ;;  %s1757_s13 = smov %s1759_s15 }
 0x66b   :  { %12 = sbr.rel (!%p10_p5) target bundleno = 2 (0x2), region = 108 }

</bundles_post_ra>
